<compile_context>
chip_gen: v7x
topology: tpu7x:2x2x1
jax: 0.10.0
libtpu: 0.0.40
codegen_flags: <defaults>
</compile_context>

<pallas_src>
import functools

import jax
import jax.numpy as jnp
from jax import lax
from jax.experimental import pallas as pl
from jax.experimental.pallas import tpu as pltpu


SUBLANE = 8

CFG = dict(
    img_size=32,      # small demo size (args.img_size)
    patch=16,         # ViT-B/16 patch size
    in_chans=3,
    embed_dim=128,    # lane-dense (one full 128-lane register row)
    num_heads=2,      # head_dim = 64
    mlp_ratio=4,
    proj_dim=128,
    depth=2,
    eps=1e-5,
)


def _round_up(x, m):
    return (x + m - 1) // m * m


def _ln(x, g, b, eps):
    """Row-wise layernorm in f32 (v5e-safe elementwise path)."""
    mean = jnp.mean(x, axis=-1, keepdims=True)
    var = jnp.mean((x - mean) ** 2, axis=-1, keepdims=True)
    return (x - mean) * lax.rsqrt(var + eps) * g + b


# --------------------------------------------------------------------------
# Single fused kernel: embed -> depth x (attn, mlp) -> pool
# --------------------------------------------------------------------------
def _vit_fused_kernel(p_ref, pw_ref, pb_ref, cls_ref, pos_ref,
                      preg_ref, preb_ref,
                      ln1g_ref, ln1b_ref, wqkv_ref, bqkv_ref, wo_ref, bo_ref,
                      ln2g_ref, ln2b_ref, w1_ref, b1_ref, w2_ref, b2_ref,
                      postg_ref, postb_ref, projw_ref, projb_ref,
                      o_ref, *, depth, nh, dh, n_tok, s_pad, scale, eps):
    d = pw_ref.shape[1]

    row_ids = lax.broadcasted_iota(jnp.int32, (s_pad, 1), 0)
    row_mask = row_ids < n_tok                                   # valid tokens
    kmask = lax.broadcasted_iota(jnp.int32, (s_pad, s_pad), 1) < n_tok

    # ---- patch-embed matmul + cls + pos + pre-LN (one (s_pad, d) block) ----
    # p_ref holds host-padded bf16 patches: row 0 and rows >= n_tok are zero,
    # rows 1..n_tok-1 are the im2col'ed patches, so one M=s_pad matmul covers
    # everything and row 0 / padded rows are overridden / masked below.
    emb = jnp.dot(p_ref[0], pw_ref[...],
                  preferred_element_type=jnp.float32)            # (s_pad, d)
    patch_rows = emb + pb_ref[...] + pos_ref[...]                # (s_pad, d)
    cls_row = cls_ref[...].astype(jnp.float32) + pos_ref[0:1, :]  # (1, d)
    tok = jnp.where(row_ids == 0, cls_row, patch_rows)
    tok = jnp.where(row_mask, _ln(tok, preg_ref[...], preb_ref[...], eps), 0.0)

    # ---- transformer blocks (static unroll, weights resident in VMEM) ----
    for l in range(depth):
        # attention sub-block: LN1 -> QKV -> per-head attn -> out-proj -> +res
        xn = _ln(tok, ln1g_ref[l], ln1b_ref[l], eps)
        qkv = jnp.dot(xn.astype(jnp.bfloat16), wqkv_ref[l],
                      preferred_element_type=jnp.float32) + bqkv_ref[l]
        heads = []
        for h in range(nh):                                      # static unroll
            lo = h * dh
            # NOTE: with dh=64 these are 64-lane sub-slices of one vreg; at
            # real head counts (12) pad/realign heads to 128-lane boundaries.
            qh = qkv[:, lo:lo + dh].astype(jnp.bfloat16)
            kh = qkv[:, d + lo:d + lo + dh].astype(jnp.bfloat16)
            vh = qkv[:, 2 * d + lo:2 * d + lo + dh].astype(jnp.bfloat16)
            # contract last axes directly: no explicit K transpose (no XLU copy)
            s = lax.dot_general(qh, kh, (((1,), (1,)), ((), ())),
                                preferred_element_type=jnp.float32) * scale
            s = jnp.where(kmask, s, -1e30)
            s = s - jnp.max(s, axis=-1, keepdims=True)
            p = jnp.exp(s)
            p = p * pl.reciprocal(jnp.sum(p, axis=-1, keepdims=True),
                                  approx=True)
            heads.append(jnp.dot(p.astype(jnp.bfloat16), vh,
                                 preferred_element_type=jnp.float32))
        # concat heads -> single K=128 output projection matmul
        attn = jnp.concatenate(heads, axis=-1)                   # (s_pad, d)
        attn = jnp.dot(attn.astype(jnp.bfloat16), wo_ref[l],
                       preferred_element_type=jnp.float32) + bo_ref[l]
        tok = tok + jnp.where(row_mask, attn, 0.0)

        # MLP sub-block: LN2 -> fc1 -> GELU -> fc2 -> +res
        xn = _ln(tok, ln2g_ref[l], ln2b_ref[l], eps)
        hdn = jnp.dot(xn.astype(jnp.bfloat16), w1_ref[l],
                      preferred_element_type=jnp.float32) + b1_ref[l]
        # TODO(synk): CONCH uses exact erf-GELU; tanh approximation used here.
        hdn = jax.nn.gelu(hdn, approximate=True)
        mlp = jnp.dot(hdn.astype(jnp.bfloat16), w2_ref[l],
                      preferred_element_type=jnp.float32) + b2_ref[l]
        tok = tok + jnp.where(row_mask, mlp, 0.0)

    # ---- cls-token pooling + final LN + projection ----
    # TODO(synk): CONCH attentional pooler approximated by cls pooling + linear.
    cls_tok = tok[0:1, :]
    xn = _ln(cls_tok, postg_ref[...], postb_ref[...], eps)
    out = jnp.dot(xn.astype(jnp.bfloat16), projw_ref[...],
                  preferred_element_type=jnp.float32) + projb_ref[...]
    o_ref[0] = out.astype(o_ref.dtype)


# --------------------------------------------------------------------------
# pallas_call wrapper
# --------------------------------------------------------------------------
def vit_conch_call(params, patches_pad, *, cfg):
    b_, s_pad, cpp = patches_pad.shape
    d = cfg["embed_dim"]
    nh = cfg["num_heads"]
    dh = d // nh
    depth = cfg["depth"]
    hidden = cfg["mlp_ratio"] * d
    pd = cfg["proj_dim"]
    eps = cfg["eps"]
    n_tok = (cfg["img_size"] // cfg["patch"]) ** 2 + 1
    scale = 1.0 / (dh ** 0.5)

    def rep(shape):
        # full-array block, replicated across the batch grid axis
        return pl.BlockSpec(shape, lambda *_, shape=shape: (0,) * len(shape))

    in_specs = [
        pl.BlockSpec((1, s_pad, cpp), lambda i: (i, 0, 0)),      # patches (padded)
        rep((cpp, d)), rep((1, d)),                              # patch_w / patch_b
        rep((1, d)), rep((s_pad, d)),                            # cls / pos (padded)
        rep((1, d)), rep((1, d)),                                # ln_pre g / b
        rep((depth, 1, d)), rep((depth, 1, d)),                  # ln1 g / b
        rep((depth, d, 3 * d)), rep((depth, 1, 3 * d)),          # qkv w / b
        rep((depth, d, d)), rep((depth, 1, d)),                  # attn out-proj w / b
        rep((depth, 1, d)), rep((depth, 1, d)),                  # ln2 g / b
        rep((depth, d, hidden)), rep((depth, 1, hidden)),        # fc1 w / b
        rep((depth, hidden, d)), rep((depth, 1, d)),             # fc2 w / b
        rep((1, d)), rep((1, d)),                                # ln_post g / b
        rep((d, pd)), rep((1, pd)),                              # proj w / b
    ]

    out = pl.pallas_call(
        functools.partial(_vit_fused_kernel, depth=depth, nh=nh, dh=dh,
                          n_tok=n_tok, s_pad=s_pad, scale=scale, eps=eps),
        grid=(b_,),
        in_specs=in_specs,
        out_specs=pl.BlockSpec((1, 1, pd), lambda i: (i, 0, 0)),
        out_shape=jax.ShapeDtypeStruct((b_, 1, pd), jnp.float32),
        compiler_params=pltpu.CompilerParams(
            dimension_semantics=("parallel",)),
    )(patches_pad,
      params["patch_w"], params["patch_b"], params["cls"], params["pos"],
      params["ln_pre_g"], params["ln_pre_b"],
      params["ln1_g"], params["ln1_b"], params["qkv_w"], params["qkv_b"],
      params["attn_w"], params["attn_b"],
      params["ln2_g"], params["ln2_b"], params["fc1_w"], params["fc1_b"],
      params["fc2_w"], params["fc2_b"],
      params["ln_post_g"], params["ln_post_b"],
      params["proj_w"], params["proj_b"])
    return out.reshape(b_, pd)


# --------------------------------------------------------------------------
# Model (synthetic small CONCH-style ViT), params stacked along depth
# --------------------------------------------------------------------------
def init_params(key, cfg):
    d = cfg["embed_dim"]
    p = cfg["patch"]
    c = cfg["in_chans"]
    depth = cfg["depth"]
    n_tok = (cfg["img_size"] // p) ** 2 + 1
    s_pad = _round_up(n_tok, SUBLANE)
    hidden = cfg["mlp_ratio"] * d

    def nrm(k, shape, scale=0.02, dtype=jnp.bfloat16):
        return (scale * jax.random.normal(k, shape, jnp.float32)).astype(dtype)

    keys = jax.random.split(key, 8)
    pos = nrm(keys[2], (n_tok, d), dtype=jnp.float32)
    pos = jnp.pad(pos, ((0, s_pad - n_tok), (0, 0)))             # padded rows zero

    return {
        # conv patch-embed weight stored as (C*P*P, D) matmul weight, bf16
        "patch_w": nrm(keys[0], (c * p * p, d)),
        "patch_b": jnp.zeros((1, d), jnp.float32),
        "cls": nrm(keys[1], (1, d), dtype=jnp.float32),
        "pos": pos,
        "ln_pre_g": jnp.ones((1, d), jnp.float32),
        "ln_pre_b": jnp.zeros((1, d), jnp.float32),
        # per-block params stacked along a leading depth axis (VMEM-resident)
        "ln1_g": jnp.ones((depth, 1, d), jnp.float32),
        "ln1_b": jnp.zeros((depth, 1, d), jnp.float32),
        "qkv_w": nrm(keys[3], (depth, d, 3 * d)),
        "qkv_b": jnp.zeros((depth, 1, 3 * d), jnp.float32),
        "attn_w": nrm(keys[4], (depth, d, d)),
        "attn_b": jnp.zeros((depth, 1, d), jnp.float32),
        "ln2_g": jnp.ones((depth, 1, d), jnp.float32),
        "ln2_b": jnp.zeros((depth, 1, d), jnp.float32),
        "fc1_w": nrm(keys[5], (depth, d, hidden)),
        "fc1_b": jnp.zeros((depth, 1, hidden), jnp.float32),
        "fc2_w": nrm(keys[6], (depth, hidden, d)),
        "fc2_b": jnp.zeros((depth, 1, d), jnp.float32),
        "ln_post_g": jnp.ones((1, d), jnp.float32),
        "ln_post_b": jnp.zeros((1, d), jnp.float32),
        "proj_w": nrm(keys[7], (d, cfg["proj_dim"])),
        "proj_b": jnp.zeros((1, cfg["proj_dim"]), jnp.float32),
    }


def patchify(x, patch):
    """NCHW -> (B, nH*nW, C*P*P) im2col for a stride-P, kernel-P conv (XLA glue)."""
    b, c, h, w = x.shape
    nh, nw = h // patch, w // patch
    x = x.reshape(b, c, nh, patch, nw, patch)
    x = jnp.transpose(x, (0, 2, 4, 1, 3, 5))          # (B, nH, nW, C, P, P)
    return x.reshape(b, nh * nw, c * patch * patch)


def vit_conch_forward(params, x, cfg=CFG):
    """x: (B, C, H, W) float32 -> (B, proj_dim) pooled image embedding."""
    n_tok = (cfg["img_size"] // cfg["patch"]) ** 2 + 1
    s_pad = _round_up(n_tok, SUBLANE)

    # im2col + shift down by one row (cls slot) + pad to s_pad rows; bf16 for
    # half the patch DMA.  Tiny XLA glue outside the fused kernel.
    patches = patchify(x, cfg["patch"])
    patches_pad = jnp.pad(patches, ((0, 0), (1, s_pad - n_tok), (0, 0)))
    patches_pad = patches_pad.astype(jnp.bfloat16)

    return vit_conch_call(params, patches_pad, cfg=cfg)


# --------------------------------------------------------------------------
if __name__ == "__main__":
    key = jax.random.PRNGKey(0)
    k_param, k_x = jax.random.split(key)

    params = init_params(k_param, CFG)
    x = jax.random.normal(
        k_x, (2, CFG["in_chans"], CFG["img_size"], CFG["img_size"]), jnp.float32
    )

    fwd = jax.jit(functools.partial(vit_conch_forward, cfg=CFG))
    y = fwd(params, x)
    jax.block_until_ready(y)

    assert y.shape == (2, CFG["proj_dim"]), y.shape
    assert bool(jnp.all(jnp.isfinite(y)))
    print("KERNEL_OK")
</pallas_src>

<mosaic_0001>
module attributes {stable_mosaic.version = 11 : i64} {
  func.func @_vit_fused_kernel(%arg0: i32, %arg1: memref<1x8x768xbf16, #tpu.memory_space<vmem>>, %arg2: memref<768x128xbf16, #tpu.memory_space<vmem>>, %arg3: memref<1x128xf32, #tpu.memory_space<vmem>>, %arg4: memref<1x128xf32, #tpu.memory_space<vmem>>, %arg5: memref<8x128xf32, #tpu.memory_space<vmem>>, %arg6: memref<1x128xf32, #tpu.memory_space<vmem>>, %arg7: memref<1x128xf32, #tpu.memory_space<vmem>>, %arg8: memref<2x1x128xf32, #tpu.memory_space<vmem>>, %arg9: memref<2x1x128xf32, #tpu.memory_space<vmem>>, %arg10: memref<2x128x384xbf16, #tpu.memory_space<vmem>>, %arg11: memref<2x1x384xf32, #tpu.memory_space<vmem>>, %arg12: memref<2x128x128xbf16, #tpu.memory_space<vmem>>, %arg13: memref<2x1x128xf32, #tpu.memory_space<vmem>>, %arg14: memref<2x1x128xf32, #tpu.memory_space<vmem>>, %arg15: memref<2x1x128xf32, #tpu.memory_space<vmem>>, %arg16: memref<2x128x512xbf16, #tpu.memory_space<vmem>>, %arg17: memref<2x1x512xf32, #tpu.memory_space<vmem>>, %arg18: memref<2x512x128xbf16, #tpu.memory_space<vmem>>, %arg19: memref<2x1x128xf32, #tpu.memory_space<vmem>>, %arg20: memref<1x128xf32, #tpu.memory_space<vmem>>, %arg21: memref<1x128xf32, #tpu.memory_space<vmem>>, %arg22: memref<128x128xbf16, #tpu.memory_space<vmem>>, %arg23: memref<1x128xf32, #tpu.memory_space<vmem>>, %arg24: memref<1x1x128xf32, #tpu.memory_space<vmem>>) attributes {dimension_semantics = [#tpu.dimension_semantics<parallel>], iteration_bounds = array<i64: 2>, scalar_prefetch = 0 : i64, scratch_operands = 0 : i64, tpu.core_type = #tpu.core_type<tc>, window_params = [{transform_indices = @transform_0, window_bounds = array<i64: 1, 8, 768>}, {pipeline_mode = #tpu.pipeline_mode<synchronous>, transform_indices = @transform_1, window_bounds = array<i64: 768, 128>}, {pipeline_mode = #tpu.pipeline_mode<synchronous>, transform_indices = @transform_2, window_bounds = array<i64: 1, 128>}, {pipeline_mode = #tpu.pipeline_mode<synchronous>, transform_indices = @transform_3, window_bounds = array<i64: 1, 128>}, {pipeline_mode = #tpu.pipeline_mode<synchronous>, transform_indices = @transform_4, window_bounds = array<i64: 8, 128>}, {pipeline_mode = #tpu.pipeline_mode<synchronous>, transform_indices = @transform_5, window_bounds = array<i64: 1, 128>}, {pipeline_mode = #tpu.pipeline_mode<synchronous>, transform_indices = @transform_6, window_bounds = array<i64: 1, 128>}, {pipeline_mode = #tpu.pipeline_mode<synchronous>, transform_indices = @transform_7, window_bounds = array<i64: 2, 1, 128>}, {pipeline_mode = #tpu.pipeline_mode<synchronous>, transform_indices = @transform_8, window_bounds = array<i64: 2, 1, 128>}, {pipeline_mode = #tpu.pipeline_mode<synchronous>, transform_indices = @transform_9, window_bounds = array<i64: 2, 128, 384>}, {pipeline_mode = #tpu.pipeline_mode<synchronous>, transform_indices = @transform_10, window_bounds = array<i64: 2, 1, 384>}, {pipeline_mode = #tpu.pipeline_mode<synchronous>, transform_indices = @transform_11, window_bounds = array<i64: 2, 128, 128>}, {pipeline_mode = #tpu.pipeline_mode<synchronous>, transform_indices = @transform_12, window_bounds = array<i64: 2, 1, 128>}, {pipeline_mode = #tpu.pipeline_mode<synchronous>, transform_indices = @transform_13, window_bounds = array<i64: 2, 1, 128>}, {pipeline_mode = #tpu.pipeline_mode<synchronous>, transform_indices = @transform_14, window_bounds = array<i64: 2, 1, 128>}, {pipeline_mode = #tpu.pipeline_mode<synchronous>, transform_indices = @transform_15, window_bounds = array<i64: 2, 128, 512>}, {pipeline_mode = #tpu.pipeline_mode<synchronous>, transform_indices = @transform_16, window_bounds = array<i64: 2, 1, 512>}, {pipeline_mode = #tpu.pipeline_mode<synchronous>, transform_indices = @transform_17, window_bounds = array<i64: 2, 512, 128>}, {pipeline_mode = #tpu.pipeline_mode<synchronous>, transform_indices = @transform_18, window_bounds = array<i64: 2, 1, 128>}, {pipeline_mode = #tpu.pipeline_mode<synchronous>, transform_indices = @transform_19, window_bounds = array<i64: 1, 128>}, {pipeline_mode = #tpu.pipeline_mode<synchronous>, transform_indices = @transform_20, window_bounds = array<i64: 1, 128>}, {pipeline_mode = #tpu.pipeline_mode<synchronous>, transform_indices = @transform_21, window_bounds = array<i64: 128, 128>}, {pipeline_mode = #tpu.pipeline_mode<synchronous>, transform_indices = @transform_22, window_bounds = array<i64: 1, 128>}, {transform_indices = @transform_23, window_bounds = array<i64: 1, 1, 128>}]} {
    %0 = tpu.iota {dimensions = array<i32: 0>} : vector<8x1xi32>
    %c5_i32 = arith.constant 5 : i32
    %1 = vector.broadcast %c5_i32 : i32 to vector<8x1xi32>
    %2 = arith.cmpi slt, %0, %1 : vector<8x1xi32>
    %3 = tpu.iota {dimensions = array<i32: 1>} : vector<8x8xi32>
    %c5_i32_0 = arith.constant 5 : i32
    %4 = vector.broadcast %c5_i32_0 : i32 to vector<8x8xi32>
    %5 = arith.cmpi slt, %3, %4 : vector<8x8xi32>
    %c0 = arith.constant 0 : index
    %c0_1 = arith.constant 0 : index
    %c0_2 = arith.constant 0 : index
    %6 = vector.load %arg1[%c0, %c0_1, %c0_2] : memref<1x8x768xbf16, #tpu.memory_space<vmem>>, vector<1x8x768xbf16>
    %7 = vector.shape_cast %6 : vector<1x8x768xbf16> to vector<8x768xbf16>
    %c0_3 = arith.constant 0 : index
    %c0_4 = arith.constant 0 : index
    %8 = vector.load %arg2[%c0_3, %c0_4] : memref<768x128xbf16, #tpu.memory_space<vmem>>, vector<768x128xbf16>
    %cst = arith.constant dense<0.000000e+00> : vector<8x128xf32>
    %9 = tpu.matmul %7, %8, %cst {dimension_numbers = #tpu.dot_dimension_numbers<[1], [0], [0], [1], [0, 0, 1, 1], [], []>} : vector<8x768xbf16>, vector<768x128xbf16>, vector<8x128xf32> -> vector<8x128xf32>
    %c0_5 = arith.constant 0 : index
    %c0_6 = arith.constant 0 : index
    %10 = vector.load %arg3[%c0_5, %c0_6] : memref<1x128xf32, #tpu.memory_space<vmem>>, vector<1x128xf32>
    %11 = vector.broadcast %10 : vector<1x128xf32> to vector<8x128xf32>
    %12 = arith.addf %9, %11 : vector<8x128xf32>
    %c0_7 = arith.constant 0 : index
    %c0_8 = arith.constant 0 : index
    %13 = vector.load %arg5[%c0_7, %c0_8] : memref<8x128xf32, #tpu.memory_space<vmem>>, vector<8x128xf32>
    %14 = arith.addf %12, %13 : vector<8x128xf32>
    %c0_9 = arith.constant 0 : index
    %c0_10 = arith.constant 0 : index
    %15 = vector.load %arg4[%c0_9, %c0_10] : memref<1x128xf32, #tpu.memory_space<vmem>>, vector<1x128xf32>
    %c0_11 = arith.constant 0 : index
    %c0_12 = arith.constant 0 : index
    %16 = vector.load %arg5[%c0_11, %c0_12] : memref<8x128xf32, #tpu.memory_space<vmem>>, vector<1x128xf32>
    %17 = arith.addf %15, %16 : vector<1x128xf32>
    %c0_i32 = arith.constant 0 : i32
    %18 = vector.broadcast %c0_i32 : i32 to vector<8x1xi32>
    %19 = arith.cmpi eq, %0, %18 : vector<8x1xi32>
    %20 = vector.shape_cast %19 : vector<8x1xi1> to vector<8x1xi1>
    %21 = vector.broadcast %20 : vector<8x1xi1> to vector<8x128xi1>
    %22 = vector.shape_cast %17 : vector<1x128xf32> to vector<1x128xf32>
    %23 = vector.broadcast %22 : vector<1x128xf32> to vector<8x128xf32>
    %24 = arith.select %21, %23, %14 : vector<8x128xi1>, vector<8x128xf32>
    %c0_13 = arith.constant 0 : index
    %c0_14 = arith.constant 0 : index
    %25 = vector.load %arg6[%c0_13, %c0_14] : memref<1x128xf32, #tpu.memory_space<vmem>>, vector<1x128xf32>
    %c0_15 = arith.constant 0 : index
    %c0_16 = arith.constant 0 : index
    %26 = vector.load %arg7[%c0_15, %c0_16] : memref<1x128xf32, #tpu.memory_space<vmem>>, vector<1x128xf32>
    %cst_17 = arith.constant dense<0.000000e+00> : vector<8xf32>
    %27 = vector.multi_reduction <add>, %24, %cst_17 [1] : vector<8x128xf32> to vector<8xf32>
    %28 = vector.shape_cast %27 : vector<8xf32> to vector<8x1xf32>
    %cst_18 = arith.constant 1.280000e+02 : f32
    %29 = vector.broadcast %cst_18 : f32 to vector<8x1xf32>
    %30 = arith.divf %28, %29 : vector<8x1xf32>
    %31 = vector.broadcast %30 : vector<8x1xf32> to vector<8x128xf32>
    %32 = arith.subf %24, %31 : vector<8x128xf32>
    %33 = arith.mulf %32, %32 : vector<8x128xf32>
    %cst_19 = arith.constant dense<0.000000e+00> : vector<8xf32>
    %34 = vector.multi_reduction <add>, %33, %cst_19 [1] : vector<8x128xf32> to vector<8xf32>
    %35 = vector.shape_cast %34 : vector<8xf32> to vector<8x1xf32>
    %cst_20 = arith.constant 1.280000e+02 : f32
    %36 = vector.broadcast %cst_20 : f32 to vector<8x1xf32>
    %37 = arith.divf %35, %36 : vector<8x1xf32>
    %38 = vector.broadcast %30 : vector<8x1xf32> to vector<8x128xf32>
    %39 = arith.subf %24, %38 : vector<8x128xf32>
    %cst_21 = arith.constant 9.99999974E-6 : f32
    %40 = vector.broadcast %cst_21 : f32 to vector<8x1xf32>
    %41 = arith.addf %37, %40 : vector<8x1xf32>
    %42 = math.rsqrt %41 : vector<8x1xf32>
    %43 = vector.broadcast %42 : vector<8x1xf32> to vector<8x128xf32>
    %44 = arith.mulf %39, %43 : vector<8x128xf32>
    %45 = vector.broadcast %25 : vector<1x128xf32> to vector<8x128xf32>
    %46 = arith.mulf %44, %45 : vector<8x128xf32>
    %47 = vector.broadcast %26 : vector<1x128xf32> to vector<8x128xf32>
    %48 = arith.addf %46, %47 : vector<8x128xf32>
    %cst_22 = arith.constant 0.000000e+00 : f32
    %49 = vector.shape_cast %2 : vector<8x1xi1> to vector<8x1xi1>
    %50 = vector.broadcast %49 : vector<8x1xi1> to vector<8x128xi1>
    %51 = vector.broadcast %cst_22 : f32 to vector<8x128xf32>
    %52 = arith.select %50, %48, %51 : vector<8x128xi1>, vector<8x128xf32>
    %c0_23 = arith.constant 0 : index
    %c0_24 = arith.constant 0 : index
    %c0_25 = arith.constant 0 : index
    %53 = vector.load %arg8[%c0_23, %c0_24, %c0_25] : memref<2x1x128xf32, #tpu.memory_space<vmem>>, vector<1x1x128xf32>
    %54 = vector.shape_cast %53 : vector<1x1x128xf32> to vector<1x128xf32>
    %c0_26 = arith.constant 0 : index
    %c0_27 = arith.constant 0 : index
    %c0_28 = arith.constant 0 : index
    %55 = vector.load %arg9[%c0_26, %c0_27, %c0_28] : memref<2x1x128xf32, #tpu.memory_space<vmem>>, vector<1x1x128xf32>
    %56 = vector.shape_cast %55 : vector<1x1x128xf32> to vector<1x128xf32>
    %cst_29 = arith.constant dense<0.000000e+00> : vector<8xf32>
    %57 = vector.multi_reduction <add>, %52, %cst_29 [1] : vector<8x128xf32> to vector<8xf32>
    %58 = vector.shape_cast %57 : vector<8xf32> to vector<8x1xf32>
    %cst_30 = arith.constant 1.280000e+02 : f32
    %59 = vector.broadcast %cst_30 : f32 to vector<8x1xf32>
    %60 = arith.divf %58, %59 : vector<8x1xf32>
    %61 = vector.broadcast %60 : vector<8x1xf32> to vector<8x128xf32>
    %62 = arith.subf %52, %61 : vector<8x128xf32>
    %63 = arith.mulf %62, %62 : vector<8x128xf32>
    %cst_31 = arith.constant dense<0.000000e+00> : vector<8xf32>
    %64 = vector.multi_reduction <add>, %63, %cst_31 [1] : vector<8x128xf32> to vector<8xf32>
    %65 = vector.shape_cast %64 : vector<8xf32> to vector<8x1xf32>
    %cst_32 = arith.constant 1.280000e+02 : f32
    %66 = vector.broadcast %cst_32 : f32 to vector<8x1xf32>
    %67 = arith.divf %65, %66 : vector<8x1xf32>
    %68 = vector.broadcast %60 : vector<8x1xf32> to vector<8x128xf32>
    %69 = arith.subf %52, %68 : vector<8x128xf32>
    %cst_33 = arith.constant 9.99999974E-6 : f32
    %70 = vector.broadcast %cst_33 : f32 to vector<8x1xf32>
    %71 = arith.addf %67, %70 : vector<8x1xf32>
    %72 = math.rsqrt %71 : vector<8x1xf32>
    %73 = vector.broadcast %72 : vector<8x1xf32> to vector<8x128xf32>
    %74 = arith.mulf %69, %73 : vector<8x128xf32>
    %75 = vector.broadcast %54 : vector<1x128xf32> to vector<8x128xf32>
    %76 = arith.mulf %74, %75 : vector<8x128xf32>
    %77 = vector.broadcast %56 : vector<1x128xf32> to vector<8x128xf32>
    %78 = arith.addf %76, %77 : vector<8x128xf32>
    %79 = arith.truncf %78 : vector<8x128xf32> to vector<8x128xbf16>
    %c0_34 = arith.constant 0 : index
    %c0_35 = arith.constant 0 : index
    %c0_36 = arith.constant 0 : index
    %80 = vector.load %arg10[%c0_34, %c0_35, %c0_36] : memref<2x128x384xbf16, #tpu.memory_space<vmem>>, vector<1x128x384xbf16>
    %81 = vector.shape_cast %80 : vector<1x128x384xbf16> to vector<128x384xbf16>
    %cst_37 = arith.constant dense<0.000000e+00> : vector<8x384xf32>
    %82 = tpu.matmul %79, %81, %cst_37 {dimension_numbers = #tpu.dot_dimension_numbers<[1], [0], [0], [1], [0, 0, 1, 1], [], []>} : vector<8x128xbf16>, vector<128x384xbf16>, vector<8x384xf32> -> vector<8x384xf32>
    %c0_38 = arith.constant 0 : index
    %c0_39 = arith.constant 0 : index
    %c0_40 = arith.constant 0 : index
    %83 = vector.load %arg11[%c0_38, %c0_39, %c0_40] : memref<2x1x384xf32, #tpu.memory_space<vmem>>, vector<1x1x384xf32>
    %84 = vector.shape_cast %83 : vector<1x1x384xf32> to vector<1x384xf32>
    %85 = vector.broadcast %84 : vector<1x384xf32> to vector<8x384xf32>
    %86 = arith.addf %82, %85 : vector<8x384xf32>
    %87 = vector.extract_strided_slice %86 {offsets = [0, 0], sizes = [8, 64], strides = [1, 1]} : vector<8x384xf32> to vector<8x64xf32>
    %88 = arith.truncf %87 : vector<8x64xf32> to vector<8x64xbf16>
    %89 = vector.extract_strided_slice %86 {offsets = [0, 128], sizes = [8, 64], strides = [1, 1]} : vector<8x384xf32> to vector<8x64xf32>
    %90 = arith.truncf %89 : vector<8x64xf32> to vector<8x64xbf16>
    %91 = vector.extract_strided_slice %86 {offsets = [0, 256], sizes = [8, 64], strides = [1, 1]} : vector<8x384xf32> to vector<8x64xf32>
    %92 = arith.truncf %91 : vector<8x64xf32> to vector<8x64xbf16>
    %cst_41 = arith.constant dense<0.000000e+00> : vector<8x8xf32>
    %93 = tpu.matmul %88, %90, %cst_41 {dimension_numbers = #tpu.dot_dimension_numbers<[1], [1], [0], [0], [0, 0, 1, 0], [], []>} : vector<8x64xbf16>, vector<8x64xbf16>, vector<8x8xf32> -> vector<8x8xf32>
    %cst_42 = arith.constant 1.250000e-01 : f32
    %94 = vector.broadcast %cst_42 : f32 to vector<8x8xf32>
    %95 = arith.mulf %93, %94 : vector<8x8xf32>
    %cst_43 = arith.constant -1.000000e+30 : f32
    %96 = vector.broadcast %cst_43 : f32 to vector<8x8xf32>
    %97 = arith.select %5, %95, %96 : vector<8x8xi1>, vector<8x8xf32>
    %cst_44 = arith.constant dense<0xFF800000> : vector<8xf32>
    %98 = vector.multi_reduction <maximumf>, %97, %cst_44 [1] : vector<8x8xf32> to vector<8xf32>
    %99 = vector.shape_cast %98 : vector<8xf32> to vector<8x1xf32>
    %100 = vector.broadcast %99 : vector<8x1xf32> to vector<8x8xf32>
    %101 = arith.subf %97, %100 : vector<8x8xf32>
    %102 = math.exp %101 : vector<8x8xf32>
    %cst_45 = arith.constant dense<0.000000e+00> : vector<8xf32>
    %103 = vector.multi_reduction <add>, %102, %cst_45 [1] : vector<8x8xf32> to vector<8xf32>
    %104 = vector.shape_cast %103 : vector<8xf32> to vector<8x1xf32>
    %105 = tpu.reciprocal %104 {approx = true} : vector<8x1xf32> -> vector<8x1xf32>
    %106 = vector.broadcast %105 : vector<8x1xf32> to vector<8x8xf32>
    %107 = arith.mulf %102, %106 : vector<8x8xf32>
    %108 = arith.truncf %107 : vector<8x8xf32> to vector<8x8xbf16>
    %cst_46 = arith.constant dense<0.000000e+00> : vector<8x64xf32>
    %109 = tpu.matmul %108, %92, %cst_46 {dimension_numbers = #tpu.dot_dimension_numbers<[1], [0], [0], [1], [0, 0, 1, 1], [], []>} : vector<8x8xbf16>, vector<8x64xbf16>, vector<8x64xf32> -> vector<8x64xf32>
    %110 = vector.extract_strided_slice %86 {offsets = [0, 64], sizes = [8, 64], strides = [1, 1]} : vector<8x384xf32> to vector<8x64xf32>
    %111 = arith.truncf %110 : vector<8x64xf32> to vector<8x64xbf16>
    %112 = vector.extract_strided_slice %86 {offsets = [0, 192], sizes = [8, 64], strides = [1, 1]} : vector<8x384xf32> to vector<8x64xf32>
    %113 = arith.truncf %112 : vector<8x64xf32> to vector<8x64xbf16>
    %114 = vector.extract_strided_slice %86 {offsets = [0, 320], sizes = [8, 64], strides = [1, 1]} : vector<8x384xf32> to vector<8x64xf32>
    %115 = arith.truncf %114 : vector<8x64xf32> to vector<8x64xbf16>
    %cst_47 = arith.constant dense<0.000000e+00> : vector<8x8xf32>
    %116 = tpu.matmul %111, %113, %cst_47 {dimension_numbers = #tpu.dot_dimension_numbers<[1], [1], [0], [0], [0, 0, 1, 0], [], []>} : vector<8x64xbf16>, vector<8x64xbf16>, vector<8x8xf32> -> vector<8x8xf32>
    %cst_48 = arith.constant 1.250000e-01 : f32
    %117 = vector.broadcast %cst_48 : f32 to vector<8x8xf32>
    %118 = arith.mulf %116, %117 : vector<8x8xf32>
    %cst_49 = arith.constant -1.000000e+30 : f32
    %119 = vector.broadcast %cst_49 : f32 to vector<8x8xf32>
    %120 = arith.select %5, %118, %119 : vector<8x8xi1>, vector<8x8xf32>
    %cst_50 = arith.constant dense<0xFF800000> : vector<8xf32>
    %121 = vector.multi_reduction <maximumf>, %120, %cst_50 [1] : vector<8x8xf32> to vector<8xf32>
    %122 = vector.shape_cast %121 : vector<8xf32> to vector<8x1xf32>
    %123 = vector.broadcast %122 : vector<8x1xf32> to vector<8x8xf32>
    %124 = arith.subf %120, %123 : vector<8x8xf32>
    %125 = math.exp %124 : vector<8x8xf32>
    %cst_51 = arith.constant dense<0.000000e+00> : vector<8xf32>
    %126 = vector.multi_reduction <add>, %125, %cst_51 [1] : vector<8x8xf32> to vector<8xf32>
    %127 = vector.shape_cast %126 : vector<8xf32> to vector<8x1xf32>
    %128 = tpu.reciprocal %127 {approx = true} : vector<8x1xf32> -> vector<8x1xf32>
    %129 = vector.broadcast %128 : vector<8x1xf32> to vector<8x8xf32>
    %130 = arith.mulf %125, %129 : vector<8x8xf32>
    %131 = arith.truncf %130 : vector<8x8xf32> to vector<8x8xbf16>
    %cst_52 = arith.constant dense<0.000000e+00> : vector<8x64xf32>
    %132 = tpu.matmul %131, %115, %cst_52 {dimension_numbers = #tpu.dot_dimension_numbers<[1], [0], [0], [1], [0, 0, 1, 1], [], []>} : vector<8x8xbf16>, vector<8x64xbf16>, vector<8x64xf32> -> vector<8x64xf32>
    %133 = tpu.concatenate %109, %132 in 1 : vector<8x64xf32>, vector<8x64xf32> -> vector<8x128xf32>
    %134 = arith.truncf %133 : vector<8x128xf32> to vector<8x128xbf16>
    %c0_53 = arith.constant 0 : index
    %c0_54 = arith.constant 0 : index
    %c0_55 = arith.constant 0 : index
    %135 = vector.load %arg12[%c0_53, %c0_54, %c0_55] : memref<2x128x128xbf16, #tpu.memory_space<vmem>>, vector<1x128x128xbf16>
    %136 = vector.shape_cast %135 : vector<1x128x128xbf16> to vector<128x128xbf16>
    %cst_56 = arith.constant dense<0.000000e+00> : vector<8x128xf32>
    %137 = tpu.matmul %134, %136, %cst_56 {dimension_numbers = #tpu.dot_dimension_numbers<[1], [0], [0], [1], [0, 0, 1, 1], [], []>} : vector<8x128xbf16>, vector<128x128xbf16>, vector<8x128xf32> -> vector<8x128xf32>
    %c0_57 = arith.constant 0 : index
    %c0_58 = arith.constant 0 : index
    %c0_59 = arith.constant 0 : index
    %138 = vector.load %arg13[%c0_57, %c0_58, %c0_59] : memref<2x1x128xf32, #tpu.memory_space<vmem>>, vector<1x1x128xf32>
    %139 = vector.shape_cast %138 : vector<1x1x128xf32> to vector<1x128xf32>
    %140 = vector.broadcast %139 : vector<1x128xf32> to vector<8x128xf32>
    %141 = arith.addf %137, %140 : vector<8x128xf32>
    %cst_60 = arith.constant 0.000000e+00 : f32
    %142 = vector.shape_cast %2 : vector<8x1xi1> to vector<8x1xi1>
    %143 = vector.broadcast %142 : vector<8x1xi1> to vector<8x128xi1>
    %144 = vector.broadcast %cst_60 : f32 to vector<8x128xf32>
    %145 = arith.select %143, %141, %144 : vector<8x128xi1>, vector<8x128xf32>
    %146 = arith.addf %52, %145 : vector<8x128xf32>
    %c0_61 = arith.constant 0 : index
    %c0_62 = arith.constant 0 : index
    %c0_63 = arith.constant 0 : index
    %147 = vector.load %arg14[%c0_61, %c0_62, %c0_63] : memref<2x1x128xf32, #tpu.memory_space<vmem>>, vector<1x1x128xf32>
    %148 = vector.shape_cast %147 : vector<1x1x128xf32> to vector<1x128xf32>
    %c0_64 = arith.constant 0 : index
    %c0_65 = arith.constant 0 : index
    %c0_66 = arith.constant 0 : index
    %149 = vector.load %arg15[%c0_64, %c0_65, %c0_66] : memref<2x1x128xf32, #tpu.memory_space<vmem>>, vector<1x1x128xf32>
    %150 = vector.shape_cast %149 : vector<1x1x128xf32> to vector<1x128xf32>
    %cst_67 = arith.constant dense<0.000000e+00> : vector<8xf32>
    %151 = vector.multi_reduction <add>, %146, %cst_67 [1] : vector<8x128xf32> to vector<8xf32>
    %152 = vector.shape_cast %151 : vector<8xf32> to vector<8x1xf32>
    %cst_68 = arith.constant 1.280000e+02 : f32
    %153 = vector.broadcast %cst_68 : f32 to vector<8x1xf32>
    %154 = arith.divf %152, %153 : vector<8x1xf32>
    %155 = vector.broadcast %154 : vector<8x1xf32> to vector<8x128xf32>
    %156 = arith.subf %146, %155 : vector<8x128xf32>
    %157 = arith.mulf %156, %156 : vector<8x128xf32>
    %cst_69 = arith.constant dense<0.000000e+00> : vector<8xf32>
    %158 = vector.multi_reduction <add>, %157, %cst_69 [1] : vector<8x128xf32> to vector<8xf32>
    %159 = vector.shape_cast %158 : vector<8xf32> to vector<8x1xf32>
    %cst_70 = arith.constant 1.280000e+02 : f32
    %160 = vector.broadcast %cst_70 : f32 to vector<8x1xf32>
    %161 = arith.divf %159, %160 : vector<8x1xf32>
    %162 = vector.broadcast %154 : vector<8x1xf32> to vector<8x128xf32>
    %163 = arith.subf %146, %162 : vector<8x128xf32>
    %cst_71 = arith.constant 9.99999974E-6 : f32
    %164 = vector.broadcast %cst_71 : f32 to vector<8x1xf32>
    %165 = arith.addf %161, %164 : vector<8x1xf32>
    %166 = math.rsqrt %165 : vector<8x1xf32>
    %167 = vector.broadcast %166 : vector<8x1xf32> to vector<8x128xf32>
    %168 = arith.mulf %163, %167 : vector<8x128xf32>
    %169 = vector.broadcast %148 : vector<1x128xf32> to vector<8x128xf32>
    %170 = arith.mulf %168, %169 : vector<8x128xf32>
    %171 = vector.broadcast %150 : vector<1x128xf32> to vector<8x128xf32>
    %172 = arith.addf %170, %171 : vector<8x128xf32>
    %173 = arith.truncf %172 : vector<8x128xf32> to vector<8x128xbf16>
    %c0_72 = arith.constant 0 : index
    %c0_73 = arith.constant 0 : index
    %c0_74 = arith.constant 0 : index
    %174 = vector.load %arg16[%c0_72, %c0_73, %c0_74] : memref<2x128x512xbf16, #tpu.memory_space<vmem>>, vector<1x128x512xbf16>
    %175 = vector.shape_cast %174 : vector<1x128x512xbf16> to vector<128x512xbf16>
    %cst_75 = arith.constant dense<0.000000e+00> : vector<8x512xf32>
    %176 = tpu.matmul %173, %175, %cst_75 {dimension_numbers = #tpu.dot_dimension_numbers<[1], [0], [0], [1], [0, 0, 1, 1], [], []>} : vector<8x128xbf16>, vector<128x512xbf16>, vector<8x512xf32> -> vector<8x512xf32>
    %c0_76 = arith.constant 0 : index
    %c0_77 = arith.constant 0 : index
    %c0_78 = arith.constant 0 : index
    %177 = vector.load %arg17[%c0_76, %c0_77, %c0_78] : memref<2x1x512xf32, #tpu.memory_space<vmem>>, vector<1x1x512xf32>
    %178 = vector.shape_cast %177 : vector<1x1x512xf32> to vector<1x512xf32>
    %179 = vector.broadcast %178 : vector<1x512xf32> to vector<8x512xf32>
    %180 = arith.addf %176, %179 : vector<8x512xf32>
    %181 = arith.mulf %180, %180 : vector<8x512xf32>
    %182 = arith.mulf %180, %181 : vector<8x512xf32>
    %cst_79 = arith.constant 4.471500e-02 : f32
    %183 = vector.broadcast %cst_79 : f32 to vector<8x512xf32>
    %184 = arith.mulf %183, %182 : vector<8x512xf32>
    %185 = arith.addf %180, %184 : vector<8x512xf32>
    %cst_80 = arith.constant 0.797884583 : f32
    %186 = vector.broadcast %cst_80 : f32 to vector<8x512xf32>
    %187 = arith.mulf %186, %185 : vector<8x512xf32>
    %188 = math.tanh %187 : vector<8x512xf32>
    %cst_81 = arith.constant 1.000000e+00 : f32
    %189 = vector.broadcast %cst_81 : f32 to vector<8x512xf32>
    %190 = arith.addf %189, %188 : vector<8x512xf32>
    %cst_82 = arith.constant 5.000000e-01 : f32
    %191 = vector.broadcast %cst_82 : f32 to vector<8x512xf32>
    %192 = arith.mulf %191, %190 : vector<8x512xf32>
    %193 = arith.mulf %180, %192 : vector<8x512xf32>
    %194 = arith.truncf %193 : vector<8x512xf32> to vector<8x512xbf16>
    %c0_83 = arith.constant 0 : index
    %c0_84 = arith.constant 0 : index
    %c0_85 = arith.constant 0 : index
    %195 = vector.load %arg18[%c0_83, %c0_84, %c0_85] : memref<2x512x128xbf16, #tpu.memory_space<vmem>>, vector<1x512x128xbf16>
    %196 = vector.shape_cast %195 : vector<1x512x128xbf16> to vector<512x128xbf16>
    %cst_86 = arith.constant dense<0.000000e+00> : vector<8x128xf32>
    %197 = tpu.matmul %194, %196, %cst_86 {dimension_numbers = #tpu.dot_dimension_numbers<[1], [0], [0], [1], [0, 0, 1, 1], [], []>} : vector<8x512xbf16>, vector<512x128xbf16>, vector<8x128xf32> -> vector<8x128xf32>
    %c0_87 = arith.constant 0 : index
    %c0_88 = arith.constant 0 : index
    %c0_89 = arith.constant 0 : index
    %198 = vector.load %arg19[%c0_87, %c0_88, %c0_89] : memref<2x1x128xf32, #tpu.memory_space<vmem>>, vector<1x1x128xf32>
    %199 = vector.shape_cast %198 : vector<1x1x128xf32> to vector<1x128xf32>
    %200 = vector.broadcast %199 : vector<1x128xf32> to vector<8x128xf32>
    %201 = arith.addf %197, %200 : vector<8x128xf32>
    %cst_90 = arith.constant 0.000000e+00 : f32
    %202 = vector.shape_cast %2 : vector<8x1xi1> to vector<8x1xi1>
    %203 = vector.broadcast %202 : vector<8x1xi1> to vector<8x128xi1>
    %204 = vector.broadcast %cst_90 : f32 to vector<8x128xf32>
    %205 = arith.select %203, %201, %204 : vector<8x128xi1>, vector<8x128xf32>
    %206 = arith.addf %146, %205 : vector<8x128xf32>
    %c1 = arith.constant 1 : index
    %c0_91 = arith.constant 0 : index
    %c0_92 = arith.constant 0 : index
    %207 = vector.load %arg8[%c1, %c0_91, %c0_92] : memref<2x1x128xf32, #tpu.memory_space<vmem>>, vector<1x1x128xf32>
    %208 = vector.shape_cast %207 : vector<1x1x128xf32> to vector<1x128xf32>
    %c1_93 = arith.constant 1 : index
    %c0_94 = arith.constant 0 : index
    %c0_95 = arith.constant 0 : index
    %209 = vector.load %arg9[%c1_93, %c0_94, %c0_95] : memref<2x1x128xf32, #tpu.memory_space<vmem>>, vector<1x1x128xf32>
    %210 = vector.shape_cast %209 : vector<1x1x128xf32> to vector<1x128xf32>
    %cst_96 = arith.constant dense<0.000000e+00> : vector<8xf32>
    %211 = vector.multi_reduction <add>, %206, %cst_96 [1] : vector<8x128xf32> to vector<8xf32>
    %212 = vector.shape_cast %211 : vector<8xf32> to vector<8x1xf32>
    %cst_97 = arith.constant 1.280000e+02 : f32
    %213 = vector.broadcast %cst_97 : f32 to vector<8x1xf32>
    %214 = arith.divf %212, %213 : vector<8x1xf32>
    %215 = vector.broadcast %214 : vector<8x1xf32> to vector<8x128xf32>
    %216 = arith.subf %206, %215 : vector<8x128xf32>
    %217 = arith.mulf %216, %216 : vector<8x128xf32>
    %cst_98 = arith.constant dense<0.000000e+00> : vector<8xf32>
    %218 = vector.multi_reduction <add>, %217, %cst_98 [1] : vector<8x128xf32> to vector<8xf32>
    %219 = vector.shape_cast %218 : vector<8xf32> to vector<8x1xf32>
    %cst_99 = arith.constant 1.280000e+02 : f32
    %220 = vector.broadcast %cst_99 : f32 to vector<8x1xf32>
    %221 = arith.divf %219, %220 : vector<8x1xf32>
    %222 = vector.broadcast %214 : vector<8x1xf32> to vector<8x128xf32>
    %223 = arith.subf %206, %222 : vector<8x128xf32>
    %cst_100 = arith.constant 9.99999974E-6 : f32
    %224 = vector.broadcast %cst_100 : f32 to vector<8x1xf32>
    %225 = arith.addf %221, %224 : vector<8x1xf32>
    %226 = math.rsqrt %225 : vector<8x1xf32>
    %227 = vector.broadcast %226 : vector<8x1xf32> to vector<8x128xf32>
    %228 = arith.mulf %223, %227 : vector<8x128xf32>
    %229 = vector.broadcast %208 : vector<1x128xf32> to vector<8x128xf32>
    %230 = arith.mulf %228, %229 : vector<8x128xf32>
    %231 = vector.broadcast %210 : vector<1x128xf32> to vector<8x128xf32>
    %232 = arith.addf %230, %231 : vector<8x128xf32>
    %233 = arith.truncf %232 : vector<8x128xf32> to vector<8x128xbf16>
    %c1_101 = arith.constant 1 : index
    %c0_102 = arith.constant 0 : index
    %c0_103 = arith.constant 0 : index
    %234 = vector.load %arg10[%c1_101, %c0_102, %c0_103] : memref<2x128x384xbf16, #tpu.memory_space<vmem>>, vector<1x128x384xbf16>
    %235 = vector.shape_cast %234 : vector<1x128x384xbf16> to vector<128x384xbf16>
    %cst_104 = arith.constant dense<0.000000e+00> : vector<8x384xf32>
    %236 = tpu.matmul %233, %235, %cst_104 {dimension_numbers = #tpu.dot_dimension_numbers<[1], [0], [0], [1], [0, 0, 1, 1], [], []>} : vector<8x128xbf16>, vector<128x384xbf16>, vector<8x384xf32> -> vector<8x384xf32>
    %c1_105 = arith.constant 1 : index
    %c0_106 = arith.constant 0 : index
    %c0_107 = arith.constant 0 : index
    %237 = vector.load %arg11[%c1_105, %c0_106, %c0_107] : memref<2x1x384xf32, #tpu.memory_space<vmem>>, vector<1x1x384xf32>
    %238 = vector.shape_cast %237 : vector<1x1x384xf32> to vector<1x384xf32>
    %239 = vector.broadcast %238 : vector<1x384xf32> to vector<8x384xf32>
    %240 = arith.addf %236, %239 : vector<8x384xf32>
    %241 = vector.extract_strided_slice %240 {offsets = [0, 0], sizes = [8, 64], strides = [1, 1]} : vector<8x384xf32> to vector<8x64xf32>
    %242 = arith.truncf %241 : vector<8x64xf32> to vector<8x64xbf16>
    %243 = vector.extract_strided_slice %240 {offsets = [0, 128], sizes = [8, 64], strides = [1, 1]} : vector<8x384xf32> to vector<8x64xf32>
    %244 = arith.truncf %243 : vector<8x64xf32> to vector<8x64xbf16>
    %245 = vector.extract_strided_slice %240 {offsets = [0, 256], sizes = [8, 64], strides = [1, 1]} : vector<8x384xf32> to vector<8x64xf32>
    %246 = arith.truncf %245 : vector<8x64xf32> to vector<8x64xbf16>
    %cst_108 = arith.constant dense<0.000000e+00> : vector<8x8xf32>
    %247 = tpu.matmul %242, %244, %cst_108 {dimension_numbers = #tpu.dot_dimension_numbers<[1], [1], [0], [0], [0, 0, 1, 0], [], []>} : vector<8x64xbf16>, vector<8x64xbf16>, vector<8x8xf32> -> vector<8x8xf32>
    %cst_109 = arith.constant 1.250000e-01 : f32
    %248 = vector.broadcast %cst_109 : f32 to vector<8x8xf32>
    %249 = arith.mulf %247, %248 : vector<8x8xf32>
    %cst_110 = arith.constant -1.000000e+30 : f32
    %250 = vector.broadcast %cst_110 : f32 to vector<8x8xf32>
    %251 = arith.select %5, %249, %250 : vector<8x8xi1>, vector<8x8xf32>
    %cst_111 = arith.constant dense<0xFF800000> : vector<8xf32>
    %252 = vector.multi_reduction <maximumf>, %251, %cst_111 [1] : vector<8x8xf32> to vector<8xf32>
    %253 = vector.shape_cast %252 : vector<8xf32> to vector<8x1xf32>
    %254 = vector.broadcast %253 : vector<8x1xf32> to vector<8x8xf32>
    %255 = arith.subf %251, %254 : vector<8x8xf32>
    %256 = math.exp %255 : vector<8x8xf32>
    %cst_112 = arith.constant dense<0.000000e+00> : vector<8xf32>
    %257 = vector.multi_reduction <add>, %256, %cst_112 [1] : vector<8x8xf32> to vector<8xf32>
    %258 = vector.shape_cast %257 : vector<8xf32> to vector<8x1xf32>
    %259 = tpu.reciprocal %258 {approx = true} : vector<8x1xf32> -> vector<8x1xf32>
    %260 = vector.broadcast %259 : vector<8x1xf32> to vector<8x8xf32>
    %261 = arith.mulf %256, %260 : vector<8x8xf32>
    %262 = arith.truncf %261 : vector<8x8xf32> to vector<8x8xbf16>
    %cst_113 = arith.constant dense<0.000000e+00> : vector<8x64xf32>
    %263 = tpu.matmul %262, %246, %cst_113 {dimension_numbers = #tpu.dot_dimension_numbers<[1], [0], [0], [1], [0, 0, 1, 1], [], []>} : vector<8x8xbf16>, vector<8x64xbf16>, vector<8x64xf32> -> vector<8x64xf32>
    %264 = vector.extract_strided_slice %240 {offsets = [0, 64], sizes = [8, 64], strides = [1, 1]} : vector<8x384xf32> to vector<8x64xf32>
    %265 = arith.truncf %264 : vector<8x64xf32> to vector<8x64xbf16>
    %266 = vector.extract_strided_slice %240 {offsets = [0, 192], sizes = [8, 64], strides = [1, 1]} : vector<8x384xf32> to vector<8x64xf32>
    %267 = arith.truncf %266 : vector<8x64xf32> to vector<8x64xbf16>
    %268 = vector.extract_strided_slice %240 {offsets = [0, 320], sizes = [8, 64], strides = [1, 1]} : vector<8x384xf32> to vector<8x64xf32>
    %269 = arith.truncf %268 : vector<8x64xf32> to vector<8x64xbf16>
    %cst_114 = arith.constant dense<0.000000e+00> : vector<8x8xf32>
    %270 = tpu.matmul %265, %267, %cst_114 {dimension_numbers = #tpu.dot_dimension_numbers<[1], [1], [0], [0], [0, 0, 1, 0], [], []>} : vector<8x64xbf16>, vector<8x64xbf16>, vector<8x8xf32> -> vector<8x8xf32>
    %cst_115 = arith.constant 1.250000e-01 : f32
    %271 = vector.broadcast %cst_115 : f32 to vector<8x8xf32>
    %272 = arith.mulf %270, %271 : vector<8x8xf32>
    %cst_116 = arith.constant -1.000000e+30 : f32
    %273 = vector.broadcast %cst_116 : f32 to vector<8x8xf32>
    %274 = arith.select %5, %272, %273 : vector<8x8xi1>, vector<8x8xf32>
    %cst_117 = arith.constant dense<0xFF800000> : vector<8xf32>
    %275 = vector.multi_reduction <maximumf>, %274, %cst_117 [1] : vector<8x8xf32> to vector<8xf32>
    %276 = vector.shape_cast %275 : vector<8xf32> to vector<8x1xf32>
    %277 = vector.broadcast %276 : vector<8x1xf32> to vector<8x8xf32>
    %278 = arith.subf %274, %277 : vector<8x8xf32>
    %279 = math.exp %278 : vector<8x8xf32>
    %cst_118 = arith.constant dense<0.000000e+00> : vector<8xf32>
    %280 = vector.multi_reduction <add>, %279, %cst_118 [1] : vector<8x8xf32> to vector<8xf32>
    %281 = vector.shape_cast %280 : vector<8xf32> to vector<8x1xf32>
    %282 = tpu.reciprocal %281 {approx = true} : vector<8x1xf32> -> vector<8x1xf32>
    %283 = vector.broadcast %282 : vector<8x1xf32> to vector<8x8xf32>
    %284 = arith.mulf %279, %283 : vector<8x8xf32>
    %285 = arith.truncf %284 : vector<8x8xf32> to vector<8x8xbf16>
    %cst_119 = arith.constant dense<0.000000e+00> : vector<8x64xf32>
    %286 = tpu.matmul %285, %269, %cst_119 {dimension_numbers = #tpu.dot_dimension_numbers<[1], [0], [0], [1], [0, 0, 1, 1], [], []>} : vector<8x8xbf16>, vector<8x64xbf16>, vector<8x64xf32> -> vector<8x64xf32>
    %287 = tpu.concatenate %263, %286 in 1 : vector<8x64xf32>, vector<8x64xf32> -> vector<8x128xf32>
    %288 = arith.truncf %287 : vector<8x128xf32> to vector<8x128xbf16>
    %c1_120 = arith.constant 1 : index
    %c0_121 = arith.constant 0 : index
    %c0_122 = arith.constant 0 : index
    %289 = vector.load %arg12[%c1_120, %c0_121, %c0_122] : memref<2x128x128xbf16, #tpu.memory_space<vmem>>, vector<1x128x128xbf16>
    %290 = vector.shape_cast %289 : vector<1x128x128xbf16> to vector<128x128xbf16>
    %cst_123 = arith.constant dense<0.000000e+00> : vector<8x128xf32>
    %291 = tpu.matmul %288, %290, %cst_123 {dimension_numbers = #tpu.dot_dimension_numbers<[1], [0], [0], [1], [0, 0, 1, 1], [], []>} : vector<8x128xbf16>, vector<128x128xbf16>, vector<8x128xf32> -> vector<8x128xf32>
    %c1_124 = arith.constant 1 : index
    %c0_125 = arith.constant 0 : index
    %c0_126 = arith.constant 0 : index
    %292 = vector.load %arg13[%c1_124, %c0_125, %c0_126] : memref<2x1x128xf32, #tpu.memory_space<vmem>>, vector<1x1x128xf32>
    %293 = vector.shape_cast %292 : vector<1x1x128xf32> to vector<1x128xf32>
    %294 = vector.broadcast %293 : vector<1x128xf32> to vector<8x128xf32>
    %295 = arith.addf %291, %294 : vector<8x128xf32>
    %cst_127 = arith.constant 0.000000e+00 : f32
    %296 = vector.shape_cast %2 : vector<8x1xi1> to vector<8x1xi1>
    %297 = vector.broadcast %296 : vector<8x1xi1> to vector<8x128xi1>
    %298 = vector.broadcast %cst_127 : f32 to vector<8x128xf32>
    %299 = arith.select %297, %295, %298 : vector<8x128xi1>, vector<8x128xf32>
    %300 = arith.addf %206, %299 : vector<8x128xf32>
    %c1_128 = arith.constant 1 : index
    %c0_129 = arith.constant 0 : index
    %c0_130 = arith.constant 0 : index
    %301 = vector.load %arg14[%c1_128, %c0_129, %c0_130] : memref<2x1x128xf32, #tpu.memory_space<vmem>>, vector<1x1x128xf32>
    %302 = vector.shape_cast %301 : vector<1x1x128xf32> to vector<1x128xf32>
    %c1_131 = arith.constant 1 : index
    %c0_132 = arith.constant 0 : index
    %c0_133 = arith.constant 0 : index
    %303 = vector.load %arg15[%c1_131, %c0_132, %c0_133] : memref<2x1x128xf32, #tpu.memory_space<vmem>>, vector<1x1x128xf32>
    %304 = vector.shape_cast %303 : vector<1x1x128xf32> to vector<1x128xf32>
    %cst_134 = arith.constant dense<0.000000e+00> : vector<8xf32>
    %305 = vector.multi_reduction <add>, %300, %cst_134 [1] : vector<8x128xf32> to vector<8xf32>
    %306 = vector.shape_cast %305 : vector<8xf32> to vector<8x1xf32>
    %cst_135 = arith.constant 1.280000e+02 : f32
    %307 = vector.broadcast %cst_135 : f32 to vector<8x1xf32>
    %308 = arith.divf %306, %307 : vector<8x1xf32>
    %309 = vector.broadcast %308 : vector<8x1xf32> to vector<8x128xf32>
    %310 = arith.subf %300, %309 : vector<8x128xf32>
    %311 = arith.mulf %310, %310 : vector<8x128xf32>
    %cst_136 = arith.constant dense<0.000000e+00> : vector<8xf32>
    %312 = vector.multi_reduction <add>, %311, %cst_136 [1] : vector<8x128xf32> to vector<8xf32>
    %313 = vector.shape_cast %312 : vector<8xf32> to vector<8x1xf32>
    %cst_137 = arith.constant 1.280000e+02 : f32
    %314 = vector.broadcast %cst_137 : f32 to vector<8x1xf32>
    %315 = arith.divf %313, %314 : vector<8x1xf32>
    %316 = vector.broadcast %308 : vector<8x1xf32> to vector<8x128xf32>
    %317 = arith.subf %300, %316 : vector<8x128xf32>
    %cst_138 = arith.constant 9.99999974E-6 : f32
    %318 = vector.broadcast %cst_138 : f32 to vector<8x1xf32>
    %319 = arith.addf %315, %318 : vector<8x1xf32>
    %320 = math.rsqrt %319 : vector<8x1xf32>
    %321 = vector.broadcast %320 : vector<8x1xf32> to vector<8x128xf32>
    %322 = arith.mulf %317, %321 : vector<8x128xf32>
    %323 = vector.broadcast %302 : vector<1x128xf32> to vector<8x128xf32>
    %324 = arith.mulf %322, %323 : vector<8x128xf32>
    %325 = vector.broadcast %304 : vector<1x128xf32> to vector<8x128xf32>
    %326 = arith.addf %324, %325 : vector<8x128xf32>
    %327 = arith.truncf %326 : vector<8x128xf32> to vector<8x128xbf16>
    %c1_139 = arith.constant 1 : index
    %c0_140 = arith.constant 0 : index
    %c0_141 = arith.constant 0 : index
    %328 = vector.load %arg16[%c1_139, %c0_140, %c0_141] : memref<2x128x512xbf16, #tpu.memory_space<vmem>>, vector<1x128x512xbf16>
    %329 = vector.shape_cast %328 : vector<1x128x512xbf16> to vector<128x512xbf16>
    %cst_142 = arith.constant dense<0.000000e+00> : vector<8x512xf32>
    %330 = tpu.matmul %327, %329, %cst_142 {dimension_numbers = #tpu.dot_dimension_numbers<[1], [0], [0], [1], [0, 0, 1, 1], [], []>} : vector<8x128xbf16>, vector<128x512xbf16>, vector<8x512xf32> -> vector<8x512xf32>
    %c1_143 = arith.constant 1 : index
    %c0_144 = arith.constant 0 : index
    %c0_145 = arith.constant 0 : index
    %331 = vector.load %arg17[%c1_143, %c0_144, %c0_145] : memref<2x1x512xf32, #tpu.memory_space<vmem>>, vector<1x1x512xf32>
    %332 = vector.shape_cast %331 : vector<1x1x512xf32> to vector<1x512xf32>
    %333 = vector.broadcast %332 : vector<1x512xf32> to vector<8x512xf32>
    %334 = arith.addf %330, %333 : vector<8x512xf32>
    %335 = arith.mulf %334, %334 : vector<8x512xf32>
    %336 = arith.mulf %334, %335 : vector<8x512xf32>
    %cst_146 = arith.constant 4.471500e-02 : f32
    %337 = vector.broadcast %cst_146 : f32 to vector<8x512xf32>
    %338 = arith.mulf %337, %336 : vector<8x512xf32>
    %339 = arith.addf %334, %338 : vector<8x512xf32>
    %cst_147 = arith.constant 0.797884583 : f32
    %340 = vector.broadcast %cst_147 : f32 to vector<8x512xf32>
    %341 = arith.mulf %340, %339 : vector<8x512xf32>
    %342 = math.tanh %341 : vector<8x512xf32>
    %cst_148 = arith.constant 1.000000e+00 : f32
    %343 = vector.broadcast %cst_148 : f32 to vector<8x512xf32>
    %344 = arith.addf %343, %342 : vector<8x512xf32>
    %cst_149 = arith.constant 5.000000e-01 : f32
    %345 = vector.broadcast %cst_149 : f32 to vector<8x512xf32>
    %346 = arith.mulf %345, %344 : vector<8x512xf32>
    %347 = arith.mulf %334, %346 : vector<8x512xf32>
    %348 = arith.truncf %347 : vector<8x512xf32> to vector<8x512xbf16>
    %c1_150 = arith.constant 1 : index
    %c0_151 = arith.constant 0 : index
    %c0_152 = arith.constant 0 : index
    %349 = vector.load %arg18[%c1_150, %c0_151, %c0_152] : memref<2x512x128xbf16, #tpu.memory_space<vmem>>, vector<1x512x128xbf16>
    %350 = vector.shape_cast %349 : vector<1x512x128xbf16> to vector<512x128xbf16>
    %cst_153 = arith.constant dense<0.000000e+00> : vector<8x128xf32>
    %351 = tpu.matmul %348, %350, %cst_153 {dimension_numbers = #tpu.dot_dimension_numbers<[1], [0], [0], [1], [0, 0, 1, 1], [], []>} : vector<8x512xbf16>, vector<512x128xbf16>, vector<8x128xf32> -> vector<8x128xf32>
    %c1_154 = arith.constant 1 : index
    %c0_155 = arith.constant 0 : index
    %c0_156 = arith.constant 0 : index
    %352 = vector.load %arg19[%c1_154, %c0_155, %c0_156] : memref<2x1x128xf32, #tpu.memory_space<vmem>>, vector<1x1x128xf32>
    %353 = vector.shape_cast %352 : vector<1x1x128xf32> to vector<1x128xf32>
    %354 = vector.broadcast %353 : vector<1x128xf32> to vector<8x128xf32>
    %355 = arith.addf %351, %354 : vector<8x128xf32>
    %cst_157 = arith.constant 0.000000e+00 : f32
    %356 = vector.shape_cast %2 : vector<8x1xi1> to vector<8x1xi1>
    %357 = vector.broadcast %356 : vector<8x1xi1> to vector<8x128xi1>
    %358 = vector.broadcast %cst_157 : f32 to vector<8x128xf32>
    %359 = arith.select %357, %355, %358 : vector<8x128xi1>, vector<8x128xf32>
    %360 = arith.addf %300, %359 : vector<8x128xf32>
    %361 = vector.extract_strided_slice %360 {offsets = [0, 0], sizes = [1, 128], strides = [1, 1]} : vector<8x128xf32> to vector<1x128xf32>
    %c0_158 = arith.constant 0 : index
    %c0_159 = arith.constant 0 : index
    %362 = vector.load %arg20[%c0_158, %c0_159] : memref<1x128xf32, #tpu.memory_space<vmem>>, vector<1x128xf32>
    %c0_160 = arith.constant 0 : index
    %c0_161 = arith.constant 0 : index
    %363 = vector.load %arg21[%c0_160, %c0_161] : memref<1x128xf32, #tpu.memory_space<vmem>>, vector<1x128xf32>
    %cst_162 = arith.constant dense<0.000000e+00> : vector<1xf32>
    %364 = vector.multi_reduction <add>, %361, %cst_162 [1] : vector<1x128xf32> to vector<1xf32>
    %365 = vector.shape_cast %364 : vector<1xf32> to vector<1x1xf32>
    %cst_163 = arith.constant 1.280000e+02 : f32
    %366 = vector.broadcast %cst_163 : f32 to vector<1x1xf32>
    %367 = arith.divf %365, %366 : vector<1x1xf32>
    %368 = vector.broadcast %367 : vector<1x1xf32> to vector<1x128xf32>
    %369 = arith.subf %361, %368 : vector<1x128xf32>
    %370 = arith.mulf %369, %369 : vector<1x128xf32>
    %cst_164 = arith.constant dense<0.000000e+00> : vector<1xf32>
    %371 = vector.multi_reduction <add>, %370, %cst_164 [1] : vector<1x128xf32> to vector<1xf32>
    %372 = vector.shape_cast %371 : vector<1xf32> to vector<1x1xf32>
    %cst_165 = arith.constant 1.280000e+02 : f32
    %373 = vector.broadcast %cst_165 : f32 to vector<1x1xf32>
    %374 = arith.divf %372, %373 : vector<1x1xf32>
    %375 = vector.broadcast %367 : vector<1x1xf32> to vector<1x128xf32>
    %376 = arith.subf %361, %375 : vector<1x128xf32>
    %cst_166 = arith.constant 9.99999974E-6 : f32
    %377 = vector.broadcast %cst_166 : f32 to vector<1x1xf32>
    %378 = arith.addf %374, %377 : vector<1x1xf32>
    %379 = math.rsqrt %378 : vector<1x1xf32>
    %380 = vector.broadcast %379 : vector<1x1xf32> to vector<1x128xf32>
    %381 = arith.mulf %376, %380 : vector<1x128xf32>
    %382 = arith.mulf %381, %362 : vector<1x128xf32>
    %383 = arith.addf %382, %363 : vector<1x128xf32>
    %384 = arith.truncf %383 : vector<1x128xf32> to vector<1x128xbf16>
    %c0_167 = arith.constant 0 : index
    %c0_168 = arith.constant 0 : index
    %385 = vector.load %arg22[%c0_167, %c0_168] : memref<128x128xbf16, #tpu.memory_space<vmem>>, vector<128x128xbf16>
    %cst_169 = arith.constant dense<0.000000e+00> : vector<1x128xf32>
    %386 = tpu.matmul %384, %385, %cst_169 {dimension_numbers = #tpu.dot_dimension_numbers<[1], [0], [0], [1], [0, 0, 1, 1], [], []>} : vector<1x128xbf16>, vector<128x128xbf16>, vector<1x128xf32> -> vector<1x128xf32>
    %c0_170 = arith.constant 0 : index
    %c0_171 = arith.constant 0 : index
    %387 = vector.load %arg23[%c0_170, %c0_171] : memref<1x128xf32, #tpu.memory_space<vmem>>, vector<1x128xf32>
    %388 = arith.addf %386, %387 : vector<1x128xf32>
    %c0_172 = arith.constant 0 : index
    %c0_173 = arith.constant 0 : index
    %c0_174 = arith.constant 0 : index
    %389 = vector.load %arg24[%c0_172, %c0_173, %c0_174] : memref<1x1x128xf32, #tpu.memory_space<vmem>>, vector<1x1x128xf32>
    %390 = vector.shape_cast %389 : vector<1x1x128xf32> to vector<1x128xf32>
    %391 = vector.shape_cast %388 : vector<1x128xf32> to vector<1x1x128xf32>
    tpu.vector_store %arg24[%c0_172, %c0_173, %c0_174], %391 {strides = array<i32>} : memref<1x1x128xf32, #tpu.memory_space<vmem>>, vector<1x1x128xf32>,
    return
  }
  func.func @transform_0(%arg0: i32) -> (i32, i32, i32) {
    %c0_i32 = arith.constant 0 : i32
    %c0_i32_0 = arith.constant 0 : i32
    %c0_i32_1 = arith.constant 0 : i32
    return %arg0, %c0_i32, %c0_i32_0 : i32, i32, i32
  }
  func.func @transform_1(%arg0: i32) -> (i32, i32) {
    %c0_i32 = arith.constant 0 : i32
    %c0_i32_0 = arith.constant 0 : i32
    %c0_i32_1 = arith.constant 0 : i32
    return %c0_i32, %c0_i32_0 : i32, i32
  }
  func.func @transform_2(%arg0: i32) -> (i32, i32) {
    %c0_i32 = arith.constant 0 : i32
    %c0_i32_0 = arith.constant 0 : i32
    %c0_i32_1 = arith.constant 0 : i32
    return %c0_i32, %c0_i32_0 : i32, i32
  }
  func.func @transform_3(%arg0: i32) -> (i32, i32) {
    %c0_i32 = arith.constant 0 : i32
    %c0_i32_0 = arith.constant 0 : i32
    %c0_i32_1 = arith.constant 0 : i32
    return %c0_i32, %c0_i32_0 : i32, i32
  }
  func.func @transform_4(%arg0: i32) -> (i32, i32) {
    %c0_i32 = arith.constant 0 : i32
    %c0_i32_0 = arith.constant 0 : i32
    %c0_i32_1 = arith.constant 0 : i32
    return %c0_i32, %c0_i32_0 : i32, i32
  }
  func.func @transform_5(%arg0: i32) -> (i32, i32) {
    %c0_i32 = arith.constant 0 : i32
    %c0_i32_0 = arith.constant 0 : i32
    %c0_i32_1 = arith.constant 0 : i32
    return %c0_i32, %c0_i32_0 : i32, i32
  }
  func.func @transform_6(%arg0: i32) -> (i32, i32) {
    %c0_i32 = arith.constant 0 : i32
    %c0_i32_0 = arith.constant 0 : i32
    %c0_i32_1 = arith.constant 0 : i32
    return %c0_i32, %c0_i32_0 : i32, i32
  }
  func.func @transform_7(%arg0: i32) -> (i32, i32, i32) {
    %c0_i32 = arith.constant 0 : i32
    %c0_i32_0 = arith.constant 0 : i32
    %c0_i32_1 = arith.constant 0 : i32
    %c0_i32_2 = arith.constant 0 : i32
    return %c0_i32, %c0_i32_0, %c0_i32_1 : i32, i32, i32
  }
  func.func @transform_8(%arg0: i32) -> (i32, i32, i32) {
    %c0_i32 = arith.constant 0 : i32
    %c0_i32_0 = arith.constant 0 : i32
    %c0_i32_1 = arith.constant 0 : i32
    %c0_i32_2 = arith.constant 0 : i32
    return %c0_i32, %c0_i32_0, %c0_i32_1 : i32, i32, i32
  }
  func.func @transform_9(%arg0: i32) -> (i32, i32, i32) {
    %c0_i32 = arith.constant 0 : i32
    %c0_i32_0 = arith.constant 0 : i32
    %c0_i32_1 = arith.constant 0 : i32
    %c0_i32_2 = arith.constant 0 : i32
    return %c0_i32, %c0_i32_0, %c0_i32_1 : i32, i32, i32
  }
  func.func @transform_10(%arg0: i32) -> (i32, i32, i32) {
    %c0_i32 = arith.constant 0 : i32
    %c0_i32_0 = arith.constant 0 : i32
    %c0_i32_1 = arith.constant 0 : i32
    %c0_i32_2 = arith.constant 0 : i32
    return %c0_i32, %c0_i32_0, %c0_i32_1 : i32, i32, i32
  }
  func.func @transform_11(%arg0: i32) -> (i32, i32, i32) {
    %c0_i32 = arith.constant 0 : i32
    %c0_i32_0 = arith.constant 0 : i32
    %c0_i32_1 = arith.constant 0 : i32
    %c0_i32_2 = arith.constant 0 : i32
    return %c0_i32, %c0_i32_0, %c0_i32_1 : i32, i32, i32
  }
  func.func @transform_12(%arg0: i32) -> (i32, i32, i32) {
    %c0_i32 = arith.constant 0 : i32
    %c0_i32_0 = arith.constant 0 : i32
    %c0_i32_1 = arith.constant 0 : i32
    %c0_i32_2 = arith.constant 0 : i32
    return %c0_i32, %c0_i32_0, %c0_i32_1 : i32, i32, i32
  }
  func.func @transform_13(%arg0: i32) -> (i32, i32, i32) {
    %c0_i32 = arith.constant 0 : i32
    %c0_i32_0 = arith.constant 0 : i32
    %c0_i32_1 = arith.constant 0 : i32
    %c0_i32_2 = arith.constant 0 : i32
    return %c0_i32, %c0_i32_0, %c0_i32_1 : i32, i32, i32
  }
  func.func @transform_14(%arg0: i32) -> (i32, i32, i32) {
    %c0_i32 = arith.constant 0 : i32
    %c0_i32_0 = arith.constant 0 : i32
    %c0_i32_1 = arith.constant 0 : i32
    %c0_i32_2 = arith.constant 0 : i32
    return %c0_i32, %c0_i32_0, %c0_i32_1 : i32, i32, i32
  }
  func.func @transform_15(%arg0: i32) -> (i32, i32, i32) {
    %c0_i32 = arith.constant 0 : i32
    %c0_i32_0 = arith.constant 0 : i32
    %c0_i32_1 = arith.constant 0 : i32
    %c0_i32_2 = arith.constant 0 : i32
    return %c0_i32, %c0_i32_0, %c0_i32_1 : i32, i32, i32
  }
  func.func @transform_16(%arg0: i32) -> (i32, i32, i32) {
    %c0_i32 = arith.constant 0 : i32
    %c0_i32_0 = arith.constant 0 : i32
    %c0_i32_1 = arith.constant 0 : i32
    %c0_i32_2 = arith.constant 0 : i32
    return %c0_i32, %c0_i32_0, %c0_i32_1 : i32, i32, i32
  }
  func.func @transform_17(%arg0: i32) -> (i32, i32, i32) {
    %c0_i32 = arith.constant 0 : i32
    %c0_i32_0 = arith.constant 0 : i32
    %c0_i32_1 = arith.constant 0 : i32
    %c0_i32_2 = arith.constant 0 : i32
    return %c0_i32, %c0_i32_0, %c0_i32_1 : i32, i32, i32
  }
  func.func @transform_18(%arg0: i32) -> (i32, i32, i32) {
    %c0_i32 = arith.constant 0 : i32
    %c0_i32_0 = arith.constant 0 : i32
    %c0_i32_1 = arith.constant 0 : i32
    %c0_i32_2 = arith.constant 0 : i32
    return %c0_i32, %c0_i32_0, %c0_i32_1 : i32, i32, i32
  }
  func.func @transform_19(%arg0: i32) -> (i32, i32) {
    %c0_i32 = arith.constant 0 : i32
    %c0_i32_0 = arith.constant 0 : i32
    %c0_i32_1 = arith.constant 0 : i32
    return %c0_i32, %c0_i32_0 : i32, i32
  }
  func.func @transform_20(%arg0: i32) -> (i32, i32) {
    %c0_i32 = arith.constant 0 : i32
    %c0_i32_0 = arith.constant 0 : i32
    %c0_i32_1 = arith.constant 0 : i32
    return %c0_i32, %c0_i32_0 : i32, i32
  }
  func.func @transform_21(%arg0: i32) -> (i32, i32) {
    %c0_i32 = arith.constant 0 : i32
    %c0_i32_0 = arith.constant 0 : i32
    %c0_i32_1 = arith.constant 0 : i32
    return %c0_i32, %c0_i32_0 : i32, i32
  }
  func.func @transform_22(%arg0: i32) -> (i32, i32) {
    %c0_i32 = arith.constant 0 : i32
    %c0_i32_0 = arith.constant 0 : i32
    %c0_i32_1 = arith.constant 0 : i32
    return %c0_i32, %c0_i32_0 : i32, i32
  }
  func.func @transform_23(%arg0: i32) -> (i32, i32, i32) {
    %c0_i32 = arith.constant 0 : i32
    %c0_i32_0 = arith.constant 0 : i32
    %c0_i32_1 = arith.constant 0 : i32
    return %arg0, %c0_i32, %c0_i32_0 : i32, i32, i32
  }
}

</mosaic_0001>

<bundles_post_ra>
// kernel: vit_conch_forward.1
= control target key start
LH: loop header
LB: loop body
LE: loop exit
PB: predicated region body
PF: predicated region fallthrough
CT: control target
= control target key end

     0   :  { %s6654_s0 = inlined_call_operand.vmem [shape: bf16[2,8,768], index: 0, kind: input, shape index: {}]   ;;  %s6655_s1 = inlined_call_operand.hbm [shape: bf16[768,128], index: 1, kind: input, shape index: {}]   ;;  %s6656_s2 = inlined_call_operand.vmem [shape: f32[1,128], index: 2, kind: input, shape index: {}]   ;;  %s6657_s3 = inlined_call_operand.hbm [shape: f32[1,128], index: 3, kind: input, shape index: {}]   ;;  %s6658_s4 = inlined_call_operand.vmem [shape: f32[8,128], index: 4, kind: input, shape index: {}]   ;;  %s6659_s5 = inlined_call_operand.vmem [shape: f32[1,128], index: 5, kind: input, shape index: {}]   ;;  %s6660_s6 = inlined_call_operand.vmem [shape: f32[1,128], index: 6, kind: input, shape index: {}]   ;;  %s6661_s7 = inlined_call_operand.vmem [shape: f32[2,1,128], index: 7, kind: input, shape index: {}]   ;;  %s6662_s8 = inlined_call_operand.vmem [shape: f32[2,1,128], index: 8, kind: input, shape index: {}]   ;;  %s6663_s9 = inlined_call_operand.hbm [shape: bf16[2,128,384], index: 9, kind: input, shape index: {}]   ;;  %s6664_s10 = inlined_call_operand.vmem [shape: f32[2,1,384], index: 10, kind: input, shape index: {}]   ;;  %s6665_s11 = inlined_call_operand.vmem [shape: bf16[2,128,128], index: 11, kind: input, shape index: {}]   ;;  %s6666_s12 = inlined_call_operand.vmem [shape: f32[2,1,128], index: 12, kind: input, shape index: {}]   ;;  %s6667_s13 = inlined_call_operand.vmem [shape: f32[2,1,128], index: 13, kind: input, shape index: {}]   ;;  %s6668_s14 = inlined_call_operand.vmem [shape: f32[2,1,128], index: 14, kind: input, shape index: {}]   ;;  %s6669_s15 = inlined_call_operand.vmem [shape: bf16[2,128,512], index: 15, kind: input, shape index: {}]   ;;  %s6670_s16 = inlined_call_operand.vmem [shape: f32[2,1,512], index: 16, kind: input, shape index: {}]   ;;  %s6671_s17 = inlined_call_operand.vmem [shape: bf16[2,512,128], index: 17, kind: input, shape index: {}]   ;;  %s6672_s18 = inlined_call_operand.vmem [shape: f32[2,1,128], index: 18, kind: input, shape index: {}]   ;;  %s6673_s19 = inlined_call_operand.vmem [shape: f32[1,128], index: 19, kind: input, shape index: {}]   ;;  %s6674_s20 = inlined_call_operand.vmem [shape: f32[1,128], index: 20, kind: input, shape index: {}]   ;;  %s6675_s21 = inlined_call_operand.vmem [shape: bf16[128,128], index: 21, kind: input, shape index: {}]   ;;  %s6676_s22 = inlined_call_operand.vmem [shape: f32[1,128], index: 22, kind: input, shape index: {}]   ;;  %s6677_s23 = inlined_call_operand.hbm [shape: f32[2,1,128], index: 23, kind: output, shape index: {}]  }
   0x1   :  { %6695 = sst [smem:[#allocation19_spill]] %s6654_s0 }
   0x2   :  { %6696 = sst [smem:[#allocation20_spill]] %s6655_s1 }
   0x3   :  { %6697 = sst [smem:[#allocation21_spill]] %s6656_s2 }
   0x4   :  { %6698 = sst [smem:[#allocation22_spill]] %s6657_s3 }
   0x5   :  { %6699 = sst [smem:[#allocation23_spill]] %s6658_s4 }
   0x6   :  { %6700 = sst [smem:[#allocation24_spill]] %s6659_s5 }
   0x7   :  { %6701 = sst [smem:[#allocation25_spill]] %s6660_s6 }
   0x8   :  { %6702 = sst [smem:[#allocation26_spill]] %s6661_s7 }
   0x9   :  { %6703 = sst [smem:[#allocation27_spill]] %s6673_s19 }
   0xa   :  { %6704 = sst [smem:[#allocation28_spill]] %s6674_s20 }
   0xb   :  { %6705 = sst [smem:[#allocation29_spill]] %s6676_s22 }
   0xc   :  { %6706 = sst [smem:[#allocation30_spill]] %s6677_s23 }
   0xd   :  { %28 = vsyncpa [#allocation3], 0 }
   0xe   :  { %29 = vsyncpa [#allocation6], 0 }
   0xf   :  { %30 = vsyncpa [#allocation4], 0 }
  0x10   :  { %32 = vsyncpa [#allocation4 + $0x1], 0  ;;  %s5740_s4 = smov 0   ;;  %s5742_s30 = smov 0  }
  0x11   :  { %s5744_s24 = smov 0   ;;  %s5746_s25 = smov 0  }
  0x12 LB: > { %6707 = sst [smem:[#allocation12_spill]] %s5594_s4  ;;  %s5761_s5 = sadd.s32 4294967295, %s5606_s25   ;;  %s5606_s25 = sphi %s5746_s25, %s6743_s25   ;;  %s5602_s24 = sphi %s5744_s24, %s6745_s24   ;;  %s5598_s30 = sphi %s5742_s30, %s6747_s30   ;;  %s5594_s4 = sphi %s5740_s4, %s6746_s4  }
  0x13   : > { %6708 = sst [smem:[#allocation13_spill]] %s5602_s24  ;;  %s4253_s1 = sadd.s32 4294967294, %s5606_s25  }
  0x14   : > { %6709 = sst [smem:[#allocation14_spill]] %s5606_s25  ;;  %s5765_s26 = sadd.s32 1, %s5606_s25  }
  0x15   : > { %6710 = sst [smem:[#allocation15_spill]] %s5765_s26  ;;  %s533_s2 = sadd.s32 1, %s5602_s24 }
  0x16   : > { %s530_s6 = ssub.s32 %s5606_s25, %s5765_s26  ;;  %p543_p0 = scmp.ne.s32.totalorder %s5602_s24, %s5598_s30 }
  0x17   : > { %p531_p1 = scmp.eq.s32.totalorder %s530_s6, 0  ;;  %p544_p2 = scmp.eq.s32.totalorder %s5761_s5, 1 }
  0x18   : > { %p549_p3 = scmp.ne.s32.totalorder %s5598_s30, %s5594_s4  ;;  %p550_p4 = scmp.eq.s32.totalorder %s4253_s1, 1 }
  0x19   : > { %s5776_s27 = scalar_select %p531_p1, %s5602_s24, %s533_s2  }
  0x1a   : > { %p5778_p5 = por %p544_p2, %p543_p0  ;;  %p5782_p6 = por %p550_p4, %p549_p3 }
  0x1b   : > { %6711 = sst [smem:[#allocation16_spill]] %s5776_s27  ;;  %p4254_p7 = scmp.ge.s32.totalorder %s5606_s25, 1 }
  0x1c   : > { %s6712_s7 = scalar_select %p5778_p5, 1, 0 }
  0x1d   : > { %s6714_s28 = scalar_select %p5782_p6, 1, 0 }
  0x1e   : > { %6713 = sst [smem:[#allocation17_spill]] %s6712_s7  ;;  %p557_p8 = scmp.lt.s32.totalorder %s5606_s25, 3 }
  0x1f   : > { %6715 = sst [smem:[#allocation18_spill]] %s6714_s28  ;;  %p6691_p9 = scmp.eq.s32.totalorder %s5761_s5, 0 }
  0x20   : > { %p5789_p10 = pnand %p4254_p7, %p557_p8  ;;  %s5608_s3 = smov [#allocation5]  }
  0x21   : > { %s586_s0 = sshll.u32 %s5608_s3, 4  ;;  %s5609_s1 = smov [#allocation2]   ;;  %s587_s0 = int_to_ptr.vmem [resolvable:$true] %s586_s0 }
  0x22   : > { %s6716_s29 = scalar_select %p5789_p10, 1, 0 }
  0x23   : > { %p5042_p11 = pneg %p5789_p10  ;;  %s569_s2 = sshll.u32 %s5609_s1, 4  ;;  %s5801_s2 = int_to_ptr.vmem [resolvable:$true] %s569_s2 }
  0x24   : > { %s5610_s27 = smov [#allocation7]   ;;  %s6718_s4 = sld [smem:[#allocation22_spill]] }
  0x25   : > { %p5797_p12 = pnand %p6691_p9, %p5042_p11  ;;  %s5803_s24 = sshll.u32 %s5610_s27, 4  ;;  %s612_s24 = int_to_ptr.vmem [resolvable:$true] %s5803_s24 }
  0x27   : > { %p5813_p0 = pneg %p5797_p12 }
  0x2a   : > { %s6719_s23 = smov %s6718_s4  ;;  %s5452_s3 = scalar_lea.hbm %s6718_s4, 16 }
  0x2b   : > { %p5453_p13 = scmp.ne.s32.totalorder %s6719_s23, %s5452_s3  ;;  %p5459_p3 = scmp.lt.u32.totalorder %s5452_s3, %s6719_s23 }
  0x2d   : > { %p5455_p1 = pnand %p5813_p0, %p5453_p13 }
  0x2f   : > { %p5456_p2 = pneg %p5455_p1 }
  0x31   : > { %p5461_p4 = pnand %p5459_p3, %p5456_p2 }
  0x33   : > { %5464 = shalt.err (!%p5461_p4)
}
  0x34   : > { %s5465_s4 = scalar_lea.vmem %s587_s0, 16  ;;  %s5472_s25 = scalar_lea.vmem %s587_s0, 32 }
  0x35   : > { %p5466_p7 = scmp.ne.s32.totalorder %s587_s0, %s5465_s4  ;;  %p5473_p9 = scmp.lt.s32.totalorder %s587_s0, %s587_s0 }
  0x36   : > { %p5474_p6 = scmp.lt.s32.totalorder %s5472_s25, %s5465_s4 }
  0x37   : > { %p5468_p8 = pnand %p5466_p7, %p5813_p0 }
  0x38   : > { %p5475_p5 = por %p5474_p6, %p5473_p9 }
  0x39   : > { %p5469_p11 = pneg %p5468_p8 }
  0x3b   : > { %p5476_p10 = pnand %p5475_p5, %p5469_p11 }
  0x3d   : > { %5479 = shalt.err (!%p5476_p10)
}
  0x3e   : > { %5048 = dma.hbm_to_vmem [thread:$0]  (!%p5797_p12), %s6719_s23, 16, %s587_s0, [#allocation6]  }
  0x3f   : > { %s6721_s3 = sld [smem:[#allocation20_spill]] }
  0x45   : > { %s5480_s27 = scalar_lea.hbm %s6721_s3, 6144 }
  0x46   : > { %p5481_p13 = scmp.ne.s32.totalorder %s6721_s3, %s5480_s27  ;;  %p5487_p5 = scmp.lt.u32.totalorder %s5480_s27, %s6721_s3 }
  0x48   : > { %p5483_p1 = pnand %p5481_p13, %p5813_p0 }
  0x4a   : > { %p5484_p6 = pneg %p5483_p1 }
  0x4c   : > { %p5489_p9 = pnand %p5487_p5, %p5484_p6 }
  0x4e   : > { %5492 = shalt.err (!%p5489_p9)
}
  0x4f   : > { %s5493_s0 = scalar_lea.vmem %s5801_s2, 6144  ;;  %p5501_p4 = scmp.lt.s32.totalorder %s5801_s2, %s5801_s2 }
  0x50   : > { %p5494_p10 = scmp.ne.s32.totalorder %s5801_s2, %s5493_s0  ;;  %p5502_p7 = scmp.lt.s32.totalorder %s5493_s0, %s5493_s0 }
  0x52   : > { %p5496_p2 = pnand %p5494_p10, %p5813_p0  ;;  %p5503_p8 = por %p5502_p7, %p5501_p4 }
  0x54   : > { %p5497_p3 = pneg %p5496_p2 }
  0x56   : > { %p5504_p11 = pnand %p5503_p8, %p5497_p3 }
  0x58   : > { %5507 = shalt.err (!%p5504_p11)
}
  0x59   : > { %s5611_s19 = smov 64   ;;  %s5612_s20 = smov 4  }
  0x5a   : > { %5045 = dma.hbm_to_vmem [thread:$0]  (!%p5797_p12), %s6721_s3, 6144, %s5801_s2, [#allocation3], %s5611_s19, %s5611_s19, %s5612_s20  }
  0x5b   : > { %s5508_s27 = scalar_lea.hbm %s6663_s9, 6144 }
  0x5c   : > { %p5509_p13 = scmp.ne.s32.totalorder %s6663_s9, %s5508_s27  ;;  %p5515_p5 = scmp.lt.u32.totalorder %s5508_s27, %s6663_s9 }
  0x5e   : > { %p5511_p1 = pnand %p5509_p13, %p5813_p0 }
  0x60   : > { %p5512_p6 = pneg %p5511_p1 }
  0x62   : > { %p5517_p9 = pnand %p5515_p5, %p5512_p6 }
  0x64   : > { %5520 = shalt.err (!%p5517_p9)
}
  0x65   : > { %s5521_s26 = scalar_lea.vmem %s612_s24, 6144  ;;  %p5529_p4 = scmp.lt.s32.totalorder %s612_s24, %s612_s24 }
  0x66   : > { %p5522_p10 = scmp.ne.s32.totalorder %s612_s24, %s5521_s26  ;;  %p5530_p7 = scmp.lt.s32.totalorder %s5521_s26, %s5521_s26 }
  0x68   : > { %p5524_p2 = pnand %p5522_p10, %p5813_p0  ;;  %p5531_p8 = por %p5530_p7, %p5529_p4 }
  0x6a   : > { %p5525_p3 = pneg %p5524_p2 }
  0x6c   : > { %p5532_p11 = pnand %p5531_p8, %p5525_p3 }
  0x6e   : > { %5535 = shalt.err (!%p5532_p11)
}
  0x6f   : > { %s5613_s2 = smov 192   ;;  %s5614_s19 = smov 12  }
  0x70   : > { %5051 = dma.hbm_to_vmem [thread:$0]  (!%p5797_p12), %s6663_s9, 6144, %s612_s24, [#allocation6], %s5613_s2, %s5613_s2, %s5614_s19  }
  0x71   : > { %p6722_p13 = scmp.ne.s32.totalorder %s6716_s29, 0 }
  0x72   : > { %p6723_p1 = scmp.eq.s32.totalorder (!%p6722_p13), %s5761_s5, 0 }
  0x73   : > { %674 = sbr.rel (%p6722_p13) target bundleno = 7139 (0x1be3), region = 112 }
  0x7a   : > { %5581 = dma.done.wait (%p6723_p1), [#allocation3], 6144   ;;  %p6724_p0 = pmov %p6723_p1 }
  0x7c   : > { %5583 = vsyncadd (%p6724_p0), [#allocation3], 4294961152  ;;  %p6725_p6 = pmov %p6724_p0 }
  0x7d   : > { %p6726_p5 = pmov %p6724_p0 }
  0x7e   : > { %5585 = dma.done.wait (%p6725_p6), [#allocation6], 6160  }
  0x7f   : > { %5587 = vsyncadd (%p6726_p5), [#allocation6], 4294961136  ;;  %v5106_v0 = vld [vmem:[#allocation2 + $0x40] sm:$0xff]   ;;  %v5110_v4 = vld [vmem:[#allocation2 + $0x48] sm:$0xff]   ;;  %p745_p12 = scmp.lt.s32.totalorder %s5761_s5, 1  ;;  %s6727_s7 = sld [smem:[#allocation19_spill]] }
  0x80   : > { %v5107_v1 = vld [vmem:[#allocation2] sm:$0xff]   ;;  %4664 = vmatprep.subr.bf16.mxu0 %v5106_v0  ;;  %v5111_v5 = vld [vmem:[#allocation2 + $0x8] sm:$0xff]   ;;  %v5114_v8 = vld [vmem:[#allocation2 + $0x50] sm:$0xff]   ;;  %s6728_s4 = sld [smem:[#allocation21_spill]]  ;;  %s6729_s26 = sld [smem:[#allocation23_spill]]  ;;  %vm5617_vm2 = vmmov 0  }
  0x81   : > { %v5108_v2 = vld [vmem:[#allocation2 + $0xc0] sm:$0xff]   ;;  %4665 = vmatpush3.bf16.msra.mxu0 %v5107_v1  ;;  %v5112_v6 = vld [vmem:[#allocation2 + $0xc8] sm:$0xff]   ;;  %v5115_v9 = vld [vmem:[#allocation2 + $0x10] sm:$0xff]   ;;  %s746_s24 = scalar_select %p745_p12, %s5761_s5, 1  ;;  %vm1627_vm3 = vcmask 523264   ;;  %vm1692_vm4 = vcmask 1043456  }
  0x82   : > { %v5109_v3 = vld [vmem:[#allocation2 + $0x80] sm:$0xff]   ;;  %4686 = vmatprep.subr.bf16.mxu1 %v5108_v2  ;;  %4666 = vmatprep.subr.bf16.mxu0 %v5110_v4  ;;  %v5113_v7 = vld [vmem:[#allocation2 + $0x88] sm:$0xff]   ;;  %v5116_v10 = vld [vmem:[#allocation2 + $0xd0] sm:$0xff]   ;;  %s6731_s1 = sld [smem:[#allocation25_spill]]  ;;  %s6732_s28 = sld [smem:[#allocation26_spill]]  ;;  %vm1676_vm6 = vcmask 64512  }
  0x83   : > { %4687 = vmatpush3.bf16.msra.mxu1 %v5109_v3  ;;  %v5117_v11 = vld [vmem:[#allocation2 + $0x90] sm:$0xff]   ;;  %v5118_v12 = vld [vmem:[#allocation2 + $0x58] sm:$0xff]   ;;  %v5122_v16 = vld [vmem:[#allocation2 + $0x60] sm:$0xff]   ;;  %s5027_s29 = smul.u32 24, %s746_s24  ;;  %s6730_s24 = sld [smem:[#allocation24_spill]]  ;;  %vm4031_vm7 = vcmask 1040384  }
  0x84   : > { %4688 = vmatprep.subr.bf16.mxu1 %v5112_v6  ;;  %v5119_v13 = vld [vmem:[#allocation2 + $0x18] sm:$0xff]   ;;  %v5123_v17 = vld [vmem:[#allocation2 + $0x20] sm:$0xff]   ;;  %v5126_v20 = vld [vmem:[#allocation2 + $0x68] sm:$0xff]   ;;  %v751_v6 = vlaneseq  ;;  %s5618_s2 = smov 64   ;;  %s6734_s25 = sld [smem:[#allocation28_spill]] }
  0x85   : > { %4667 = vmatpush3.bf16.msra.mxu0 %v5111_v5  ;;  %v5120_v14 = vld [vmem:[#allocation2 + $0xd8] sm:$0xff]   ;;  %v5124_v18 = vld [vmem:[#allocation2 + $0xe0] sm:$0xff]   ;;  %v5127_v21 = vld [vmem:[#allocation2 + $0x28] sm:$0xff]   ;;  %s5886_s22 = scalar_lea.vmem %s6727_s7, %s5027_s29  ;;  %s743_s0 = sand.u32 1, %s5598_s30  }
  0x86   : > { %4668 = vmatprep.subr.bf16.mxu0 %v5114_v8  ;;  %v5121_v15 = vld [vmem:[#allocation2 + $0x98] sm:$0xff]   ;;  %v5125_v19 = vld [vmem:[#allocation2 + $0xa0] sm:$0xff]   ;;  %v5128_v22 = vld [vmem:[#allocation2 + $0xe8] sm:$0xff]   ;;  %s6735_s23 = sld [smem:[#allocation29_spill]]  ;;  %s4661_s29 = sshll.u32 %s5761_s5, 4 }
  0x87   : > { %4689 = vmatpush3.bf16.msra.mxu1 %v5113_v7  ;;  %v5129_v23 = vld [vmem:[#allocation2 + $0xa8] sm:$0xff]   ;;  %v5130_v24 = vld [vmem:[#allocation2 + $0x70] sm:$0xff]   ;;  %v5134_v28 = vld [vmem:[#allocation2 + $0x78] sm:$0xff]   ;;  %v5895_v7 = vshrl.u32 %v751_v6, 7  ;;  %s744_s6 = scalar_lea.vmem [#allocation8], %s743_s0 }
  0x88   : > { %4690 = vmatprep.subr.bf16.mxu1 %v5116_v10  ;;  %v5131_v25 = vld [vmem:[#allocation2 + $0x30] sm:$0xff]   ;;  %v5135_v29 = vld [vmem:[#allocation2 + $0x38] sm:$0xff]   ;;  %v757_v31 = vld [vmem:[%s5886_s22] sm:$0xff] }
  0x89   : > { %4669 = vmatpush3.bf16.msra.mxu0 %v5115_v9  ;;  %v5132_v26 = vld [vmem:[#allocation2 + $0xf0] sm:$0xff]   ;;  %v5136_v30 = vld [vmem:[#allocation2 + $0xf8] sm:$0xff]   ;;  %v4265_v32 = vcombine.low %v757_v31, %v757_v31  ;;  %v4266_v33 = vcombine.high %v757_v31, %v757_v31  ;;  %v5140_v35 = vld [vmem:[#allocation2 + $0x140] sm:$0xff]   ;;  %vm1297_vm0 = vcmp.eq.s32.totalorder %v5895_v7, 0  ;;  %vm753_vm1 = vcmp.lt.s32.totalorder %v5895_v7, 5 }
  0x8a   : > { %4670 = vmatprep.subr.bf16.mxu0 %v5118_v12  ;;  %v5133_v27 = vld [vmem:[#allocation2 + $0xb0] sm:$0xff]   ;;  %v5139_v34 = vld [vmem:[#allocation2 + $0xb8] sm:$0xff]   ;;  %v758_v36 = vld [vmem:[%s5886_s22 + $0x8] sm:$0xff]  ;;  %v5901_v12 = vsub.s32 0, %v5895_v7 }
  0x8b   : > { %4691 = vmatpush3.bf16.msra.mxu1 %v5117_v11  ;;  %1204 = vmatprep.mubr.bf16.mxu0 %v4266_v33  ;;  %v4267_v37 = vcombine.low %v758_v36, %v758_v36  ;;  %v4268_v38 = vcombine.high %v758_v36, %v758_v36  ;;  %v5143_v39 = vld [vmem:[#allocation2 + $0x100] sm:$0xff]   ;;  %v5144_v40 = vld [vmem:[#allocation2 + $0x148] sm:$0xff]   ;;  %v5146_v42 = vld [vmem:[#allocation2 + $0x150] sm:$0xff]  }
  0x8c   : > { %4692 = vmatprep.subr.bf16.mxu1 %v5120_v14  ;;  %v5145_v41 = vld [vmem:[#allocation2 + $0x108] sm:$0xff]   ;;  %v5147_v43 = vld [vmem:[#allocation2 + $0x110] sm:$0xff]   ;;  %v5148_v44 = vld [vmem:[#allocation2 + $0x158] sm:$0xff]  }
  0x8d   : > { %4671 = vmatpush3.bf16.msra.mxu0 %v5119_v13  ;;  %1244 = vmatprep.mubr.bf16.mxu1 %v4268_v38  ;;  %v5149_v45 = vld [vmem:[#allocation2 + $0x118] sm:$0xff]   ;;  %v5150_v46 = vld [vmem:[#allocation2 + $0x160] sm:$0xff]   ;;  %v5152_v48 = vld [vmem:[#allocation2 + $0x168] sm:$0xff]   ;;  %v5615_v38 = vmov 0.0  }
  0x8e   : > { %4672 = vmatprep.subr.bf16.mxu0 %v5122_v16  ;;  %v5151_v47 = vld [vmem:[#allocation2 + $0x120] sm:$0xff]   ;;  %v759_v49 = vld [vmem:[%s5886_s22 + $0x10] sm:$0xff]  ;;  %v5153_v51 = vld [vmem:[#allocation2 + $0x128] sm:$0xff]  }
  0x8f   : > { %4693 = vmatpush3.bf16.msra.mxu1 %v5121_v15  ;;  %v4270_v50 = vcombine.high %v759_v49, %v759_v49  ;;  %v5154_v52 = vld [vmem:[#allocation2 + $0x170] sm:$0xff]   ;;  %v5156_v54 = vld [vmem:[#allocation2 + $0x178] sm:$0xff]   ;;  %v4269_v56 = vcombine.low %v759_v49, %v759_v49  ;;  %v4264_v58 = vld [vmem:[%s6728_s4] ss:$0 sm:$0xff]  ;;  %s4155_s4 = scalar_lea.sflag [#allocation4], %s743_s0 }
  0x90   : > { %4694 = vmatprep.subr.bf16.mxu1 %v5124_v18  ;;  %v5155_v53 = vld [vmem:[#allocation2 + $0x130] sm:$0xff]   ;;  %v5157_v55 = vld [vmem:[#allocation2 + $0x138] sm:$0xff]   ;;  %v1294_v8 = vld [vmem:[#allocation5] sm:$0x1] }
  0x91   : > { %4673 = vmatpush3.bf16.msra.mxu0 %v5123_v17  ;;  %v1295_v9 = vld [vmem:[%s6729_s26] sm:$0x1]  ;;  %v5160_v36 = vld [vmem:[#allocation7] ss:$12 sps:$4 sm:$0xff]   ;;  %v5171_v49 = vld [vmem:[#allocation7 + $0x38] ss:$12 sps:$4 sm:$0xff]  }
  0x92   : > { %4674 = vmatprep.subr.bf16.mxu0 %v5126_v20  ;;  %v1296_v11 = vadd.f32 %v1295_v9, %v1294_v8  ;;  %v1292_v16 = vld [vmem:[%s6729_s26] sm:$0xff] }
  0x93   : > { %4695 = vmatpush3.bf16.msra.mxu1 %v5125_v19  ;;  %v4321_v8 = vld [vmem:[%s6732_s28] ss:$0 sm:$0xff] }
  0x94   : > { %4696 = vmatprep.subr.bf16.mxu1 %v5128_v22  ;;  %v1304_v19 = vrot.slane %v1296_v11, %v5901_v12 }
  0x95   : > { %4675 = vmatpush3.bf16.msra.mxu0 %v5127_v21 }
  0x96   : > { %4676 = vmatprep.subr.bf16.mxu0 %v5130_v24 }
  0x97   : > { %4697 = vmatpush3.bf16.msra.mxu1 %v5129_v23 }
  0x98   : > { %4698 = vmatprep.subr.bf16.mxu1 %v5132_v26 }
  0x99   : > { %4677 = vmatpush3.bf16.msra.mxu0 %v5131_v25 }
  0x9a   : > { %4678 = vmatprep.subr.bf16.mxu0 %v5134_v28 }
  0x9b   : > { %4699 = vmatpush3.bf16.msra.mxu1 %v5133_v27 }
  0x9c   : > { %4700 = vmatprep.subr.bf16.mxu1 %v5136_v30  ;;  %v4319_v30 = vld [vmem:[%s6730_s24] ss:$0 sm:$0xff]  ;;  %s6736_s24 = sld [smem:[#allocation17_spill]] }
  0x9d   : > { %4679 = vmatpush3.bf16.msra.mxu0 %v5135_v29 }
  0x9e   : > { %4708 = vmatprep.subr.bf16.mxu0 %v5140_v35 }
  0x9f   : > { %4701 = vmatpush3.bf16.msra.mxu1 %v5139_v34 }
  0xa0   : > { %1205 = vmatmul.mubr.bf16.vlgmr.msra.gmra.mrb[0].mxu0 %v4265_v32  ;;  %v4320_v32 = vld [vmem:[%s6731_s1] ss:$0 sm:$0xff]  ;;  %s4167_s1 = sshll.u32 %s744_s6, 4  ;;  %s6614_s1 = int_to_ptr.vmem [resolvable:$true] %s4167_s1 }
  0xa1   : > { %4709 = vmatpush3.bf16.msra.mxu0 %v5143_v39  ;;  %1284 = vmatprep.mubr.bf16.mxu0 %v4270_v50  ;;  %v5163_v39 = vld [vmem:[#allocation7 + $0x8] ss:$12 sps:$4 sm:$0xff]   ;;  %v5174_v50 = vld [vmem:[#allocation7 + $0x4c] ss:$12 sps:$4 sm:$0xff]   ;;  %s5536_s5 = scalar_lea.vmem %s6614_s1, 16 }
  0xa2   : > { %1245 = vmatmul.mubr.bf16.vlgmr.msra.gmra.mrb[0].mxu1 %v4267_v37  ;;  %4710 = vmatprep.subr.bf16.mxu0 %v5144_v40  ;;  %v5162_v37 = vld [vmem:[#allocation7 + $0x4] ss:$12 sps:$4 sm:$0xff]   ;;  %v5166_v40 = vld [vmem:[#allocation7 + $0x1c] ss:$12 sps:$4 sm:$0xff]   ;;  %p5537_p9 = scmp.ne.s32.totalorder %s6614_s1, %s5536_s5  ;;  %p6738_p10 = scmp.ne.s32.totalorder %s6736_s24, 0 }
  0xa3   : > { %1543 = vmatprep.subr.bf16.mxu1 %v5162_v37 }
  0xa4   : > { %1544 = vmatpush1.bf16.msra.mxu1 %v5160_v36  ;;  %p5538_p2 = pnand %p5537_p9, %p6738_p10 }
  0xa5   : > { %4711 = vmatpush3.bf16.msra.mxu0 %v5145_v41  ;;  %v5164_v41 = vld [vmem:[#allocation7 + $0x18] ss:$12 sps:$4 sm:$0xff]   ;;  %1545 = vmatprep.subr.bf16.mxu1 %v5166_v40 }
  0xa6   : > { %4712 = vmatprep.subr.bf16.mxu0 %v5146_v42  ;;  %v5167_v42 = vld [vmem:[#allocation7 + $0x20] ss:$12 sps:$4 sm:$0xff]   ;;  %p5539_p3 = pneg %p5538_p2 }
  0xa8   : > { %1546 = vmatpush1.bf16.msra.mxu1 %v5164_v41 }
  0xa9   : > { %4713 = vmatpush3.bf16.msra.mxu0 %v5147_v43  ;;  %v5170_v43 = vld [vmem:[#allocation7 + $0x34] ss:$12 sps:$4 sm:$0xff]  }
  0xaa   : > { %4714 = vmatprep.subr.bf16.mxu0 %v5148_v44  ;;  %v5168_v44 = vld [vmem:[#allocation7 + $0x30] ss:$12 sps:$4 sm:$0xff]   ;;  %1547 = vmatprep.subr.bf16.mxu1 %v5170_v43 }
  0xac   : > { %1548 = vmatpush1.bf16.msra.mxu1 %v5168_v44 }
  0xad   : > { %4715 = vmatpush3.bf16.msra.mxu0 %v5149_v45  ;;  %1549 = vmatprep.subr.bf16.mxu1 %v5174_v50 }
  0xae   : > { %4716 = vmatprep.subr.bf16.mxu0 %v5150_v46 }
  0xb1   : > { %4717 = vmatpush3.bf16.msra.mxu0 %v5151_v47 }
  0xb2   : > { %4718 = vmatprep.subr.bf16.mxu0 %v5152_v48 }
  0xb5   : > { %4719 = vmatpush3.bf16.msra.mxu0 %v5153_v51  ;;  %v5172_v51 = vld [vmem:[#allocation7 + $0x48] ss:$12 sps:$4 sm:$0xff]  }
  0xb6   : > { %4720 = vmatprep.subr.bf16.mxu0 %v5154_v52  ;;  %v5175_v52 = vld [vmem:[#allocation7 + $0x50] ss:$12 sps:$4 sm:$0xff]   ;;  %1550 = vmatpush1.bf16.msra.mxu1 %v5172_v51 }
  0xb9   : > { %4721 = vmatpush3.bf16.msra.mxu0 %v5155_v53  ;;  %v5176_v53 = vld [vmem:[#allocation7 + $0x60] ss:$12 sps:$4 sm:$0xff]  }
  0xba   : > { %4722 = vmatprep.subr.bf16.mxu0 %v5156_v54  ;;  %v5178_v54 = vld [vmem:[#allocation7 + $0x64] ss:$12 sps:$4 sm:$0xff]  }
  0xbb   : > { %1551 = vmatprep.subr.bf16.mxu1 %v5178_v54 }
  0xbc   : > { %1552 = vmatpush1.bf16.msra.mxu1 %v5176_v53 }
  0xbd   : > { %4723 = vmatpush3.bf16.msra.mxu0 %v5157_v55  ;;  %v5179_v55 = vld [vmem:[#allocation7 + $0x68] ss:$12 sps:$4 sm:$0xff]  }
  0xbe   : > { %4879 = vmatprep.subr.bf16.mxu0 %v5615_v38 }
  0xc0   : > { %1285 = vmatmul.mubr.bf16.vlgmr.msra.gmra.mrb[4].mxu0 %v4269_v56  ;;  %v5182_v56 = vld [vmem:[#allocation7 + $0x7c] ss:$12 sps:$4 sm:$0xff]  }
  0xc1   : > { %4880 = vmatpush3.bf16.msra.mxu0 %v5163_v39  ;;  %1553 = vmatprep.subr.bf16.mxu1 %v5182_v56  ;;  %v5964_v39 = vand.u32 127, %v751_v6 }
  0xc2   : > { %4881 = vmatprep.subr.bf16.mxu0 %v5615_v38  ;;  %4895 = vmatprep.mubr.msk.bf16.mxu0 %vm5617_vm2, %v5615_v38 }
  0xc3   : > { %vm756_vm5 = vcmp.lt.s32.totalorder %v5964_v39, 5 }
  0xc5   : > { %4882 = vmatpush3.bf16.msra.mxu0 %v5167_v42 }
  0xc6   : > { %4883 = vmatprep.subr.bf16.mxu0 %v5615_v38 }
  0xc9   : > { %4884 = vmatpush3.bf16.msra.mxu0 %v5171_v49 }
  0xca   : > { %4885 = vmatprep.subr.bf16.mxu0 %v5615_v38 }
  0xcd   : > { %4886 = vmatpush3.bf16.msra.mxu0 %v5175_v52 }
  0xce   : > { %4887 = vmatprep.subr.bf16.mxu0 %v5615_v38 }
  0xd1   : > { %4888 = vmatpush3.bf16.msra.mxu0 %v5179_v55 }
  0xd2   : > { %4889 = vmatprep.subr.bf16.mxu0 %v5615_v38 }
 0x173   : > { %v4680_v57 = vpop.f32.mrb[0].mxu0 }
 0x174   : > { %v4681_v59 = vpop.f32.mrb[1].mxu0 }
 0x175   : > { %v4682_v60 = vadd.f32 %v4681_v59, %v4680_v57  ;;  %v4683_v61 = vpop.f32.mrb[2].mxu0  ;;  %v4702_v62 = vpop.f32.mrb[0].mxu1  ;;  %v5180_v57 = vld [vmem:[#allocation7 + $0x78] ss:$12 sps:$4 sm:$0xff]   ;;  %v5186_v59 = vld [vmem:[#allocation7 + $0x94] ss:$12 sps:$4 sm:$0xff]  }
 0x176   : > { %v4684_v63 = vpop.f32.mrb[3].mxu0  ;;  %v4703_v0 = vpop.f32.mrb[1].mxu1  ;;  %1554 = vmatpush1.bf16.msra.mxu1 %v5180_v57  ;;  %v5184_v61 = vld [vmem:[#allocation7 + $0x90] ss:$12 sps:$4 sm:$0xff]  }
 0x177   : > { %v1207_v1 = vadd.f32 %v4682_v60, %v4264_v58  ;;  %v4704_v2 = vadd.f32 %v4703_v0, %v4702_v62  ;;  %v4705_v3 = vpop.f32.mrb[2].mxu1  ;;  %v5183_v58 = vld [vmem:[#allocation7 + $0x80] ss:$12 sps:$4 sm:$0xff]   ;;  %v5616_v60 = vmov 0   ;;  %v5187_v62 = vld [vmem:[#allocation7 + $0x98] ss:$12 sps:$4 sm:$0xff]   ;;  %1555 = vmatprep.subr.bf16.mxu1 %v5186_v59 }
 0x178   : > { %v4706_v4 = vpop.f32.mrb[3].mxu1  ;;  %1575 = vmatprep.mubr.bf16.mxu1 %v5616_v60  ;;  %4890 = vmatpush3.bf16.msra.mxu0 %v5183_v58  ;;  %v5190_v63 = vld [vmem:[#allocation7 + $0xac] ss:$12 sps:$4 sm:$0xff]   ;;  %v5188_v0 = vld [vmem:[#allocation7 + $0xa8] ss:$12 sps:$4 sm:$0xff]  }
 0x179   : > { %v1247_v5 = vadd.f32 %v4704_v2, %v1207_v1  ;;  %4891 = vmatprep.subr.bf16.mxu0 %v5615_v38  ;;  %v5191_v1 = vld [vmem:[#allocation7 + $0xb0] ss:$12 sps:$4 sm:$0xff]  }
 0x17a   : > { %1556 = vmatpush1.bf16.msra.mxu1 %v5184_v61 }
 0x17b   : > { %1557 = vmatprep.subr.bf16.mxu1 %v5190_v63 }
 0x17c   : > { %4892 = vmatpush3.bf16.msra.mxu0 %v5187_v62 }
 0x17d   : > { %4893 = vmatprep.subr.bf16.mxu0 %v5615_v38 }
 0x17e   : > { %1558 = vmatpush1.bf16.msra.mxu1 %v5188_v0 }
 0x17f   : > { %4899 = vmatprep.subr.bf16.mxu1 %v5615_v38 }
 0x180   : > { %4894 = vmatpush3.bf16.msra.mxu0 %v5191_v1 }
 0x181   : > { %4923 = vmatprep.subr.bf16.mxu0 %v5615_v38 }
 0x193   : > { %v4724_v10 = vpop.f32.mrb[4].mxu0 }
 0x194   : > { %v4725_v13 = vpop.f32.mrb[5].mxu0 }
 0x195   : > { %v4726_v14 = vadd.f32 %v4725_v13, %v4724_v10  ;;  %v4727_v15 = vpop.f32.mrb[6].mxu0  ;;  %v4322_v10 = vld [vmem:[%s6662_s8] ss:$0 sm:$0xff] }
 0x196   : > { %v4728_v17 = vpop.f32.mrb[7].mxu0  ;;  %v5945_v15 = vsub.s32 1, %v5895_v7 }
 0x197   : > { %v1287_v18 = vadd.f32 %v4726_v14, %v1247_v5  ;;  %v5951_v17 = vsub.s32 2, %v5895_v7 }
 0x199   : > { %v1293_v20 = vadd.f32 %v1292_v16, %v1287_v18  ;;  %v1398_v16 = vld [vmem:[%s6664_s10] sm:$0x7] }
 0x19a   : > { %v1407_v18 = vrot.slane %v1398_v16, %v5945_v15 }
 0x19b   : > { %v1306_v21 = vsel %vm1297_vm0, %v1304_v19, %v1293_v20 }
 0x19c   : > { %1309 = vadd.xlane.f32.xlu0 %v1306_v21 }
 0x229   : > { %v1310_v22 = vpop.xlane.xlu0 %1309 }
 0x22a   : > { %v1312_v23 = vmul.f32 0.0078125, %v1310_v22 }
 0x22c   : > { %v1313_v24 = vsub.f32 %v1306_v21, %v1312_v23  ;;  %v1411_v23 = vrot.slane %v1398_v16, %v5951_v17 }
 0x22e   : > { %v1314_v25 = vmul.f32 %v1313_v24, %v1313_v24 }
 0x230   : > { %1315 = vadd.xlane.f32.xlu0 %v1314_v25 }
 0x2bd   : > { %v1316_v26 = vpop.xlane.xlu0 %1315 }
 0x2be   : > { %v1317_v27 = vmul.f32 0.0078125, %v1316_v26 }
 0x2c0   : > { %v1318_v28 = vadd.f32 1e-05, %v1317_v27 }
 0x2c2   : > { %5408 = vrsqrt.f32 %v1318_v28 }
 0x2cc   : > { %v5409_v29 = vpop.eup %5408 }
 0x2cd   : > { %v1320_v31 = vmul.f32 %v5409_v29, %v1313_v24  ;;  %v1403_v29 = vrot.slane %v1398_v16, %v5901_v12 }
 0x2cf   : > { %v1327_v33 = vmul.f32 %v4319_v30, %v1320_v31 }
 0x2d1   : > { %v1334_v34 = vadd.f32 %v4320_v32, %v1327_v33 }
 0x2d3   : > { %v5917_v35 = vsel %vm753_vm1, %v1334_v34, 0.0 }
 0x2d4   : > { %1340 = vadd.xlane.f32.xlu1 %v5917_v35 }
 0x361   : > { %v1341_v45 = vpop.xlane.xlu1 %1340 }
 0x362   : > { %v1342_v46 = vmul.f32 0.0078125, %v1341_v45 }
 0x364   : > { %v1343_v47 = vsub.f32 %v5917_v35, %v1342_v46 }
 0x366   : > { %v1344_v48 = vmul.f32 %v1343_v47, %v1343_v47 }
 0x368   : > { %1345 = vadd.xlane.f32.xlu1 %v1344_v48 }
 0x3f5   : > { %v1346_v2 = vpop.xlane.xlu1 %1345 }
 0x3f6   : > { %v1347_v3 = vmul.f32 0.0078125, %v1346_v2 }
 0x3f8   : > { %v1348_v4 = vadd.f32 1e-05, %v1347_v3 }
 0x3fa   : > { %5410 = vrsqrt.f32 %v1348_v4 }
 0x404   : > { %v5411_v5 = vpop.eup %5410 }
 0x405   : > { %v1350_v9 = vmul.f32 %v5411_v5, %v1343_v47 }
 0x407   : > { %v1357_v11 = vmul.f32 %v4321_v8, %v1350_v9 }
 0x409   : > { %v1364_v13 = vadd.f32 %v4322_v10, %v1357_v11 }
 0x40b   : > { %v1365_v14 = vpack.c.bf16 %v1364_v13, %v1364_v13 }
 0x40d   : > { %1576 = vmatmul.mubr.bf16.vlgmr.msra.gmra.mrb[4].mxu1 %v1365_v14  ;;  %4896 = vmatmul.mubr.bf16.vlgmr.msra.gmra.mrb[8].mxu0 %v1365_v14 }
 0x40e   : > { %4901 = vmatprep.mubr.msk.bf16.mxu1 %vm5617_vm2, %v5615_v38  ;;  %4939 = vmatprep.mubr.msk.bf16.mxu0 %vm5617_vm2, %v5615_v38 }
 0x4e0   : > { %v1577_v19 = vpop.f32.mrb[4].mxu1  ;;  %v1618_v20 = vpop.f32.mrb[8].mxu0 }
 0x4e1   : > { %v1579_v21 = vpop.f32.mrb[5].mxu1  ;;  %v4897_v22 = vpop.f32.mrb[9].mxu0  ;;  %v1619_v31 = vadd.f32 %v1618_v20, %v1411_v23  ;;  %v1578_v33 = vadd.f32 %v1577_v19, %v1403_v29  ;;  %v5193_v23 = vld [vmem:[%s6665_s11 + $0x8] sm:$0xff]   ;;  %v5199_v29 = vld [vmem:[%s6665_s11 + $0x38] sm:$0xff]  }
 0x4e2   : > { %v1580_v24 = vadd.f32 %v1579_v21, %v1407_v18  ;;  %v1581_v25 = vpop.f32.mrb[6].mxu1  ;;  %v1621_v26 = vpop.f32.mrb[10].mxu0  ;;  %v5192_v22 = vld [vmem:[%s6665_s11] sm:$0xff]  }
 0x4e3   : > { %v1582_v27 = vpop.f32.mrb[7].mxu1  ;;  %v4898_v28 = vpop.f32.mrb[11].mxu0  ;;  %v1626_v34 = vpack.c.bf16 %v1619_v31, %v1619_v31  ;;  %v1624_v36 = vpack.c.bf16 %v1578_v33, %v1578_v33  ;;  %4924 = vmatpush3.bf16.msra.mxu0 %v5192_v22  ;;  %v5195_v25 = vld [vmem:[%s6665_s11 + $0x18] sm:$0xff]   ;;  %v5196_v26 = vld [vmem:[%s6665_s11 + $0x20] sm:$0xff]  }
 0x4e4   : > { %v1625_v30 = vpack.c.bf16 %v1580_v24, %v1580_v24  ;;  %4925 = vmatprep.subr.bf16.mxu0 %v5615_v38  ;;  %v5194_v24 = vld [vmem:[%s6665_s11 + $0x10] sm:$0xff]   ;;  %v5197_v27 = vld [vmem:[%s6665_s11 + $0x28] sm:$0xff]  }
 0x4e5   : > { %v1694_v37 = vsel %vm1692_vm4, %v1626_v34, 0  ;;  %v5198_v28 = vld [vmem:[%s6665_s11 + $0x30] sm:$0xff]  }
 0x4e6   : > { %v1632_v32 = vsel %vm1627_vm3, %v1625_v30, 0  ;;  %v5242_v22 = vld [vmem:[%s6669_s15 + $0xe0] ss:$16 sps:$4 sm:$0xff]  }
 0x4e7   : > { %4900 = vmatpush3.bf16.xpose.msra.mxu1 %v1632_v32  ;;  %4926 = vmatpush3.bf16.msra.mxu0 %v5193_v23  ;;  %v5245_v23 = vld [vmem:[%s6669_s15 + $0xe8] ss:$16 sps:$4 sm:$0xff]  }
 0x4e8   : > { %4905 = vmatprep.subr.bf16.mxu1 %v5615_v38  ;;  %4927 = vmatprep.subr.bf16.mxu0 %v5615_v38 }
 0x4eb   : > { %4928 = vmatpush3.bf16.msra.mxu0 %v5194_v24 }
 0x4ec   : > { %4929 = vmatprep.subr.bf16.mxu0 %v5615_v38 }
 0x4ee   : > { %4902 = vmatmul.mubr.msk.bf16.vlgmr.msra.gmra.mrb[8].mxu1 %vm1627_vm3, %v1624_v36 }
 0x4ef   : > { %4906 = vmatpush3.bf16.msra.mxu1 %v1694_v37  ;;  %4907 = vmatprep.mubr.msk.bf16.mxu1 %vm5617_vm2, %v5615_v38 }
 0x4f0   : > { %4911 = vmatprep.subr.bf16.mxu1 %v5615_v38  ;;  %4930 = vmatpush3.bf16.msra.mxu0 %v5195_v25 }
 0x4f1   : > { %4931 = vmatprep.subr.bf16.mxu0 %v5615_v38 }
 0x4f4   : > { %4932 = vmatpush3.bf16.msra.mxu0 %v5196_v26 }
 0x4f5   : > { %4933 = vmatprep.subr.bf16.mxu0 %v5615_v38 }
 0x4f8   : > { %4934 = vmatpush3.bf16.msra.mxu0 %v5197_v27 }
 0x4f9   : > { %4935 = vmatprep.subr.bf16.mxu0 %v5615_v38 }
 0x4fc   : > { %4936 = vmatpush3.bf16.msra.mxu0 %v5198_v28  ;;  %v4360_v28 = vld [vmem:[%s6667_s13] ss:$0 sm:$0xff] }
 0x4fd   : > { %4937 = vmatprep.subr.bf16.mxu0 %v5615_v38 }
 0x500   : > { %4938 = vmatpush3.bf16.msra.mxu0 %v5199_v29 }
 0x5c1   : > { %v1668_v40 = vpop.f32.mrb[8].mxu1 }
 0x5c2   : > { %v1674_v41 = vmul.f32 0.125, %v1668_v40  ;;  %v4903_v42 = vpop.f32.mrb[9].mxu1  ;;  %v4351_v40 = vld [vmem:[%s6666_s12] ss:$0 sm:$0xff] }
 0x5c3   : > { %v1671_v43 = vpop.f32.mrb[10].mxu1 }
 0x5c4   : > { %v4904_v44 = vpop.f32.mrb[11].mxu1  ;;  %v1675_v45 = vsel %vm756_vm5, %v1674_v41, -1e+30 }
 0x5c5   : > { %v1677_v46 = vsel %vm1676_vm6, %v1675_v45, -inf }
 0x5c6   : > { %1678 = vmax.xlane.f32.xlu0 %v1677_v46 }
 0x5dc   : > { %1740 = vrot.lane.b32.xlu0 %v1625_v30, %s5618_s2 }
 0x653   : > { %v1679_v47 = vpop.xlane.xlu0 %1678 }
 0x654   : > { %v1680_v6 = vsub.f32 %v1675_v45, %v1679_v47 }
 0x656   : > { %v1681_v48 = vmul.f32 1.442695, %v1680_v6  ;;  %v5200_v6 = vld [vmem:[%s6669_s15] ss:$16 sps:$4 sm:$0xff]  }
 0x657   : > { %v1741_v54 = vpop.permute.xlu0 %1740 }
 0x658   : > { %5412 = vpow2.f32 %v1681_v48  ;;  %v1746_v56 = vsel %vm1627_vm3, %v1741_v54, 0  ;;  %v5202_v48 = vld [vmem:[%s6669_s15 + $0x4] ss:$16 sps:$4 sm:$0xff]  }
 0x659   : > { %v5214_v54 = vld [vmem:[%s6669_s15 + $0x44] ss:$16 sps:$4 sm:$0xff]  }
 0x662   : > { %v5413_v49 = vpop.eup %5412 }
 0x663   : > { %v1683_v50 = vsel %vm1676_vm6, %v5413_v49, 0.0 }
 0x664   : > { %1684 = vadd.xlane.f32.xlu1 %v1683_v50  ;;  %v5205_v50 = vld [vmem:[%s6669_s15 + $0xc] ss:$16 sps:$4 sm:$0xff]  }
 0x665   : > { %2253 = vmatprep.subr.bf16.mxu0 %v5205_v50  ;;  %v5261_v50 = vld [vmem:[%s6671_s17 + $0xd8] sm:$0xff]  }
 0x675   : > { %1737 = vrot.lane.b32.xlu1 %v1624_v36, %s5618_s2 }
 0x6f1   : > { %v1685_v51 = vpop.xlane.xlu1 %1684 }
 0x6f2   : > { %5414 = vrcp.f32 %v1685_v51  ;;  %v5211_v51 = vld [vmem:[%s6669_s15 + $0x2c] ss:$16 sps:$4 sm:$0xff]  }
 0x6f5   : > { %v1738_v57 = vpop.permute.xlu1 %1737 }
 0x6fc   : > { %v5415_v52 = vpop.eup %5414 }
 0x6fd   : > { %v1687_v53 = vmul.f32 %v5415_v52, %v5413_v49  ;;  %v5203_v49 = vld [vmem:[%s6669_s15 + $0x8] ss:$16 sps:$4 sm:$0xff]   ;;  %v5206_v52 = vld [vmem:[%s6669_s15 + $0x20] ss:$16 sps:$4 sm:$0xff]  }
 0x6ff   : > { %v1688_v55 = vpack.c.bf16 %v1687_v53, %v1687_v53  ;;  %v5209_v53 = vld [vmem:[%s6669_s15 + $0x28] ss:$16 sps:$4 sm:$0xff]  }
 0x701   : > { %4908 = vmatmul.mubr.msk.bf16.vlgmr.msra.gmra.mrb[12].mxu1 %vm1676_vm6, %v1688_v55  ;;  %v5217_v55 = vld [vmem:[%s6669_s15 + $0x4c] ss:$16 sps:$4 sm:$0xff]  }
 0x702   : > { %4912 = vmatpush3.bf16.xpose.msra.mxu1 %v1746_v56  ;;  %4913 = vmatprep.mubr.msk.bf16.mxu1 %vm5617_vm2, %v5615_v38  ;;  %v5212_v56 = vld [vmem:[%s6669_s15 + $0x40] ss:$16 sps:$4 sm:$0xff]  }
 0x703   : > { %4917 = vmatprep.subr.bf16.mxu1 %v5615_v38 }
 0x709   : > { %4914 = vmatmul.mubr.msk.bf16.vlgmr.msra.gmra.mrb[16].mxu1 %vm1627_vm3, %v1738_v57  ;;  %v5215_v57 = vld [vmem:[%s6669_s15 + $0x48] ss:$16 sps:$4 sm:$0xff]  }
 0x70a   : > { %4919 = vmatprep.mubr.msk.bf16.mxu1 %vm5617_vm2, %v5615_v38 }
 0x7d4   : > { %v1730_v58 = vpop.f32.mrb[12].mxu1 }
 0x7d5   : > { %v4909_v59 = vpop.f32.mrb[13].mxu1 }
 0x7d6   : > { %v1733_v61 = vpop.f32.mrb[14].mxu1 }
 0x7d7   : > { %v4910_v62 = vpop.f32.mrb[15].mxu1 }
 0x7dc   : > { %v1782_v63 = vpop.f32.mrb[16].mxu1 }
 0x7dd   : > { %v1788_v0 = vmul.f32 0.125, %v1782_v63  ;;  %v4915_v1 = vpop.f32.mrb[17].mxu1  ;;  %v5220_v63 = vld [vmem:[%s6669_s15 + $0x64] ss:$16 sps:$4 sm:$0xff]  }
 0x7de   : > { %v1785_v2 = vpop.f32.mrb[18].mxu1  ;;  %v5218_v1 = vld [vmem:[%s6669_s15 + $0x60] ss:$16 sps:$4 sm:$0xff]  }
 0x7df   : > { %v4916_v3 = vpop.f32.mrb[19].mxu1  ;;  %v1789_v4 = vsel %vm756_vm5, %v1788_v0, -1e+30  ;;  %v5223_v0 = vld [vmem:[%s6669_s15 + $0x6c] ss:$16 sps:$4 sm:$0xff]  }
 0x7e0   : > { %v1790_v5 = vsel %vm1676_vm6, %v1789_v4, -inf  ;;  %v5221_v2 = vld [vmem:[%s6669_s15 + $0x68] ss:$16 sps:$4 sm:$0xff]   ;;  %v5226_v3 = vld [vmem:[%s6669_s15 + $0x84] ss:$16 sps:$4 sm:$0xff]  }
 0x7e1   : > { %1791 = vmax.xlane.f32.xlu1 %v1790_v5  ;;  %v5227_v5 = vld [vmem:[%s6669_s15 + $0x88] ss:$16 sps:$4 sm:$0xff]  }
 0x86e   : > { %v1792_v8 = vpop.xlane.xlu1 %1791 }
 0x86f   : > { %v1793_v9 = vsub.f32 %v1789_v4, %v1792_v8  ;;  %v5224_v4 = vld [vmem:[%s6669_s15 + $0x80] ss:$16 sps:$4 sm:$0xff]   ;;  %v5229_v8 = vld [vmem:[%s6669_s15 + $0x8c] ss:$16 sps:$4 sm:$0xff]  }
 0x871   : > { %v1794_v10 = vmul.f32 1.442695, %v1793_v9  ;;  %v5232_v9 = vld [vmem:[%s6669_s15 + $0xa4] ss:$16 sps:$4 sm:$0xff]  }
 0x873   : > { %5416 = vpow2.f32 %v1794_v10  ;;  %v5235_v10 = vld [vmem:[%s6669_s15 + $0xac] ss:$16 sps:$4 sm:$0xff]  }
 0x87d   : > { %v5417_v11 = vpop.eup %5416 }
 0x87e   : > { %v1796_v13 = vsel %vm1676_vm6, %v5417_v11, 0.0 }
 0x87f   : > { %1797 = vadd.xlane.f32.xlu0 %v1796_v13  ;;  %v5233_v13 = vld [vmem:[%s6669_s15 + $0xa8] ss:$16 sps:$4 sm:$0xff]  }
 0x895   : > { %1803 = vrot.lane.b32.xlu0 %v1626_v34, %s5618_s2 }
 0x90c   : > { %v1798_v14 = vpop.xlane.xlu0 %1797 }
 0x90d   : > { %5418 = vrcp.f32 %v1798_v14  ;;  %v5238_v14 = vld [vmem:[%s6669_s15 + $0xc4] ss:$16 sps:$4 sm:$0xff]  }
 0x910   : > { %v1804_v16 = vpop.permute.xlu0 %1803 }
 0x911   : > { %v1809_v18 = vsel %vm1692_vm4, %v1804_v16, 0  ;;  %v5241_v16 = vld [vmem:[%s6669_s15 + $0xcc] ss:$16 sps:$4 sm:$0xff]  }
 0x912   : > { %4918 = vmatpush3.bf16.msra.mxu1 %v1809_v18  ;;  %v5236_v18 = vld [vmem:[%s6669_s15 + $0xc0] ss:$16 sps:$4 sm:$0xff]  }
 0x913   : > { %2212 = vmatprep.subr.bf16.mxu1 %v5202_v48  ;;  %v5259_v48 = vld [vmem:[%s6671_s17 + $0x90] sm:$0xff]  }
 0x917   : > { %v5419_v19 = vpop.eup %5418 }
 0x918   : > { %v1800_v20 = vmul.f32 %v5419_v19, %v5417_v11  ;;  %v5230_v11 = vld [vmem:[%s6669_s15 + $0xa0] ss:$16 sps:$4 sm:$0xff]   ;;  %v5239_v19 = vld [vmem:[%s6669_s15 + $0xc8] ss:$16 sps:$4 sm:$0xff]  }
 0x91a   : > { %v1801_v21 = vpack.c.bf16 %v1800_v20, %v1800_v20  ;;  %v5244_v20 = vld [vmem:[%s6669_s15 + $0xe4] ss:$16 sps:$4 sm:$0xff]  }
 0x91c   : > { %4920 = vmatmul.mubr.msk.bf16.vlgmr.msra.gmra.mrb[20].mxu1 %vm1676_vm6, %v1801_v21  ;;  %v5247_v21 = vld [vmem:[%s6669_s15 + $0xec] ss:$16 sps:$4 sm:$0xff]  }
 0x91d   : > { %2244 = vmatprep.mubr.bf16.mxu1 %v5616_v60  ;;  %2213 = vmatpush1.bf16.msra.mxu1 %v5200_v6  ;;  %v5258_v6 = vld [vmem:[%s6671_s17 + $0x10] sm:$0xff]  }
 0x9ef   : > { %v1845_v30 = vpop.f32.mrb[20].mxu1 }
 0x9f0   : > { %1852 = vrot.lane.b32.xlu1 %v1845_v30, %s5618_s2  ;;  %v4921_v31 = vpop.f32.mrb[21].mxu1  ;;  %v4361_v30 = vld [vmem:[%s6668_s14] ss:$0 sm:$0xff] }
 0x9f1   : > { %v1848_v32 = vpop.f32.mrb[22].mxu1 }
 0x9f2   : > { %v4922_v33 = vpop.f32.mrb[23].mxu1 }
 0xa62   : > { %v1853_v34 = vpop.permute.xlu1 %1852 }
 0xa63   : > { %v1855_v36 = vsel %vm1627_vm3, %v1730_v58, %v1853_v34  ;;  %v5248_v34 = vld [vmem:[%s6671_s17 + $0x40] sm:$0xff]  }
 0xa64   : > { %v1856_v37 = vpack.c.bf16 %v1855_v36, %v1855_v36  ;;  %v5249_v36 = vld [vmem:[%s6671_s17 + $0xc0] sm:$0xff]  }
 0xa66   : > { %4940 = vmatmul.mubr.bf16.vlgmr.msra.gmra.mrb[12].mxu0 %v1856_v37  ;;  %v5250_v37 = vld [vmem:[%s6671_s17] sm:$0xff]  }
 0xa67   : > { %2285 = vmatprep.mubr.bf16.mxu0 %v5616_v60  ;;  %2254 = vmatpush1.bf16.msra.mxu0 %v5203_v49  ;;  %v5260_v49 = vld [vmem:[%s6671_s17 + $0x58] sm:$0xff]  }
 0xa68   : > { %2255 = vmatprep.subr.bf16.mxu0 %v5211_v51  ;;  %v5263_v51 = vld [vmem:[%s6671_s17 + $0x98] sm:$0xff]  }
 0xa6b   : > { %2256 = vmatpush1.bf16.msra.mxu0 %v5209_v53  ;;  %v5265_v53 = vld [vmem:[%s6671_s17 + $0xe0] sm:$0xff]  }
 0xa6c   : > { %2257 = vmatprep.subr.bf16.mxu0 %v5217_v55  ;;  %v5267_v55 = vld [vmem:[%s6671_s17 + $0xa0] sm:$0xff]  }
 0xa6f   : > { %2258 = vmatpush1.bf16.msra.mxu0 %v5215_v57  ;;  %v5269_v57 = vld [vmem:[%s6671_s17 + $0xe8] sm:$0xff]  }
 0xa70   : > { %2259 = vmatprep.subr.bf16.mxu0 %v5223_v0  ;;  %v5275_v0 = vld [vmem:[%s6671_s17 + $0xb0] sm:$0xff]  }
 0xa73   : > { %2260 = vmatpush1.bf16.msra.mxu0 %v5221_v2  ;;  %v5277_v2 = vld [vmem:[%s6671_s17 + $0xf8] sm:$0xff]  }
 0xa74   : > { %2261 = vmatprep.subr.bf16.mxu0 %v5229_v8  ;;  %v2046_v8 = vsub.s32 3, %v5895_v7 }
 0xa77   : > { %2262 = vmatpush1.bf16.msra.mxu0 %v5227_v5  ;;  %v2030_v5 = vld [vmem:[%s6670_s16] sm:$0xf] }
 0xa78   : > { %2263 = vmatprep.subr.bf16.mxu0 %v5235_v10  ;;  %v2043_v10 = vrot.slane %v2030_v5, %v5951_v17 }
 0xa7b   : > { %2264 = vmatpush1.bf16.msra.mxu0 %v5233_v13  ;;  %v2047_v13 = vrot.slane %v2030_v5, %v2046_v8 }
 0xa7c   : > { %2265 = vmatprep.subr.bf16.mxu0 %v5241_v16 }
 0xa7f   : > { %2266 = vmatpush1.bf16.msra.mxu0 %v5239_v19 }
 0xa80   : > { %2267 = vmatprep.subr.bf16.mxu0 %v5247_v21 }
 0xa83   : > { %2268 = vmatpush1.bf16.msra.mxu0 %v5245_v23 }
 0xa84   : > { %4778 = vmatprep.subr.bf16.mxu0 %v5249_v36 }
 0xb39   : > { %v1962_v41 = vpop.f32.mrb[12].mxu0 }
 0xb3a   : > { %v1963_v42 = vadd.f32 %v4351_v40, %v1962_v41  ;;  %v4941_v43 = vpop.f32.mrb[13].mxu0  ;;  %v5251_v40 = vld [vmem:[%s6671_s17 + $0x80] sm:$0xff]   ;;  %v5252_v41 = vld [vmem:[%s6671_s17 + $0x48] sm:$0xff]  }
 0xb3b   : > { %v1965_v44 = vpop.f32.mrb[14].mxu0  ;;  %v5254_v43 = vld [vmem:[%s6671_s17 + $0x8] sm:$0xff]  }
 0xb3c   : > { %v1968_v45 = vsel %vm753_vm1, %v1963_v42, 0.0  ;;  %v4942_v46 = vpop.f32.mrb[15].mxu0  ;;  %v5253_v42 = vld [vmem:[%s6671_s17 + $0xc8] sm:$0xff]  }
 0xb3d   : > { %v6029_v47 = vadd.f32 %v1968_v45, %v5917_v35  ;;  %v5208_v35 = vld [vmem:[%s6669_s15 + $0x24] ss:$16 sps:$4 sm:$0xff]   ;;  %v5255_v44 = vld [vmem:[%s6671_s17 + $0x88] sm:$0xff]  }
 0xb3e   : > { %2214 = vmatprep.subr.bf16.mxu1 %v5208_v35  ;;  %v5256_v45 = vld [vmem:[%s6671_s17 + $0x50] sm:$0xff]   ;;  %v5262_v35 = vld [vmem:[%s6671_s17 + $0x18] sm:$0xff]  }
 0xb3f   : > { %1972 = vadd.xlane.f32.xlu1 %v6029_v47  ;;  %2215 = vmatpush1.bf16.msra.mxu1 %v5206_v52  ;;  %v5257_v46 = vld [vmem:[%s6671_s17 + $0xd0] sm:$0xff]   ;;  %v5264_v52 = vld [vmem:[%s6671_s17 + $0x60] sm:$0xff]  }
 0xb40   : > { %2216 = vmatprep.subr.bf16.mxu1 %v5214_v54  ;;  %v5266_v54 = vld [vmem:[%s6671_s17 + $0x20] sm:$0xff]  }
 0xb43   : > { %2217 = vmatpush1.bf16.msra.mxu1 %v5212_v56  ;;  %v5268_v56 = vld [vmem:[%s6671_s17 + $0x68] sm:$0xff]  }
 0xb44   : > { %2218 = vmatprep.subr.bf16.mxu1 %v5220_v63  ;;  %v5274_v63 = vld [vmem:[%s6671_s17 + $0x30] sm:$0xff]  }
 0xb47   : > { %2219 = vmatpush1.bf16.msra.mxu1 %v5218_v1  ;;  %v5276_v1 = vld [vmem:[%s6671_s17 + $0x78] sm:$0xff]  }
 0xb48   : > { %2220 = vmatprep.subr.bf16.mxu1 %v5226_v3  ;;  %v5278_v3 = vld [vmem:[%s6671_s17 + $0x38] sm:$0xff]  }
 0xb4b   : > { %2221 = vmatpush1.bf16.msra.mxu1 %v5224_v4  ;;  %v5279_v4 = vld [vmem:[%s6671_s17 + $0xb8] sm:$0xff]  }
 0xb4c   : > { %2222 = vmatprep.subr.bf16.mxu1 %v5232_v9  ;;  %v2035_v9 = vrot.slane %v2030_v5, %v5901_v12 }
 0xb4f   : > { %2223 = vmatpush1.bf16.msra.mxu1 %v5230_v11  ;;  %v2039_v11 = vrot.slane %v2030_v5, %v5945_v15 }
 0xb50   : > { %2224 = vmatprep.subr.bf16.mxu1 %v5238_v14 }
 0xb53   : > { %2225 = vmatpush1.bf16.msra.mxu1 %v5236_v18 }
 0xb54   : > { %2226 = vmatprep.subr.bf16.mxu1 %v5244_v20 }
 0xb57   : > { %2227 = vmatpush1.bf16.msra.mxu1 %v5242_v22 }
 0xb58   : > { %4756 = vmatprep.subr.bf16.mxu1 %v5248_v34 }
 0xbcc   : > { %v1973_v58 = vpop.xlane.xlu1 %1972 }
 0xbcd   : > { %v1974_v59 = vmul.f32 0.0078125, %v1973_v58  ;;  %v5270_v58 = vld [vmem:[%s6671_s17 + $0x28] sm:$0xff]  }
 0xbcf   : > { %v1975_v61 = vsub.f32 %v6029_v47, %v1974_v59  ;;  %v5271_v59 = vld [vmem:[%s6671_s17 + $0xa8] sm:$0xff]  }
 0xbd1   : > { %v1976_v62 = vmul.f32 %v1975_v61, %v1975_v61 }
 0xbd3   : > { %1977 = vadd.xlane.f32.xlu0 %v1976_v62  ;;  %v5273_v62 = vld [vmem:[%s6671_s17 + $0xf0] sm:$0xff]  }
 0xc60   : > { %v1978_v24 = vpop.xlane.xlu0 %1977 }
 0xc61   : > { %v1979_v25 = vmul.f32 0.0078125, %v1978_v24 }
 0xc63   : > { %v1980_v26 = vadd.f32 1e-05, %v1979_v25 }
 0xc65   : > { %5420 = vrsqrt.f32 %v1980_v26 }
 0xc6f   : > { %v5421_v27 = vpop.eup %5420 }
 0xc70   : > { %v1982_v29 = vmul.f32 %v5421_v27, %v1975_v61  ;;  %v5272_v61 = vld [vmem:[%s6671_s17 + $0x70] sm:$0xff]  }
 0xc72   : > { %v1989_v31 = vmul.f32 %v4360_v28, %v1982_v29 }
 0xc74   : > { %v1996_v32 = vadd.f32 %v4361_v30, %v1989_v31 }
 0xc76   : > { %v1997_v33 = vpack.c.bf16 %v1996_v32, %v1996_v32 }
 0xc78   : > { %2245 = vmatmul.mubr.bf16.vlgmr.msra.gmra.mrb[24].mxu1 %v1997_v33  ;;  %2286 = vmatmul.mubr.bf16.vlgmr.msra.gmra.mrb[16].mxu0 %v1997_v33 }
 0xc79   : > { %4757 = vmatpush3.bf16.msra.mxu1 %v5250_v37  ;;  %4779 = vmatpush3.bf16.msra.mxu0 %v5251_v40 }
 0xc7a   : > { %4758 = vmatprep.subr.bf16.mxu1 %v5252_v41  ;;  %4780 = vmatprep.subr.bf16.mxu0 %v5253_v42 }
 0xc7d   : > { %4759 = vmatpush3.bf16.msra.mxu1 %v5254_v43  ;;  %4781 = vmatpush3.bf16.msra.mxu0 %v5255_v44 }
 0xc7e   : > { %4760 = vmatprep.subr.bf16.mxu1 %v5256_v45  ;;  %4782 = vmatprep.subr.bf16.mxu0 %v5257_v46 }
 0xc81   : > { %4761 = vmatpush3.bf16.msra.mxu1 %v5258_v6  ;;  %4783 = vmatpush3.bf16.msra.mxu0 %v5259_v48 }
 0xc82   : > { %4762 = vmatprep.subr.bf16.mxu1 %v5260_v49  ;;  %4784 = vmatprep.subr.bf16.mxu0 %v5261_v50 }
 0xc85   : > { %4763 = vmatpush3.bf16.msra.mxu1 %v5262_v35  ;;  %4785 = vmatpush3.bf16.msra.mxu0 %v5263_v51 }
 0xc86   : > { %4764 = vmatprep.subr.bf16.mxu1 %v5264_v52  ;;  %4786 = vmatprep.subr.bf16.mxu0 %v5265_v53 }
 0xc89   : > { %4765 = vmatpush3.bf16.msra.mxu1 %v5266_v54  ;;  %4787 = vmatpush3.bf16.msra.mxu0 %v5267_v55 }
 0xc8a   : > { %4766 = vmatprep.subr.bf16.mxu1 %v5268_v56  ;;  %4788 = vmatprep.subr.bf16.mxu0 %v5269_v57 }
 0xc8d   : > { %4767 = vmatpush3.bf16.msra.mxu1 %v5270_v58  ;;  %4789 = vmatpush3.bf16.msra.mxu0 %v5271_v59 }
 0xc8e   : > { %4768 = vmatprep.subr.bf16.mxu1 %v5272_v61  ;;  %4790 = vmatprep.subr.bf16.mxu0 %v5273_v62 }
 0xc91   : > { %4769 = vmatpush3.bf16.msra.mxu1 %v5274_v63  ;;  %4791 = vmatpush3.bf16.msra.mxu0 %v5275_v0 }
 0xc92   : > { %4770 = vmatprep.subr.bf16.mxu1 %v5276_v1  ;;  %4792 = vmatprep.subr.bf16.mxu0 %v5277_v2 }
 0xc95   : > { %4771 = vmatpush3.bf16.msra.mxu1 %v5278_v3  ;;  %4793 = vmatpush3.bf16.msra.mxu0 %v5279_v4 }
 0xc96   : > { %4943 = vmatprep.subr.bf16.mxu0 %v5615_v38 }
 0xd4b   : > { %v2246_v14 = vpop.f32.mrb[24].mxu1  ;;  %v2287_v16 = vpop.f32.mrb[16].mxu0 }
 0xd4c   : > { %v2247_v18 = vadd.f32 %v2246_v14, %v2035_v9  ;;  %v2288_v19 = vadd.f32 %v2287_v16, %v2043_v10  ;;  %v2248_v20 = vpop.f32.mrb[25].mxu1  ;;  %v2289_v21 = vpop.f32.mrb[17].mxu0 }
 0xd4d   : > { %v2249_v22 = vadd.f32 %v2248_v20, %v2039_v11  ;;  %v2290_v23 = vadd.f32 %v2289_v21, %v2047_v13  ;;  %v2250_v24 = vpop.f32.mrb[26].mxu1  ;;  %v2291_v25 = vpop.f32.mrb[18].mxu0  ;;  %v4394_v13 = vld [vmem:[%s6672_s18] ss:$0 sm:$0xff] }
 0xd4e   : > { %v2294_v26 = vmul.f32 %v2247_v18, %v2247_v18  ;;  %v2296_v27 = vmul.f32 %v2288_v19, %v2288_v19  ;;  %v2251_v28 = vpop.f32.mrb[27].mxu1  ;;  %v2292_v29 = vpop.f32.mrb[19].mxu0 }
 0xd4f   : > { %v2295_v30 = vmul.f32 %v2249_v22, %v2249_v22  ;;  %v2297_v31 = vmul.f32 %v2290_v23, %v2290_v23  ;;  %v5280_v28 = vld [vmem:[#allocation7 + $0xc0] ss:$12 sps:$4 sm:$0xff]   ;;  %v5282_v29 = vld [vmem:[#allocation7 + $0xc4] ss:$12 sps:$4 sm:$0xff]  }
 0xd50   : > { %v2298_v32 = vmul.f32 %v2294_v26, %v2247_v18  ;;  %v2300_v33 = vmul.f32 %v2296_v27, %v2288_v19  ;;  %2888 = vmatprep.subr.bf16.mxu1 %v5282_v29 }
 0xd51   : > { %v2299_v34 = vmul.f32 %v2295_v30, %v2249_v22  ;;  %v2301_v36 = vmul.f32 %v2297_v31, %v2290_v23  ;;  %v5283_v30 = vld [vmem:[#allocation7 + $0xc8] ss:$12 sps:$4 sm:$0xff]  }
 0xd52   : > { %v2302_v37 = vmul.f32 0.044715, %v2298_v32  ;;  %v2304_v40 = vmul.f32 0.044715, %v2300_v33  ;;  %v5286_v31 = vld [vmem:[#allocation7 + $0xdc] ss:$12 sps:$4 sm:$0xff]  }
 0xd53   : > { %v2303_v41 = vmul.f32 0.044715, %v2299_v34  ;;  %v2305_v42 = vmul.f32 0.044715, %v2301_v36  ;;  %v5287_v32 = vld [vmem:[#allocation7 + $0xe0] ss:$12 sps:$4 sm:$0xff]  }
 0xd54   : > { %v2306_v43 = vadd.f32 %v2302_v37, %v2247_v18  ;;  %v2308_v44 = vadd.f32 %v2304_v40, %v2288_v19  ;;  %v5284_v33 = vld [vmem:[#allocation7 + $0xd8] ss:$12 sps:$4 sm:$0xff]   ;;  %v5290_v34 = vld [vmem:[#allocation7 + $0xf4] ss:$12 sps:$4 sm:$0xff]   ;;  %v5288_v36 = vld [vmem:[#allocation7 + $0xf0] ss:$12 sps:$4 sm:$0xff]  }
 0xd55   : > { %v2307_v45 = vadd.f32 %v2303_v41, %v2249_v22  ;;  %v2309_v46 = vadd.f32 %v2305_v42, %v2290_v23  ;;  %v5291_v42 = vld [vmem:[#allocation7 + $0xf8] ss:$12 sps:$4 sm:$0xff]  }
 0xd56   : > { %v2310_v6 = vmul.f32 0.7978846, %v2306_v43  ;;  %v2312_v48 = vmul.f32 0.7978846, %v2308_v44  ;;  %v5294_v43 = vld [vmem:[#allocation7 + $0x10c] ss:$12 sps:$4 sm:$0xff]  }
 0xd57   : > { %v2311_v49 = vmul.f32 0.7978846, %v2307_v45  ;;  %v2313_v50 = vmul.f32 0.7978846, %v2309_v46  ;;  %v5292_v44 = vld [vmem:[#allocation7 + $0x108] ss:$12 sps:$4 sm:$0xff]  }
 0xd58   : > { %5422 = vtanh.f32 %v2310_v6  ;;  %v5295_v45 = vld [vmem:[#allocation7 + $0x110] ss:$12 sps:$4 sm:$0xff]   ;;  %v5296_v6 = vld [vmem:[#allocation7 + $0x120] ss:$12 sps:$4 sm:$0xff]  }
 0xd59   : > { %5424 = vtanh.f32 %v2312_v48  ;;  %v5298_v46 = vld [vmem:[#allocation7 + $0x124] ss:$12 sps:$4 sm:$0xff]   ;;  %v5299_v48 = vld [vmem:[#allocation7 + $0x128] ss:$12 sps:$4 sm:$0xff]  }
 0xd5a   : > { %5426 = vtanh.f32 %v2311_v49  ;;  %v5302_v49 = vld [vmem:[#allocation7 + $0x13c] ss:$12 sps:$4 sm:$0xff]  }
 0xd5b   : > { %5428 = vtanh.f32 %v2313_v50  ;;  %v5300_v50 = vld [vmem:[#allocation7 + $0x138] ss:$12 sps:$4 sm:$0xff]  }
 0xd62   : > { %v5423_v35 = vpop.eup %5422 }
 0xd63   : > { %v5425_v51 = vpop.eup %5424  ;;  %v2318_v52 = vadd.f32 1.0, %v5423_v35  ;;  %v5303_v35 = vld [vmem:[#allocation7 + $0x140] ss:$12 sps:$4 sm:$0xff]  }
 0xd64   : > { %v5427_v53 = vpop.eup %5426  ;;  %v2320_v54 = vadd.f32 1.0, %v5425_v51  ;;  %v5306_v51 = vld [vmem:[#allocation7 + $0x154] ss:$12 sps:$4 sm:$0xff]  }
 0xd65   : > { %v5429_v55 = vpop.eup %5428  ;;  %v2319_v56 = vadd.f32 1.0, %v5427_v53  ;;  %v2322_v57 = vmul.f32 0.5, %v2318_v52  ;;  %v5304_v52 = vld [vmem:[#allocation7 + $0x150] ss:$12 sps:$4 sm:$0xff]   ;;  %v5307_v53 = vld [vmem:[#allocation7 + $0x158] ss:$12 sps:$4 sm:$0xff]  }
 0xd66   : > { %v2321_v58 = vadd.f32 1.0, %v5429_v55  ;;  %v2324_v59 = vmul.f32 0.5, %v2320_v54  ;;  %v5310_v54 = vld [vmem:[#allocation7 + $0x16c] ss:$12 sps:$4 sm:$0xff]   ;;  %v5308_v55 = vld [vmem:[#allocation7 + $0x168] ss:$12 sps:$4 sm:$0xff]  }
 0xd67   : > { %v2323_v61 = vmul.f32 0.5, %v2319_v56  ;;  %v2326_v63 = vmul.f32 %v2322_v57, %v2247_v18  ;;  %v5311_v56 = vld [vmem:[#allocation7 + $0x170] ss:$12 sps:$4 sm:$0xff]  }
 0xd68   : > { %v2325_v62 = vmul.f32 0.5, %v2321_v58  ;;  %v2328_v1 = vmul.f32 %v2324_v59, %v2288_v19 }
 0xd69   : > { %v2327_v0 = vmul.f32 %v2323_v61, %v2249_v22  ;;  %v2330_v5 = vpack.c.bf16 %v2326_v63, %v2326_v63 }
 0xd6a   : > { %v2329_v2 = vmul.f32 %v2325_v62, %v2290_v23  ;;  %v2332_v9 = vpack.c.bf16 %v2328_v1, %v2328_v1  ;;  %v4429_v62 = vld [vmem:[%s6732_s28 + $0x1] ss:$0 sm:$0xff] }
 0xd6b   : > { %v2331_v3 = vpack.c.bf16 %v2327_v0, %v2327_v0  ;;  %v4430_v0 = vld [vmem:[%s6662_s8 + $0x1] ss:$0 sm:$0xff] }
 0xd6c   : > { %v2333_v4 = vpack.c.bf16 %v2329_v2, %v2329_v2 }
 0xd6d   : > { %2629 = vmatprep.mubr.bf16.mxu1 %v2331_v3 }
 0xd6e   : > { %2669 = vmatprep.mubr.bf16.mxu0 %v2333_v4  ;;  %2630 = vmatmul.mubr.bf16.vlgmr.msra.gmra.mrb[28].mxu1 %v2330_v5  ;;  %v4431_v4 = vld [vmem:[%s6664_s10 + $0x3] sm:$0x7] }
 0xd6f   : > { %2670 = vmatmul.mubr.bf16.vlgmr.msra.gmra.mrb[20].mxu0 %v2332_v9  ;;  %2920 = vmatprep.mubr.bf16.mxu1 %v5616_v60  ;;  %v2752_v5 = vrot.slane %v4431_v4, %v5945_v15 }
 0xd70   : > { %4959 = vmatprep.mubr.msk.bf16.mxu0 %vm5617_vm2, %v5615_v38  ;;  %4944 = vmatpush3.bf16.msra.mxu0 %v5283_v30 }
 0xd71   : > { %2889 = vmatpush1.bf16.msra.mxu1 %v5280_v28  ;;  %4945 = vmatprep.subr.bf16.mxu0 %v5615_v38 }
 0xd72   : > { %2890 = vmatprep.subr.bf16.mxu1 %v5286_v31 }
 0xd74   : > { %4946 = vmatpush3.bf16.msra.mxu0 %v5287_v32 }
 0xd75   : > { %2891 = vmatpush1.bf16.msra.mxu1 %v5284_v33  ;;  %4947 = vmatprep.subr.bf16.mxu0 %v5615_v38 }
 0xd76   : > { %2892 = vmatprep.subr.bf16.mxu1 %v5290_v34 }
 0xd78   : > { %4948 = vmatpush3.bf16.msra.mxu0 %v5291_v42 }
 0xd79   : > { %2893 = vmatpush1.bf16.msra.mxu1 %v5288_v36  ;;  %4949 = vmatprep.subr.bf16.mxu0 %v5615_v38 }
 0xd7a   : > { %2894 = vmatprep.subr.bf16.mxu1 %v5294_v43 }
 0xd7c   : > { %4950 = vmatpush3.bf16.msra.mxu0 %v5295_v45 }
 0xd7d   : > { %2895 = vmatpush1.bf16.msra.mxu1 %v5292_v44  ;;  %4951 = vmatprep.subr.bf16.mxu0 %v5615_v38 }
 0xd7e   : > { %2896 = vmatprep.subr.bf16.mxu1 %v5298_v46 }
 0xd80   : > { %4952 = vmatpush3.bf16.msra.mxu0 %v5299_v48 }
 0xd81   : > { %2897 = vmatpush1.bf16.msra.mxu1 %v5296_v6  ;;  %4953 = vmatprep.subr.bf16.mxu0 %v5615_v38 }
 0xd82   : > { %2898 = vmatprep.subr.bf16.mxu1 %v5302_v49 }
 0xd84   : > { %4954 = vmatpush3.bf16.msra.mxu0 %v5303_v35 }
 0xd85   : > { %2899 = vmatpush1.bf16.msra.mxu1 %v5300_v50  ;;  %4955 = vmatprep.subr.bf16.mxu0 %v5615_v38 }
 0xd86   : > { %2900 = vmatprep.subr.bf16.mxu1 %v5306_v51 }
 0xd88   : > { %4956 = vmatpush3.bf16.msra.mxu0 %v5307_v53 }
 0xd89   : > { %2901 = vmatpush1.bf16.msra.mxu1 %v5304_v52  ;;  %4957 = vmatprep.subr.bf16.mxu0 %v5615_v38 }
 0xd8a   : > { %2902 = vmatprep.subr.bf16.mxu1 %v5310_v54 }
 0xd8c   : > { %4958 = vmatpush3.bf16.msra.mxu0 %v5311_v56 }
 0xd8d   : > { %2903 = vmatpush1.bf16.msra.mxu1 %v5308_v55  ;;  %4987 = vmatprep.subr.bf16.mxu0 %v5615_v38 }
 0xd8e   : > { %4963 = vmatprep.subr.bf16.mxu1 %v5615_v38 }
 0xe41   : > { %v4772_v10 = vpop.f32.mrb[28].mxu1 }
 0xe42   : > { %v4794_v11 = vpop.f32.mrb[20].mxu0  ;;  %v4773_v14 = vpop.f32.mrb[29].mxu1 }
 0xe43   : > { %v4774_v16 = vadd.f32 %v4773_v14, %v4772_v10  ;;  %v4795_v18 = vpop.f32.mrb[21].mxu0  ;;  %v4775_v19 = vpop.f32.mrb[30].mxu1  ;;  %v2756_v14 = vrot.slane %v4431_v4, %v5951_v17 }
 0xe44   : > { %v4796_v20 = vadd.f32 %v4795_v18, %v4794_v11  ;;  %v4797_v21 = vpop.f32.mrb[22].mxu0  ;;  %v4776_v22 = vpop.f32.mrb[31].mxu1 }
 0xe45   : > { %v2632_v23 = vadd.f32 %v4774_v16, %v4394_v13  ;;  %v4798_v24 = vpop.f32.mrb[23].mxu0  ;;  %v2748_v22 = vrot.slane %v4431_v4, %v5901_v12 }
 0xe47   : > { %v2672_v25 = vadd.f32 %v4796_v20, %v2632_v23 }
 0xe49   : > { %v2677_v26 = vsel %vm753_vm1, %v2672_v25, 0.0 }
 0xe4a   : > { %v6250_v27 = vadd.f32 %v2677_v26, %v6029_v47 }
 0xe4c   : > { %2683 = vadd.xlane.f32.xlu0 %v6250_v27 }
 0xed9   : > { %v2684_v47 = vpop.xlane.xlu0 %2683 }
 0xeda   : > { %v2685_v37 = vmul.f32 0.0078125, %v2684_v47 }
 0xedc   : > { %v2686_v40 = vsub.f32 %v6250_v27, %v2685_v37 }
 0xede   : > { %v2687_v41 = vmul.f32 %v2686_v40, %v2686_v40 }
 0xee0   : > { %2688 = vadd.xlane.f32.xlu1 %v2687_v41 }
 0xf6d   : > { %v2689_v57 = vpop.xlane.xlu1 %2688 }
 0xf6e   : > { %v2690_v58 = vmul.f32 0.0078125, %v2689_v57 }
 0xf70   : > { %v2691_v59 = vadd.f32 1e-05, %v2690_v58 }
 0xf72   : > { %5430 = vrsqrt.f32 %v2691_v59 }
 0xf7c   : > { %v5431_v61 = vpop.eup %5430 }
 0xf7d   : > { %v2693_v63 = vmul.f32 %v5431_v61, %v2686_v40 }
 0xf7f   : > { %v2700_v1 = vmul.f32 %v4429_v62, %v2693_v63 }
 0xf81   : > { %v2707_v2 = vadd.f32 %v4430_v0, %v2700_v1 }
 0xf83   : > { %v2708_v3 = vpack.c.bf16 %v2707_v2, %v2707_v2 }
 0xf85   : > { %2921 = vmatmul.mubr.bf16.vlgmr.msra.gmra.mrb[32].mxu1 %v2708_v3  ;;  %4960 = vmatmul.mubr.bf16.vlgmr.msra.gmra.mrb[24].mxu0 %v2708_v3 }
 0xf86   : > { %4965 = vmatprep.mubr.msk.bf16.mxu1 %vm5617_vm2, %v5615_v38  ;;  %5003 = vmatprep.mubr.msk.bf16.mxu0 %vm5617_vm2, %v5615_v38 }
0x1058   : > { %v2922_v9 = vpop.f32.mrb[32].mxu1  ;;  %v2963_v10 = vpop.f32.mrb[24].mxu0 }
0x1059   : > { %v2924_v11 = vpop.f32.mrb[33].mxu1  ;;  %v4961_v13 = vpop.f32.mrb[25].mxu0  ;;  %v2964_v24 = vadd.f32 %v2963_v10, %v2756_v14  ;;  %v2923_v26 = vadd.f32 %v2922_v9, %v2748_v22  ;;  %v5313_v14 = vld [vmem:[%s6665_s11 + $0x48] sm:$0xff]   ;;  %v5319_v22 = vld [vmem:[%s6665_s11 + $0x78] sm:$0xff]  }
0x105a   : > { %v2925_v16 = vadd.f32 %v2924_v11, %v2752_v5  ;;  %v2926_v18 = vpop.f32.mrb[34].mxu1  ;;  %v2966_v19 = vpop.f32.mrb[26].mxu0  ;;  %v5312_v13 = vld [vmem:[%s6665_s11 + $0x40] sm:$0xff]  }
0x105b   : > { %v2927_v20 = vpop.f32.mrb[35].mxu1  ;;  %v4962_v21 = vpop.f32.mrb[27].mxu0  ;;  %v2971_v28 = vpack.c.bf16 %v2964_v24, %v2964_v24  ;;  %v2969_v29 = vpack.c.bf16 %v2923_v26, %v2923_v26  ;;  %4988 = vmatpush3.bf16.msra.mxu0 %v5312_v13  ;;  %v5315_v18 = vld [vmem:[%s6665_s11 + $0x58] sm:$0xff]   ;;  %v5316_v19 = vld [vmem:[%s6665_s11 + $0x60] sm:$0xff]  }
0x105c   : > { %v2970_v23 = vpack.c.bf16 %v2925_v16, %v2925_v16  ;;  %4989 = vmatprep.subr.bf16.mxu0 %v5615_v38  ;;  %v5314_v16 = vld [vmem:[%s6665_s11 + $0x50] sm:$0xff]   ;;  %v5317_v20 = vld [vmem:[%s6665_s11 + $0x68] sm:$0xff]  }
0x105d   : > { %v3036_v30 = vsel %vm1692_vm4, %v2971_v28, 0  ;;  %v5318_v21 = vld [vmem:[%s6665_s11 + $0x70] sm:$0xff]   ;;  %v5365_v13 = vld [vmem:[%s6669_s15 + $0x1e8] ss:$16 sps:$4 sm:$0xff]  }
0x105e   : > { %v2976_v25 = vsel %vm1627_vm3, %v2970_v23, 0 }
0x105f   : > { %4964 = vmatpush3.bf16.xpose.msra.mxu1 %v2976_v25  ;;  %4990 = vmatpush3.bf16.msra.mxu0 %v5313_v14 }
0x1060   : > { %4969 = vmatprep.subr.bf16.mxu1 %v5615_v38  ;;  %4991 = vmatprep.subr.bf16.mxu0 %v5615_v38 }
0x1063   : > { %4992 = vmatpush3.bf16.msra.mxu0 %v5314_v16 }
0x1064   : > { %4993 = vmatprep.subr.bf16.mxu0 %v5615_v38 }
0x1066   : > { %4966 = vmatmul.mubr.msk.bf16.vlgmr.msra.gmra.mrb[36].mxu1 %vm1627_vm3, %v2969_v29 }
0x1067   : > { %4970 = vmatpush3.bf16.msra.mxu1 %v3036_v30  ;;  %4971 = vmatprep.mubr.msk.bf16.mxu1 %vm5617_vm2, %v5615_v38 }
0x1068   : > { %4975 = vmatprep.subr.bf16.mxu1 %v5615_v38  ;;  %4994 = vmatpush3.bf16.msra.mxu0 %v5315_v18 }
0x1069   : > { %4995 = vmatprep.subr.bf16.mxu0 %v5615_v38 }
0x106c   : > { %4996 = vmatpush3.bf16.msra.mxu0 %v5316_v19 }
0x106d   : > { %4997 = vmatprep.subr.bf16.mxu0 %v5615_v38 }
0x1070   : > { %4998 = vmatpush3.bf16.msra.mxu0 %v5317_v20  ;;  %v4488_v20 = vld [vmem:[%s6667_s13 + $0x1] ss:$0 sm:$0xff] }
0x1071   : > { %4999 = vmatprep.subr.bf16.mxu0 %v5615_v38 }
0x1074   : > { %5000 = vmatpush3.bf16.msra.mxu0 %v5318_v21 }
0x1075   : > { %5001 = vmatprep.subr.bf16.mxu0 %v5615_v38 }
0x1078   : > { %5002 = vmatpush3.bf16.msra.mxu0 %v5319_v22  ;;  %v4489_v22 = vld [vmem:[%s6668_s14 + $0x1] ss:$0 sm:$0xff] }
0x1139   : > { %v3012_v31 = vpop.f32.mrb[36].mxu1 }
0x113a   : > { %v3018_v32 = vmul.f32 0.125, %v3012_v31  ;;  %v4967_v33 = vpop.f32.mrb[37].mxu1  ;;  %v4477_v31 = vld [vmem:[%s6666_s12 + $0x1] ss:$0 sm:$0xff] }
0x113b   : > { %v3015_v34 = vpop.f32.mrb[38].mxu1 }
0x113c   : > { %v4968_v36 = vpop.f32.mrb[39].mxu1  ;;  %v3019_v47 = vsel %vm756_vm5, %v3018_v32, -1e+30 }
0x113d   : > { %v3020_v37 = vsel %vm1676_vm6, %v3019_v47, -inf }
0x113e   : > { %3021 = vmax.xlane.f32.xlu0 %v3020_v37 }
0x1154   : > { %3082 = vrot.lane.b32.xlu0 %v2970_v23, %s5618_s2 }
0x11cb   : > { %v3022_v40 = vpop.xlane.xlu0 %3021 }
0x11cc   : > { %v3023_v41 = vsub.f32 %v3019_v47, %v3022_v40 }
0x11ce   : > { %v3024_v42 = vmul.f32 1.442695, %v3023_v41  ;;  %v5322_v41 = vld [vmem:[%s6669_s15 + $0x104] ss:$16 sps:$4 sm:$0xff]  }
0x11cf   : > { %v3083_v48 = vpop.permute.xlu0 %3082 }
0x11d0   : > { %5432 = vpow2.f32 %v3024_v42  ;;  %v3088_v50 = vsel %vm1627_vm3, %v3083_v48, 0  ;;  %v5323_v42 = vld [vmem:[%s6669_s15 + $0x108] ss:$16 sps:$4 sm:$0xff]   ;;  %v5337_v48 = vld [vmem:[%s6669_s15 + $0x14c] ss:$16 sps:$4 sm:$0xff]  }
0x11da   : > { %v5433_v43 = vpop.eup %5432 }
0x11db   : > { %v3026_v44 = vsel %vm1676_vm6, %v5433_v43, 0.0 }
0x11dc   : > { %3027 = vadd.xlane.f32.xlu1 %v3026_v44  ;;  %v5331_v44 = vld [vmem:[%s6669_s15 + $0x12c] ss:$16 sps:$4 sm:$0xff]  }
0x11ed   : > { %3079 = vrot.lane.b32.xlu1 %v2969_v29, %s5618_s2 }
0x1269   : > { %v3028_v45 = vpop.xlane.xlu1 %3027 }
0x126a   : > { %5434 = vrcp.f32 %v3028_v45  ;;  %v5326_v45 = vld [vmem:[%s6669_s15 + $0x120] ss:$16 sps:$4 sm:$0xff]  }
0x126d   : > { %v3080_v35 = vpop.permute.xlu1 %3079 }
0x1274   : > { %v5435_v46 = vpop.eup %5434 }
0x1275   : > { %v3030_v6 = vmul.f32 %v5435_v46, %v5433_v43  ;;  %v5325_v43 = vld [vmem:[%s6669_s15 + $0x10c] ss:$16 sps:$4 sm:$0xff]   ;;  %v5329_v46 = vld [vmem:[%s6669_s15 + $0x128] ss:$16 sps:$4 sm:$0xff]  }
0x1276   : > { %3601 = vmatprep.subr.bf16.mxu0 %v5325_v43  ;;  %v5382_v43 = vld [vmem:[%s6671_s17 + $0x118] sm:$0xff]  }
0x1277   : > { %v3031_v49 = vpack.c.bf16 %v3030_v6, %v3030_v6  ;;  %v5334_v6 = vld [vmem:[%s6669_s15 + $0x144] ss:$16 sps:$4 sm:$0xff]  }
0x1279   : > { %4972 = vmatmul.mubr.msk.bf16.vlgmr.msra.gmra.mrb[40].mxu1 %vm1676_vm6, %v3031_v49  ;;  %v5332_v49 = vld [vmem:[%s6669_s15 + $0x140] ss:$16 sps:$4 sm:$0xff]  }
0x127a   : > { %4976 = vmatpush3.bf16.xpose.msra.mxu1 %v3088_v50  ;;  %4977 = vmatprep.mubr.msk.bf16.mxu1 %vm5617_vm2, %v5615_v38  ;;  %v5335_v50 = vld [vmem:[%s6669_s15 + $0x148] ss:$16 sps:$4 sm:$0xff]  }
0x127b   : > { %4981 = vmatprep.subr.bf16.mxu1 %v5615_v38 }
0x1281   : > { %4978 = vmatmul.mubr.msk.bf16.vlgmr.msra.gmra.mrb[44].mxu1 %vm1627_vm3, %v3080_v35 }
0x1282   : > { %4983 = vmatprep.mubr.msk.bf16.mxu1 %vm5617_vm2, %v5615_v38 }
0x134c   : > { %v3072_v51 = vpop.f32.mrb[40].mxu1 }
0x134d   : > { %v4973_v52 = vpop.f32.mrb[41].mxu1 }
0x134e   : > { %v3075_v53 = vpop.f32.mrb[42].mxu1 }
0x134f   : > { %v4974_v54 = vpop.f32.mrb[43].mxu1 }
0x1350   : > { %v5340_v54 = vld [vmem:[%s6669_s15 + $0x164] ss:$16 sps:$4 sm:$0xff]  }
0x1354   : > { %v3124_v55 = vpop.f32.mrb[44].mxu1 }
0x1355   : > { %v3130_v56 = vmul.f32 0.125, %v3124_v55  ;;  %v4979_v57 = vpop.f32.mrb[45].mxu1  ;;  %v5343_v55 = vld [vmem:[%s6669_s15 + $0x16c] ss:$16 sps:$4 sm:$0xff]  }
0x1356   : > { %v3127_v58 = vpop.f32.mrb[46].mxu1  ;;  %v5341_v57 = vld [vmem:[%s6669_s15 + $0x168] ss:$16 sps:$4 sm:$0xff]  }
0x1357   : > { %v4980_v59 = vpop.f32.mrb[47].mxu1  ;;  %v3131_v61 = vsel %vm756_vm5, %v3130_v56, -1e+30  ;;  %v5338_v56 = vld [vmem:[%s6669_s15 + $0x160] ss:$16 sps:$4 sm:$0xff]  }
0x1358   : > { %v3132_v62 = vsel %vm1676_vm6, %v3131_v61, -inf  ;;  %v5346_v58 = vld [vmem:[%s6669_s15 + $0x184] ss:$16 sps:$4 sm:$0xff]   ;;  %v5344_v59 = vld [vmem:[%s6669_s15 + $0x180] ss:$16 sps:$4 sm:$0xff]  }
0x1359   : > { %3133 = vmax.xlane.f32.xlu1 %v3132_v62  ;;  %v5349_v62 = vld [vmem:[%s6669_s15 + $0x18c] ss:$16 sps:$4 sm:$0xff]  }
0x13e6   : > { %v3134_v63 = vpop.xlane.xlu1 %3133 }
0x13e7   : > { %v3135_v0 = vsub.f32 %v3131_v61, %v3134_v63  ;;  %v5347_v61 = vld [vmem:[%s6669_s15 + $0x188] ss:$16 sps:$4 sm:$0xff]   ;;  %v5352_v63 = vld [vmem:[%s6669_s15 + $0x1a4] ss:$16 sps:$4 sm:$0xff]  }
0x13e9   : > { %v3136_v1 = vmul.f32 1.442695, %v3135_v0  ;;  %v5355_v0 = vld [vmem:[%s6669_s15 + $0x1ac] ss:$16 sps:$4 sm:$0xff]  }
0x13eb   : > { %5436 = vpow2.f32 %v3136_v1  ;;  %v5350_v1 = vld [vmem:[%s6669_s15 + $0x1a0] ss:$16 sps:$4 sm:$0xff]  }
0x13f5   : > { %v5437_v2 = vpop.eup %5436 }
0x13f6   : > { %v3138_v3 = vsel %vm1676_vm6, %v5437_v2, 0.0 }
0x13f7   : > { %3139 = vadd.xlane.f32.xlu0 %v3138_v3  ;;  %v5358_v3 = vld [vmem:[%s6669_s15 + $0x1c4] ss:$16 sps:$4 sm:$0xff]  }
0x140d   : > { %3145 = vrot.lane.b32.xlu0 %v2971_v28, %s5618_s2 }
0x1484   : > { %v3140_v4 = vpop.xlane.xlu0 %3139 }
0x1485   : > { %5438 = vrcp.f32 %v3140_v4  ;;  %v5361_v4 = vld [vmem:[%s6669_s15 + $0x1cc] ss:$16 sps:$4 sm:$0xff]  }
0x1488   : > { %v3146_v5 = vpop.permute.xlu0 %3145 }
0x1489   : > { %v3151_v9 = vsel %vm1692_vm4, %v3146_v5, 0  ;;  %v5356_v5 = vld [vmem:[%s6669_s15 + $0x1c0] ss:$16 sps:$4 sm:$0xff]  }
0x148a   : > { %4982 = vmatpush3.bf16.msra.mxu1 %v3151_v9  ;;  %v5359_v9 = vld [vmem:[%s6669_s15 + $0x1c8] ss:$16 sps:$4 sm:$0xff]  }
0x148b   : > { %3560 = vmatprep.subr.bf16.mxu1 %v5322_v41  ;;  %v5380_v41 = vld [vmem:[%s6671_s17 + $0x158] sm:$0xff]  }
0x148f   : > { %v5439_v39 = vpop.eup %5438 }
0x1490   : > { %v3142_v10 = vmul.f32 %v5439_v39, %v5437_v2  ;;  %v5353_v2 = vld [vmem:[%s6669_s15 + $0x1a8] ss:$16 sps:$4 sm:$0xff]   ;;  %v5364_v39 = vld [vmem:[%s6669_s15 + $0x1e4] ss:$16 sps:$4 sm:$0xff]  }
0x1492   : > { %v3143_v11 = vpack.c.bf16 %v3142_v10, %v3142_v10  ;;  %v5367_v10 = vld [vmem:[%s6669_s15 + $0x1ec] ss:$16 sps:$4 sm:$0xff]  }
0x1494   : > { %4984 = vmatmul.mubr.msk.bf16.vlgmr.msra.gmra.mrb[48].mxu1 %vm1676_vm6, %v3143_v11  ;;  %v5362_v11 = vld [vmem:[%s6669_s15 + $0x1e0] ss:$16 sps:$4 sm:$0xff]  }
0x1495   : > { %3592 = vmatprep.mubr.bf16.mxu1 %v5616_v60 }
0x1567   : > { %v3187_v23 = vpop.f32.mrb[48].mxu1 }
0x1568   : > { %3194 = vrot.lane.b32.xlu1 %v3187_v23, %s5618_s2  ;;  %v4985_v24 = vpop.f32.mrb[49].mxu1  ;;  %s6733_s2 = sld [smem:[#allocation27_spill]] }
0x1569   : > { %v3190_v25 = vpop.f32.mrb[50].mxu1 }
0x156a   : > { %v4986_v26 = vpop.f32.mrb[51].mxu1 }
0x156b   : > { %v5368_v26 = vld [vmem:[%s6671_s17 + $0x140] sm:$0xff]  }
0x15da   : > { %v3195_v28 = vpop.permute.xlu1 %3194 }
0x15db   : > { %v3197_v29 = vsel %vm1627_vm3, %v3072_v51, %v3195_v28  ;;  %v5369_v28 = vld [vmem:[%s6671_s17 + $0x1c0] sm:$0xff]  }
0x15dc   : > { %v3198_v30 = vpack.c.bf16 %v3197_v29, %v3197_v29  ;;  %v5370_v29 = vld [vmem:[%s6671_s17 + $0x100] sm:$0xff]  }
0x15de   : > { %5004 = vmatmul.mubr.bf16.vlgmr.msra.gmra.mrb[28].mxu0 %v3198_v30  ;;  %v5371_v30 = vld [vmem:[%s6671_s17 + $0x180] sm:$0xff]  }
0x15df   : > { %3633 = vmatprep.mubr.bf16.mxu0 %v5616_v60  ;;  %v5320_v60 = vld [vmem:[%s6669_s15 + $0x100] ss:$16 sps:$4 sm:$0xff]   ;;  %3602 = vmatpush1.bf16.msra.mxu0 %v5323_v42  ;;  %v5381_v42 = vld [vmem:[%s6671_s17 + $0x1d8] sm:$0xff]  }
0x15e0   : > { %3561 = vmatpush1.bf16.msra.mxu1 %v5320_v60  ;;  %3603 = vmatprep.subr.bf16.mxu0 %v5331_v44  ;;  %v5379_v60 = vld [vmem:[%s6671_s17 + $0x190] sm:$0xff]   ;;  %v5384_v44 = vld [vmem:[%s6671_s17 + $0x160] sm:$0xff]  }
0x15e3   : > { %3604 = vmatpush1.bf16.msra.mxu0 %v5329_v46  ;;  %v5386_v46 = vld [vmem:[%s6671_s17 + $0x120] sm:$0xff]  }
0x15e4   : > { %3605 = vmatprep.subr.bf16.mxu0 %v5337_v48  ;;  %v5388_v48 = vld [vmem:[%s6671_s17 + $0x168] sm:$0xff]  }
0x15e7   : > { %3606 = vmatpush1.bf16.msra.mxu0 %v5335_v50  ;;  %v5390_v50 = vld [vmem:[%s6671_s17 + $0x128] sm:$0xff]  }
0x15e8   : > { %3607 = vmatprep.subr.bf16.mxu0 %v5343_v55  ;;  %v5396_v55 = vld [vmem:[%s6671_s17 + $0x178] sm:$0xff]  }
0x15eb   : > { %3608 = vmatpush1.bf16.msra.mxu0 %v5341_v57  ;;  %v5398_v57 = vld [vmem:[%s6671_s17 + $0x138] sm:$0xff]  }
0x15ec   : > { %3609 = vmatprep.subr.bf16.mxu0 %v5349_v62 }
0x15ef   : > { %3610 = vmatpush1.bf16.msra.mxu0 %v5347_v61 }
0x15f0   : > { %3611 = vmatprep.subr.bf16.mxu0 %v5355_v0 }
0x15f3   : > { %3612 = vmatpush1.bf16.msra.mxu0 %v5353_v2 }
0x15f4   : > { %3613 = vmatprep.subr.bf16.mxu0 %v5361_v4 }
0x15f7   : > { %3614 = vmatpush1.bf16.msra.mxu0 %v5359_v9 }
0x15f8   : > { %3615 = vmatprep.subr.bf16.mxu0 %v5367_v10 }
0x15fb   : > { %3616 = vmatpush1.bf16.msra.mxu0 %v5365_v13 }
0x15fc   : > { %4848 = vmatprep.subr.bf16.mxu0 %v5369_v28 }
0x16b1   : > { %v3306_v32 = vpop.f32.mrb[28].mxu0 }
0x16b2   : > { %v3307_v33 = vadd.f32 %v4477_v31, %v3306_v32  ;;  %v5005_v34 = vpop.f32.mrb[29].mxu0  ;;  %v5372_v31 = vld [vmem:[%s6671_s17 + $0x148] sm:$0xff]  }
0x16b3   : > { %v3309_v36 = vpop.f32.mrb[30].mxu0  ;;  %v5373_v32 = vld [vmem:[%s6671_s17 + $0x1c8] sm:$0xff]  }
0x16b4   : > { %v3312_v47 = vsel %vm753_vm1, %v3307_v33, 0.0  ;;  %v5006_v37 = vpop.f32.mrb[31].mxu0  ;;  %v5374_v33 = vld [vmem:[%s6671_s17 + $0x108] sm:$0xff]   ;;  %v5376_v36 = vld [vmem:[%s6671_s17 + $0x150] sm:$0xff]  }
0x16b5   : > { %v6348_v40 = vadd.f32 %v3312_v47, %v6250_v27  ;;  %v5328_v27 = vld [vmem:[%s6669_s15 + $0x124] ss:$16 sps:$4 sm:$0xff]   ;;  %v5375_v34 = vld [vmem:[%s6671_s17 + $0x188] sm:$0xff]  }
0x16b6   : > { %3562 = vmatprep.subr.bf16.mxu1 %v5328_v27  ;;  %v5377_v47 = vld [vmem:[%s6671_s17 + $0x1d0] sm:$0xff]   ;;  %v5383_v27 = vld [vmem:[%s6671_s17 + $0x198] sm:$0xff]  }
0x16b7   : > { %3318 = vadd.xlane.f32.xlu1 %v6348_v40  ;;  %3563 = vmatpush1.bf16.msra.mxu1 %v5326_v45  ;;  %v5378_v37 = vld [vmem:[%s6671_s17 + $0x110] sm:$0xff]   ;;  %v5385_v45 = vld [vmem:[%s6671_s17 + $0x1e0] sm:$0xff]  }
0x16b8   : > { %3564 = vmatprep.subr.bf16.mxu1 %v5334_v6  ;;  %v5387_v6 = vld [vmem:[%s6671_s17 + $0x1a0] sm:$0xff]  }
0x16bb   : > { %3565 = vmatpush1.bf16.msra.mxu1 %v5332_v49  ;;  %v5389_v49 = vld [vmem:[%s6671_s17 + $0x1e8] sm:$0xff]  }
0x16bc   : > { %3566 = vmatprep.subr.bf16.mxu1 %v5340_v54  ;;  %v5395_v54 = vld [vmem:[%s6671_s17 + $0x1b0] sm:$0xff]  }
0x16bf   : > { %3567 = vmatpush1.bf16.msra.mxu1 %v5338_v56  ;;  %v5397_v56 = vld [vmem:[%s6671_s17 + $0x1f8] sm:$0xff]  }
0x16c0   : > { %3568 = vmatprep.subr.bf16.mxu1 %v5346_v58  ;;  %v5399_v58 = vld [vmem:[%s6671_s17 + $0x1b8] sm:$0xff]  }
0x16c3   : > { %3569 = vmatpush1.bf16.msra.mxu1 %v5344_v59  ;;  %v4522_v59 = vld [vmem:[%s6670_s16 + $0x4] sm:$0xf] }
0x16c4   : > { %3570 = vmatprep.subr.bf16.mxu1 %v5352_v63  ;;  %v3383_v61 = vrot.slane %v4522_v59, %v5901_v12  ;;  %v3391_v62 = vrot.slane %v4522_v59, %v5951_v17  ;;  %v3387_v63 = vrot.slane %v4522_v59, %v5945_v15  ;;  %v3395_v0 = vrot.slane %v4522_v59, %v2046_v8 }
0x16c7   : > { %3571 = vmatpush1.bf16.msra.mxu1 %v5350_v1 }
0x16c8   : > { %3572 = vmatprep.subr.bf16.mxu1 %v5358_v3 }
0x16cb   : > { %3573 = vmatpush1.bf16.msra.mxu1 %v5356_v5 }
0x16cc   : > { %3574 = vmatprep.subr.bf16.mxu1 %v5364_v39 }
0x16cf   : > { %3575 = vmatpush1.bf16.msra.mxu1 %v5362_v11 }
0x16d0   : > { %4826 = vmatprep.subr.bf16.mxu1 %v5368_v26 }
0x1744   : > { %v3319_v35 = vpop.xlane.xlu1 %3318 }
0x1745   : > { %v3320_v51 = vmul.f32 0.0078125, %v3319_v35  ;;  %v5391_v35 = vld [vmem:[%s6671_s17 + $0x1a8] sm:$0xff]  }
0x1747   : > { %v3321_v52 = vsub.f32 %v6348_v40, %v3320_v51  ;;  %v5392_v51 = vld [vmem:[%s6671_s17 + $0x170] sm:$0xff]  }
0x1749   : > { %v3322_v53 = vmul.f32 %v3321_v52, %v3321_v52 }
0x174b   : > { %3323 = vadd.xlane.f32.xlu0 %v3322_v53  ;;  %v5394_v53 = vld [vmem:[%s6671_s17 + $0x130] sm:$0xff]  }
0x17d8   : > { %v3324_v14 = vpop.xlane.xlu0 %3323 }
0x17d9   : > { %v3325_v16 = vmul.f32 0.0078125, %v3324_v14 }
0x17db   : > { %v3326_v18 = vadd.f32 1e-05, %v3325_v16 }
0x17dd   : > { %5440 = vrsqrt.f32 %v3326_v18 }
0x17e7   : > { %v5441_v19 = vpop.eup %5440 }
0x17e8   : > { %v3328_v21 = vmul.f32 %v5441_v19, %v3321_v52  ;;  %v5393_v52 = vld [vmem:[%s6671_s17 + $0x1f0] sm:$0xff]  }
0x17ea   : > { %v3335_v23 = vmul.f32 %v4488_v20, %v3328_v21 }
0x17ec   : > { %v3342_v24 = vadd.f32 %v4489_v22, %v3335_v23 }
0x17ee   : > { %v3343_v25 = vpack.c.bf16 %v3342_v24, %v3342_v24 }
0x17f0   : > { %3593 = vmatmul.mubr.bf16.vlgmr.msra.gmra.mrb[52].mxu1 %v3343_v25  ;;  %3634 = vmatmul.mubr.bf16.vlgmr.msra.gmra.mrb[32].mxu0 %v3343_v25 }
0x17f1   : > { %4827 = vmatpush3.bf16.msra.mxu1 %v5370_v29  ;;  %4849 = vmatpush3.bf16.msra.mxu0 %v5371_v30 }
0x17f2   : > { %4828 = vmatprep.subr.bf16.mxu1 %v5372_v31  ;;  %4850 = vmatprep.subr.bf16.mxu0 %v5373_v32 }
0x17f5   : > { %4829 = vmatpush3.bf16.msra.mxu1 %v5374_v33  ;;  %4851 = vmatpush3.bf16.msra.mxu0 %v5375_v34 }
0x17f6   : > { %4830 = vmatprep.subr.bf16.mxu1 %v5376_v36  ;;  %4852 = vmatprep.subr.bf16.mxu0 %v5377_v47 }
0x17f9   : > { %4831 = vmatpush3.bf16.msra.mxu1 %v5378_v37  ;;  %4853 = vmatpush3.bf16.msra.mxu0 %v5379_v60 }
0x17fa   : > { %4832 = vmatprep.subr.bf16.mxu1 %v5380_v41  ;;  %4854 = vmatprep.subr.bf16.mxu0 %v5381_v42 }
0x17fd   : > { %4833 = vmatpush3.bf16.msra.mxu1 %v5382_v43  ;;  %4855 = vmatpush3.bf16.msra.mxu0 %v5383_v27 }
0x17fe   : > { %4834 = vmatprep.subr.bf16.mxu1 %v5384_v44  ;;  %4856 = vmatprep.subr.bf16.mxu0 %v5385_v45 }
0x1801   : > { %4835 = vmatpush3.bf16.msra.mxu1 %v5386_v46  ;;  %4857 = vmatpush3.bf16.msra.mxu0 %v5387_v6 }
0x1802   : > { %4836 = vmatprep.subr.bf16.mxu1 %v5388_v48  ;;  %4858 = vmatprep.subr.bf16.mxu0 %v5389_v49 }
0x1805   : > { %4837 = vmatpush3.bf16.msra.mxu1 %v5390_v50  ;;  %4859 = vmatpush3.bf16.msra.mxu0 %v5391_v35 }
0x1806   : > { %4838 = vmatprep.subr.bf16.mxu1 %v5392_v51  ;;  %4860 = vmatprep.subr.bf16.mxu0 %v5393_v52 }
0x1809   : > { %4839 = vmatpush3.bf16.msra.mxu1 %v5394_v53  ;;  %4861 = vmatpush3.bf16.msra.mxu0 %v5395_v54 }
0x180a   : > { %4840 = vmatprep.subr.bf16.mxu1 %v5396_v55  ;;  %4862 = vmatprep.subr.bf16.mxu0 %v5397_v56 }
0x180d   : > { %4841 = vmatpush3.bf16.msra.mxu1 %v5398_v57  ;;  %4863 = vmatpush3.bf16.msra.mxu0 %v5399_v58  ;;  %v4620_v57 = vld [vmem:[%s6672_s18 + $0x1] ss:$0 sm:$0xff] }
0x180e   : > { %5007 = vmatprep.subr.bf16.mxu1 %v5615_v38 }
0x18c3   : > { %v3594_v1 = vpop.f32.mrb[52].mxu1  ;;  %v3635_v2 = vpop.f32.mrb[32].mxu0 }
0x18c4   : > { %v3595_v3 = vadd.f32 %v3594_v1, %v3383_v61  ;;  %v3636_v4 = vadd.f32 %v3635_v2, %v3391_v62  ;;  %v3596_v5 = vpop.f32.mrb[53].mxu1  ;;  %v3637_v9 = vpop.f32.mrb[33].mxu0 }
0x18c5   : > { %v3597_v39 = vadd.f32 %v3596_v5, %v3387_v63  ;;  %v3638_v10 = vadd.f32 %v3637_v9, %v3395_v0  ;;  %v3598_v11 = vpop.f32.mrb[54].mxu1  ;;  %v3639_v13 = vpop.f32.mrb[34].mxu0 }
0x18c6   : > { %v3642_v14 = vmul.f32 %v3595_v3, %v3595_v3  ;;  %v3644_v16 = vmul.f32 %v3636_v4, %v3636_v4  ;;  %v3599_v12 = vpop.f32.mrb[55].mxu1  ;;  %v3640_v18 = vpop.f32.mrb[35].mxu0  ;;  %v5401_v11 = vld [vmem:[%s6675_s21 + $0x8] sm:$0xff]  }
0x18c7   : > { %v3643_v17 = vmul.f32 %v3597_v39, %v3597_v39  ;;  %v3645_v19 = vmul.f32 %v3638_v10, %v3638_v10  ;;  %v5402_v12 = vld [vmem:[%s6675_s21 + $0x10] sm:$0xff]   ;;  %v5403_v18 = vld [vmem:[%s6675_s21 + $0x18] sm:$0xff]  }
0x18c8   : > { %v3646_v15 = vmul.f32 %v3642_v14, %v3595_v3  ;;  %v3648_v20 = vmul.f32 %v3644_v16, %v3636_v4 }
0x18c9   : > { %v3647_v21 = vmul.f32 %v3643_v17, %v3597_v39  ;;  %v3649_v8 = vmul.f32 %v3645_v19, %v3638_v10  ;;  %v5404_v17 = vld [vmem:[%s6675_s21 + $0x20] sm:$0xff]   ;;  %v5405_v19 = vld [vmem:[%s6675_s21 + $0x28] sm:$0xff]  }
0x18ca   : > { %v3650_v22 = vmul.f32 0.044715, %v3646_v15  ;;  %v3652_v23 = vmul.f32 0.044715, %v3648_v20  ;;  %v5406_v15 = vld [vmem:[%s6675_s21 + $0x30] sm:$0xff]   ;;  %v5407_v20 = vld [vmem:[%s6675_s21 + $0x38] sm:$0xff]  }
0x18cb   : > { %v3651_v24 = vmul.f32 0.044715, %v3647_v21  ;;  %v3653_v25 = vmul.f32 0.044715, %v3649_v8 }
0x18cc   : > { %v3654_v26 = vadd.f32 %v3650_v22, %v3595_v3  ;;  %v3656_v28 = vadd.f32 %v3652_v23, %v3636_v4 }
0x18cd   : > { %v3655_v29 = vadd.f32 %v3651_v24, %v3597_v39  ;;  %v3657_v30 = vadd.f32 %v3653_v25, %v3638_v10  ;;  %v4029_v24 = vld [vmem:[%s6733_s2] sm:$0x1]  ;;  %s6737_s2 = sld [smem:[#allocation30_spill]] }
0x18ce   : > { %v3658_v31 = vmul.f32 0.7978846, %v3654_v26  ;;  %v3660_v32 = vmul.f32 0.7978846, %v3656_v28  ;;  %v4030_v26 = vld [vmem:[%s6734_s25] sm:$0x1] }
0x18cf   : > { %v3659_v33 = vmul.f32 0.7978846, %v3655_v29  ;;  %v3661_v34 = vmul.f32 0.7978846, %v3657_v30  ;;  %s5619_s25 = smov [#allocation8]  }
0x18d0   : > { %5442 = vtanh.f32 %v3658_v31  ;;  %s5540_s19 = sshll.u32 %s5619_s25, 4  ;;  %s5541_s19 = int_to_ptr.vmem [resolvable:$false] %s5540_s19 }
0x18d1   : > { %5444 = vtanh.f32 %v3660_v32  ;;  %s5542_s20 = scalar_lea.vmem %s5541_s19, 32  ;;  %p5543_p4 = scmp.lt.s32.totalorder %s6614_s1, %s5541_s19 }
0x18d2   : > { %5446 = vtanh.f32 %v3659_v33  ;;  %p5544_p7 = scmp.lt.s32.totalorder %s5542_s20, %s5536_s5 }
0x18d3   : > { %5448 = vtanh.f32 %v3661_v34  ;;  %s6612_s27 = scalar_lea.hbm %s6737_s2, %s4661_s29 }
0x18d4   : > { %p5545_p8 = por %p5544_p7, %p5543_p4 }
0x18d6   : > { %p5546_p11 = pnand %p5545_p8, %p5539_p3 }
0x18da   : > { %v5443_v36 = vpop.eup %5442 }
0x18db   : > { %v5445_v47 = vpop.eup %5444  ;;  %v3666_v37 = vadd.f32 1.0, %v5443_v36 }
0x18dc   : > { %v5447_v60 = vpop.eup %5446  ;;  %v3668_v41 = vadd.f32 1.0, %v5445_v47 }
0x18dd   : > { %v5449_v42 = vpop.eup %5448  ;;  %v3667_v43 = vadd.f32 1.0, %v5447_v60  ;;  %v3670_v27 = vmul.f32 0.5, %v3666_v37 }
0x18de   : > { %v3669_v44 = vadd.f32 1.0, %v5449_v42  ;;  %v3672_v45 = vmul.f32 0.5, %v3668_v41 }
0x18df   : > { %v3671_v46 = vmul.f32 0.5, %v3667_v43  ;;  %v3674_v48 = vmul.f32 %v3670_v27, %v3595_v3 }
0x18e0   : > { %v3673_v6 = vmul.f32 0.5, %v3669_v44  ;;  %v3676_v50 = vmul.f32 %v3672_v45, %v3636_v4 }
0x18e1   : > { %v3675_v49 = vmul.f32 %v3671_v46, %v3597_v39  ;;  %v3678_v53 = vpack.c.bf16 %v3674_v48, %v3674_v48 }
0x18e2   : > { %v3677_v35 = vmul.f32 %v3673_v6, %v3638_v10  ;;  %v3680_v54 = vpack.c.bf16 %v3676_v50, %v3676_v50  ;;  %v5400_v10 = vld [vmem:[%s6675_s21] sm:$0xff]  }
0x18e3   : > { %v3679_v51 = vpack.c.bf16 %v3675_v49, %v3675_v49 }
0x18e4   : > { %v3681_v52 = vpack.c.bf16 %v3677_v35, %v3677_v35 }
0x18e5   : > { %3979 = vmatprep.mubr.bf16.mxu1 %v3679_v51 }
0x18e6   : > { %4019 = vmatprep.mubr.bf16.mxu0 %v3681_v52  ;;  %3980 = vmatmul.mubr.bf16.vlgmr.msra.gmra.mrb[56].mxu1 %v3678_v53 }
0x18e7   : > { %4020 = vmatmul.mubr.bf16.vlgmr.msra.gmra.mrb[36].mxu0 %v3680_v54  ;;  %5023 = vmatprep.mubr.msk.bf16.mxu1 %vm5617_vm2, %v5615_v38 }
0x18e8   : > { %5008 = vmatpush3.bf16.msra.mxu1 %v5400_v10 }
0x18e9   : > { %5009 = vmatprep.subr.bf16.mxu1 %v5615_v38 }
0x18ec   : > { %5010 = vmatpush3.bf16.msra.mxu1 %v5401_v11 }
0x18ed   : > { %5011 = vmatprep.subr.bf16.mxu1 %v5615_v38 }
0x18f0   : > { %5012 = vmatpush3.bf16.msra.mxu1 %v5402_v12 }
0x18f1   : > { %5013 = vmatprep.subr.bf16.mxu1 %v5615_v38 }
0x18f4   : > { %5014 = vmatpush3.bf16.msra.mxu1 %v5403_v18 }
0x18f5   : > { %5015 = vmatprep.subr.bf16.mxu1 %v5615_v38 }
0x18f8   : > { %5016 = vmatpush3.bf16.msra.mxu1 %v5404_v17 }
0x18f9   : > { %5017 = vmatprep.subr.bf16.mxu1 %v5615_v38 }
0x18fc   : > { %5018 = vmatpush3.bf16.msra.mxu1 %v5405_v19 }
0x18fd   : > { %5019 = vmatprep.subr.bf16.mxu1 %v5615_v38 }
0x1900   : > { %5020 = vmatpush3.bf16.msra.mxu1 %v5406_v15 }
0x1901   : > { %5021 = vmatprep.subr.bf16.mxu1 %v5615_v38  ;;  %v4064_v38 = vld [vmem:[%s6735_s23] sm:$0x1] }
0x1904   : > { %5022 = vmatpush3.bf16.msra.mxu1 %v5407_v20 }
0x19b9   : > { %v4842_v55 = vpop.f32.mrb[56].mxu1 }
0x19ba   : > { %v4864_v56 = vpop.f32.mrb[36].mxu0  ;;  %v4843_v58 = vpop.f32.mrb[57].mxu1 }
0x19bb   : > { %v4844_v59 = vadd.f32 %v4843_v58, %v4842_v55  ;;  %v4865_v61 = vpop.f32.mrb[37].mxu0  ;;  %v4845_v62 = vpop.f32.mrb[58].mxu1 }
0x19bc   : > { %v4866_v63 = vadd.f32 %v4865_v61, %v4864_v56  ;;  %v4867_v0 = vpop.f32.mrb[38].mxu0  ;;  %v4846_v1 = vpop.f32.mrb[59].mxu1 }
0x19bd   : > { %v3982_v2 = vadd.f32 %v4844_v59, %v4620_v57  ;;  %v4868_v3 = vpop.f32.mrb[39].mxu0 }
0x19bf   : > { %v4022_v4 = vadd.f32 %v4866_v63, %v3982_v2 }
0x19c1   : > { %v4027_v5 = vsel %vm753_vm1, %v4022_v4, 0.0 }
0x19c2   : > { %v4028_v9 = vadd.f32 %v4027_v5, %v6348_v40 }
0x19c4   : > { %v4032_v39 = vsel %vm4031_vm7, %v4028_v9, 0.0 }
0x19c5   : > { %4033 = vadd.xlane.f32.xlu0 %v4032_v39 }
0x1a52   : > { %v4034_v7 = vpop.xlane.xlu0 %4033 }
0x1a53   : > { %v4035_v13 = vmul.f32 0.0078125, %v4034_v7 }
0x1a55   : > { %v4036_v14 = vsub.f32 %v4028_v9, %v4035_v13 }
0x1a57   : > { %v4037_v40 = vmul.f32 %v4036_v14, %v4036_v14 }
0x1a59   : > { %v4038_v16 = vsel %vm4031_vm7, %v4037_v40, 0.0 }
0x1a5a   : > { %4039 = vadd.xlane.f32.xlu1 %v4038_v16 }
0x1ae7   : > { %v4040_v21 = vpop.xlane.xlu1 %4039 }
0x1ae8   : > { %v4041_v8 = vmul.f32 0.0078125, %v4040_v21 }
0x1aea   : > { %v4042_v22 = vadd.f32 1e-05, %v4041_v8 }
0x1aec   : > { %5450 = vrsqrt.f32 %v4042_v22 }
0x1af6   : > { %v5451_v23 = vpop.eup %5450 }
0x1af7   : > { %v4044_v25 = vmul.f32 %v5451_v23, %v4036_v14 }
0x1af9   : > { %v4045_v28 = vmul.f32 %v4044_v25, %v4029_v24 }
0x1afb   : > { %v4046_v29 = vadd.f32 %v4045_v28, %v4030_v26 }
0x1afd   : > { %v4047_v30 = vpack.c.bf16 %v4046_v29, %v4046_v29 }
0x1aff   : > { %5024 = vmatmul.mubr.bf16.vlgmr.msra.gmra.mrb[60].mxu1 %v4047_v30 }
0x1bd2   : > { %v4147_v31 = vpop.f32.mrb[60].mxu1 }
0x1bd3   : > { %v4148_v32 = vadd.f32 %v4147_v31, %v4064_v38  ;;  %v5025_v33 = vpop.f32.mrb[61].mxu1 }
0x1bd4   : > { %v4150_v34 = vpop.f32.mrb[62].mxu1 }
0x1bd5   : > { %4153 = vst [vmem:[%s744_s6] sm:$0x1] %v4148_v32  ;;  %v5026_v36 = vpop.f32.mrb[63].mxu1 }
0x1bd6   : > { %5549 = shalt.err (!%p5546_p11)
}
0x1bd7   : > { %s5550_s0 = scalar_lea.hbm %s6612_s27, 16  ;;  %s5554_s6 = scalar_lea.hbm %s6737_s2, 32 }
0x1bd8   : > { %p5551_p13 = scmp.ne.s32.totalorder %s6612_s27, %s5550_s0  ;;  %p5555_p6 = scmp.lt.u32.totalorder %s6612_s27, %s6737_s2 }
0x1bd9   : > { %p5556_p5 = scmp.lt.u32.totalorder %s5554_s6, %s5550_s0  ;;  %p5558_p9 = scmp.lt.u32.totalorder %s5550_s0, %s6612_s27 }
0x1bda   : > { %p5552_p1 = pnand %p5551_p13, %p6738_p10 }
0x1bdb   : > { %p5557_p12 = por %p5556_p5, %p5555_p6 }
0x1bdc   : > { %p5553_p0 = pneg %p5552_p1 }
0x1bdd   : > { %p5559_p2 = por %p5558_p9, %p5557_p12 }
0x1bdf   : > { %p5560_p3 = pnand %p5559_p2, %p5553_p0 }
0x1be1   : > { %5563 = shalt.err (!%p5560_p3)
}
0x1be2   : > { %5040 = dma.vmem_to_hbm [thread:$0]  (%p6738_p10), %s6614_s1, 16, %s6612_s27, %s4155_s4  }
0x1be3 PF: > { %s6739_s5 = sld [smem:[#allocation14_spill]]  ;;  %s6740_s25 = sld [smem:[#allocation12_spill]] }
0x1be4   : > { %s6741_s19 = sld [smem:[#allocation18_spill]] }
0x1be9   : > { %p5062_p4 = scmp.ge.s32.totalorder %s6739_s5, 2  ;;  %s4179_s20 = sand.u32 1, %s6740_s25  }
0x1bea   : > { %p6742_p7 = scmp.ne.s32.totalorder %s6741_s19, 0  ;;  %s4180_s23 = scalar_lea.sflag [#allocation4], %s4179_s20 }
0x1bec   : > { %p5053_p8 = pnand %p5062_p4, %p6742_p7 }
0x1bee   : > { %5589 = dma.done.wait (!%p5053_p8), %s4180_s23, 16  }
0x1bef   : > { %5591 = vsyncadd (!%p5053_p8), %s4180_s23, 4294967280  ;;  %s6743_s25 = sld [smem:[#allocation15_spill]]  ;;  %s6744_s0 = sld [smem:[#allocation13_spill]] }
0x1bf0   : > { %s6745_s24 = sld [smem:[#allocation16_spill]]  ;;  %s6746_s4 = smov %s5598_s30 }
0x1bf5   : > { %p35_p11 = scmp.ge.s32.totalorder %s6743_s25, 4   ;;  %s6747_s30 = smov %s6744_s0 }
0x1bf7   :  { %37 = sbr.rel (!%p35_p11) target bundleno = 18 (0x12), region = 172 }
0x1bfe   :  { %4184 = vsyncpa [#allocation3], 1 }
0x1bff   :  { %4186 = vsyncpa [#allocation3 + $0x1], 1 }
0x1c00   :  { %4187 = vsyncpa [#allocation6], 1 }
0x1c01   :  { %4188 = vsyncpa [#allocation4], 1 }
0x1c02   :  { %4190 = vsyncpa [#allocation4 + $0x1], 1 }

</bundles_post_ra>
